<compile_context>
chip_gen: v7x
topology: tpu7x:2x2x1
jax: 0.10.0
libtpu: 0.0.40
codegen_flags: <defaults>
</compile_context>

<pallas_src>
import jax
import jax.numpy as jnp
from jax.experimental import pallas as pl
from jax.experimental.pallas import tpu as pltpu

HIDDEN = 768
EPS = 1e-12

# 1024 x 768 f32 block = 3 MiB; double-buffered in + out ~= 12 MiB, which
# leaves ample headroom under v7x's 64 MiB physical VMEM and fits v5e/v6e.
_MAX_TILE_ROWS = 1024
# Hard ceiling on the scoped-VMEM request: safely below v7x's 64 MiB.
_VMEM_CAP_BYTES = 48 << 20


def layernorm_kernel(x_ref, gamma_ref, beta_ref, o_ref):
    # x_ref: (TILE_ROWS, HIDDEN); gamma_ref / beta_ref: (1, HIDDEN) VMEM residents.
    x = x_ref[...].astype(jnp.float32)
    inv_h = jnp.float32(1.0 / HIDDEN)

    # Two-pass centered form: numerically matches PyTorch's LayerNorm and the
    # extra pass is free (kernel is memory-bound; data already in vregs).
    mean = jnp.sum(x, axis=-1, keepdims=True) * inv_h
    xc = x - mean
    var = jnp.sum(xc * xc, axis=-1, keepdims=True) * inv_h
    inv = jax.lax.rsqrt(var + jnp.float32(EPS))

    g = gamma_ref[...].astype(jnp.float32)
    b = beta_ref[...].astype(jnp.float32)
    o_ref[...] = (xc * inv * g + b).astype(o_ref.dtype)


def _round_up(n, m):
    return ((n + m - 1) // m) * m


def _num_tensorcores():
    """v7x shards a 'parallel' grid axis across 2 TensorCores; v5e/v6e have 1."""
    try:
        kind = jax.devices()[0].device_kind.lower()
    except Exception:
        return 1
    if "v7" in kind or "7x" in kind:
        return 2
    return 1


def _choose_tile_rows(rows, row_align, num_cores):
    """Pick a row tile: as large as possible, with an even step count on v7x."""
    if num_cores >= 2:
        # Even number of grid steps so both TensorCores get streamed work.
        target_steps = 2 * pl.cdiv(rows, 2 * _MAX_TILE_ROWS)
        tr = _round_up(pl.cdiv(rows, target_steps), row_align)
    else:
        # Single-TC parts: one big tile (up to the cap); step count is purely
        # a DMA-length / per-step-overhead tradeoff, not a core-count one.
        tr = min(_round_up(rows, row_align), _MAX_TILE_ROWS)
    return max(min(tr, _MAX_TILE_ROWS), row_align)


def layernorm(x, gamma, beta):
    orig_shape = x.shape
    H = orig_shape[-1]
    assert H == HIDDEN, f"expected hidden={HIDDEN}, got {H}"
    rows = 1
    for d in orig_shape[:-1]:
        rows *= d
    x2 = x.reshape(rows, H)

    itemsize = jnp.dtype(x.dtype).itemsize
    row_align = 16 if itemsize < 4 else 8  # sublane packing for bf16/fp8

    tr = _choose_tile_rows(rows, row_align, _num_tensorcores())
    grid = (pl.cdiv(rows, tr),)  # last block may be ragged; no padding copies

    gamma2 = gamma.reshape(1, H).astype(x.dtype)
    beta2 = beta.reshape(1, H).astype(x.dtype)

    # Raise scoped VMEM enough for double-buffered in + out tiles (important
    # on v5e's ~16 MiB default), but never past a v7x-safe ceiling.
    bytes_per_block = tr * H * itemsize
    vmem_limit = min(max(int(4.5 * bytes_per_block) + (2 << 20), 32 << 20),
                     _VMEM_CAP_BYTES)

    out = pl.pallas_call(
        layernorm_kernel,
        out_shape=jax.ShapeDtypeStruct((rows, H), x.dtype),
        grid_spec=pltpu.PrefetchScalarGridSpec(
            num_scalar_prefetch=0,
            grid=grid,
            in_specs=[
                pl.BlockSpec((tr, H), lambda i: (i, 0)),
                # Tiny constants: whole-array VMEM residents, no pipelining.
                pl.BlockSpec(memory_space=pltpu.MemorySpace.VMEM),
                pl.BlockSpec(memory_space=pltpu.MemorySpace.VMEM),
            ],
            out_specs=pl.BlockSpec((tr, H), lambda i: (i, 0)),
        ),
        compiler_params=pltpu.CompilerParams(
            dimension_semantics=("parallel",),
            vmem_limit_bytes=vmem_limit,
        ),
    )(x2, gamma2, beta2)

    return out.reshape(orig_shape)


def _reference(x, gamma, beta):
    xf = x.astype(jnp.float32)
    mean = jnp.mean(xf, axis=-1, keepdims=True)
    var = jnp.mean((xf - mean) ** 2, axis=-1, keepdims=True)
    return (xf - mean) * jax.lax.rsqrt(var + EPS) * gamma + beta


if __name__ == "__main__":
    key = jax.random.PRNGKey(0)
    kx, kg, kb, kr = jax.random.split(key, 4)

    # PyTorch default affine params are ones/zeros; perturb deterministically
    # to exercise the affine path.
    gamma = 1.0 + 0.02 * jax.random.normal(kg, (HIDDEN,), dtype=jnp.float32)
    beta = 0.01 * jax.random.normal(kb, (HIDDEN,), dtype=jnp.float32)

    # Input shaped like the module's x63: (1, 384, 768), f32.
    x = jax.random.normal(kx, (1, 384, HIDDEN), dtype=jnp.float32)
    y = jax.block_until_ready(layernorm(x, gamma, beta))
    ref = _reference(x, gamma, beta)
    assert jnp.allclose(y, ref, atol=2e-5, rtol=1e-5), "f32 mismatch vs reference"

    # Ragged-row-count check (exercises the no-pad, ragged-last-block path).
    xr = jax.random.normal(kr, (3, 99, HIDDEN), dtype=jnp.float32)
    yr = jax.block_until_ready(layernorm(xr, gamma, beta))
    refr = _reference(xr, gamma, beta)
    assert jnp.allclose(yr, refr, atol=2e-5, rtol=1e-5), "ragged mismatch vs reference"

    # bf16 I/O path (f32 accumulation inside the kernel).
    xb = x.astype(jnp.bfloat16)
    yb = jax.block_until_ready(layernorm(xb, gamma, beta))
    refb = _reference(xb, gamma, beta)
    assert jnp.allclose(yb.astype(jnp.float32), refb, atol=5e-2, rtol=5e-2), \
        "bf16 mismatch vs reference"

    print("KERNEL_OK")
</pallas_src>

<mosaic_0001>
module attributes {stable_mosaic.version = 11 : i64} {
  func.func @layernorm_kernel(%arg0: i32, %arg1: memref<384x768xf32, #tpu.memory_space<vmem>>, %arg2: memref<1x768xf32, #tpu.memory_space<vmem>>, %arg3: memref<1x768xf32, #tpu.memory_space<vmem>>, %arg4: memref<384x768xf32, #tpu.memory_space<vmem>>) attributes {dimension_semantics = [#tpu.dimension_semantics<parallel>], iteration_bounds = array<i64: 1>, scalar_prefetch = 0 : i64, scratch_operands = 0 : i64, tpu.core_type = #tpu.core_type<tc>, window_params = [{transform_indices = @transform_0, window_bounds = array<i64: 384, 768>}, {pipeline_mode = #tpu.pipeline_mode<synchronous>, transform_indices = @transform_1, window_bounds = array<i64: 1, 768>}, {pipeline_mode = #tpu.pipeline_mode<synchronous>, transform_indices = @transform_2, window_bounds = array<i64: 1, 768>}, {transform_indices = @transform_3, window_bounds = array<i64: 384, 768>}]} {
    %c0 = arith.constant 0 : index
    %c0_0 = arith.constant 0 : index
    %0 = vector.load %arg1[%c0, %c0_0] : memref<384x768xf32, #tpu.memory_space<vmem>>, vector<384x768xf32>
    %cst = arith.constant dense<0.000000e+00> : vector<384xf32>
    %1 = vector.multi_reduction <add>, %0, %cst [1] : vector<384x768xf32> to vector<384xf32>
    %2 = vector.shape_cast %1 : vector<384xf32> to vector<384x1xf32>
    %cst_1 = arith.constant 0.00130208337 : f32
    %3 = vector.broadcast %cst_1 : f32 to vector<384x1xf32>
    %4 = arith.mulf %2, %3 : vector<384x1xf32>
    %5 = vector.broadcast %4 : vector<384x1xf32> to vector<384x768xf32>
    %6 = arith.subf %0, %5 : vector<384x768xf32>
    %7 = arith.mulf %6, %6 : vector<384x768xf32>
    %cst_2 = arith.constant dense<0.000000e+00> : vector<384xf32>
    %8 = vector.multi_reduction <add>, %7, %cst_2 [1] : vector<384x768xf32> to vector<384xf32>
    %9 = vector.shape_cast %8 : vector<384xf32> to vector<384x1xf32>
    %cst_3 = arith.constant 0.00130208337 : f32
    %10 = vector.broadcast %cst_3 : f32 to vector<384x1xf32>
    %11 = arith.mulf %9, %10 : vector<384x1xf32>
    %cst_4 = arith.constant 9.99999996E-13 : f32
    %12 = vector.broadcast %cst_4 : f32 to vector<384x1xf32>
    %13 = arith.addf %11, %12 : vector<384x1xf32>
    %14 = math.rsqrt %13 : vector<384x1xf32>
    %c0_5 = arith.constant 0 : index
    %c0_6 = arith.constant 0 : index
    %15 = vector.load %arg2[%c0_5, %c0_6] : memref<1x768xf32, #tpu.memory_space<vmem>>, vector<1x768xf32>
    %c0_7 = arith.constant 0 : index
    %c0_8 = arith.constant 0 : index
    %16 = vector.load %arg3[%c0_7, %c0_8] : memref<1x768xf32, #tpu.memory_space<vmem>>, vector<1x768xf32>
    %17 = vector.broadcast %14 : vector<384x1xf32> to vector<384x768xf32>
    %18 = arith.mulf %6, %17 : vector<384x768xf32>
    %19 = vector.broadcast %15 : vector<1x768xf32> to vector<384x768xf32>
    %20 = arith.mulf %18, %19 : vector<384x768xf32>
    %21 = vector.broadcast %16 : vector<1x768xf32> to vector<384x768xf32>
    %22 = arith.addf %20, %21 : vector<384x768xf32>
    %c0_9 = arith.constant 0 : index
    %c0_10 = arith.constant 0 : index
    %23 = vector.load %arg4[%c0_9, %c0_10] : memref<384x768xf32, #tpu.memory_space<vmem>>, vector<384x768xf32>
    tpu.vector_store %arg4[%c0_9, %c0_10], %22 {strides = array<i32>} : memref<384x768xf32, #tpu.memory_space<vmem>>, vector<384x768xf32>,
    return
  }
  func.func @transform_0(%arg0: i32) -> (i32, i32) {
    %c0_i32 = arith.constant 0 : i32
    %c0_i32_0 = arith.constant 0 : i32
    return %arg0, %c0_i32 : i32, i32
  }
  func.func @transform_1(%arg0: i32) -> (i32, i32) {
    %c0_i32 = arith.constant 0 : i32
    %c0_i32_0 = arith.constant 0 : i32
    %c0_i32_1 = arith.constant 0 : i32
    return %c0_i32, %c0_i32_0 : i32, i32
  }
  func.func @transform_2(%arg0: i32) -> (i32, i32) {
    %c0_i32 = arith.constant 0 : i32
    %c0_i32_0 = arith.constant 0 : i32
    %c0_i32_1 = arith.constant 0 : i32
    return %c0_i32, %c0_i32_0 : i32, i32
  }
  func.func @transform_3(%arg0: i32) -> (i32, i32) {
    %c0_i32 = arith.constant 0 : i32
    %c0_i32_0 = arith.constant 0 : i32
    return %arg0, %c0_i32 : i32, i32
  }
}

</mosaic_0001>

<bundles_post_ra>
// kernel: tpu_custom_call.1
= control target key start
LH: loop header
LB: loop body
LE: loop exit
PB: predicated region body
PF: predicated region fallthrough
CT: control target
= control target key end

     0   :  { %8 = vsyncpa [#allocation3], 0  ;;  %s6397_s0 = inlined_call_operand.hbm [shape: f32[384,768], index: 0, kind: input, shape index: {}]   ;;  %s6398_s1 = inlined_call_operand.hbm [shape: f32[1,768], index: 1, kind: input, shape index: {}]   ;;  %s6399_s2 = inlined_call_operand.hbm [shape: f32[1,768], index: 2, kind: input, shape index: {}]   ;;  %s6400_s3 = inlined_call_operand.hbm [shape: f32[384,768], index: 3, kind: output, shape index: {}]  }
   0x1   :  { %9 = vsyncpa [#allocation6], 0 }
   0x2   :  { %10 = vsyncpa [#allocation4], 0  ;;  %s3498_s12 = smov [#allocation5]   ;;  %s3499_s14 = smov [#allocation2]  }
   0x3   :  { %s29_s13 = sshll.u32 %s3498_s12, 4  ;;  %s16_s15 = sshll.u32 %s3499_s14, 4  ;;  %s30_s13 = int_to_ptr.vmem [resolvable:$true] %s29_s13  ;;  %s3524_s15 = int_to_ptr.vmem [resolvable:$true] %s16_s15 }
   0x4   :  { %s3404_s18 = scalar_lea.hbm %s6398_s1, 96 }
   0x5   :  { %p3405_p0 = scmp.ne.s32.totalorder %s6398_s1, %s3404_s18  ;;  %p3408_p1 = scmp.lt.u32.totalorder %s3404_s18, %s6398_s1 }
   0x7   :  { %p3410_p2 = pnand %p3408_p1, %p3405_p0 }
   0x9   :  { %3413 = shalt.err (!%p3410_p2)
}
   0xa   :  { %s3414_s23 = scalar_lea.vmem %s30_s13, 96  ;;  %p3419_p4 = scmp.lt.s32.totalorder %s30_s13, %s30_s13 }
   0xb   :  { %p3415_p3 = scmp.ne.s32.totalorder %s30_s13, %s3414_s23  ;;  %p3420_p5 = scmp.lt.s32.totalorder %s3414_s23, %s3414_s23 }
   0xd   :  { %p3421_p6 = por %p3420_p5, %p3419_p4 }
   0xf   :  { %p3422_p7 = pnand %p3421_p6, %p3415_p3 }
  0x11   :  { %3425 = shalt.err (!%p3422_p7)
}
  0x12   :  { %32 = dma.hbm_to_vmem [thread:$0]  %s6398_s1, 96, %s30_s13, [#allocation6]  }
  0x13   :  { %s3426_s28 = scalar_lea.hbm %s6397_s0, 36864 }
  0x14   :  { %p3427_p8 = scmp.ne.s32.totalorder %s6397_s0, %s3426_s28  ;;  %p3430_p9 = scmp.lt.u32.totalorder %s3426_s28, %s6397_s0 }
  0x16   :  { %p3432_p10 = pnand %p3430_p9, %p3427_p8 }
  0x18   :  { %3435 = shalt.err (!%p3432_p10)
}
  0x19   :  { %s3436_s6 = scalar_lea.vmem %s3524_s15, 36864  ;;  %p3441_p12 = scmp.lt.s32.totalorder %s3524_s15, %s3524_s15 }
  0x1a   :  { %p3437_p11 = scmp.ne.s32.totalorder %s3524_s15, %s3436_s6  ;;  %p3442_p13 = scmp.lt.s32.totalorder %s3436_s6, %s3436_s6 }
  0x1c   :  { %p3443_p0 = por %p3442_p13, %p3441_p12 }
  0x1e   :  { %p3444_p1 = pnand %p3443_p0, %p3437_p11 }
  0x20   :  { %3447 = shalt.err (!%p3444_p1)
}
  0x21   :  { %s3500_s1 = smov 768   ;;  %s3501_s7 = smov 48  }
  0x22   :  { %22 = dma.hbm_to_vmem [thread:$0]  %s6397_s0, 36864, %s3524_s15, [#allocation3], %s3500_s1, %s3500_s1, %s3501_s7  }
  0x23   :  { %s3502_s10 = smov [#allocation7]   ;;  %s3448_s14 = scalar_lea.hbm %s6399_s2, 96 }
  0x24   :  { %s39_s11 = sshll.u32 %s3502_s10, 4  ;;  %p3449_p2 = scmp.ne.s32.totalorder %s6399_s2, %s3448_s14  ;;  %s40_s11 = int_to_ptr.vmem [resolvable:$true] %s39_s11 }
  0x25   :  { %p3452_p3 = scmp.lt.u32.totalorder %s3448_s14, %s6399_s2 }
  0x27   :  { %p3454_p4 = pnand %p3452_p3, %p3449_p2 }
  0x29   :  { %3457 = shalt.err (!%p3454_p4)
}
  0x2a   :  { %s3458_s20 = scalar_lea.vmem %s40_s11, 96  ;;  %p3463_p6 = scmp.lt.s32.totalorder %s40_s11, %s40_s11 }
  0x2b   :  { %p3459_p5 = scmp.ne.s32.totalorder %s40_s11, %s3458_s20  ;;  %p3464_p7 = scmp.lt.s32.totalorder %s3458_s20, %s3458_s20 }
  0x2d   :  { %p3465_p8 = por %p3464_p7, %p3463_p6 }
  0x2f   :  { %p3466_p9 = pnand %p3465_p8, %p3459_p5 }
  0x31   :  { %3469 = shalt.err (!%p3466_p9)
}
  0x32   :  { %42 = dma.hbm_to_vmem [thread:$0]  %s6399_s2, 96, %s40_s11, [#allocation6]  }
  0x33   :  { %3492 = dma.done.wait [#allocation3], 36864  }
  0x34   :  { %3493 = vsyncadd [#allocation3], 4294930432 }
  0x35   :  { %3494 = dma.done.wait [#allocation6], 192  }
  0x36   :  { %3495 = vsyncadd [#allocation6], 4294967104  ;;  %v64_v0 = vld [vmem:[#allocation2 + $0x60] sm:$0xff]  ;;  %v65_v1 = vld [vmem:[#allocation2 + $0x68] sm:$0xff]  ;;  %s3503_s2 = smov [#allocation8]  }
  0x37   :  { %v66_v2 = vld [vmem:[#allocation2 + $0x70] sm:$0xff]  ;;  %v67_v3 = vld [vmem:[#allocation2 + $0x78] sm:$0xff]  ;;  %v354_v4 = vadd.f32 %v65_v1, %v64_v0  ;;  %v52_v5 = vld [vmem:[#allocation2] sm:$0xff]  ;;  %s3001_s21 = sshll.u32 %s3503_s2, 4  ;;  %s3002_s21 = int_to_ptr.vmem [resolvable:$true] %s3001_s21 }
  0x38   :  { %v53_v6 = vld [vmem:[#allocation2 + $0x8] sm:$0xff]  ;;  %v54_v7 = vld [vmem:[#allocation2 + $0x10] sm:$0xff]  ;;  %v68_v8 = vld [vmem:[#allocation2 + $0x80] sm:$0xff]  ;;  %s3470_s22 = scalar_lea.vmem %s3002_s21, 36864  ;;  %p3475_p11 = scmp.lt.s32.totalorder %s3002_s21, %s3002_s21 }
  0x39   :  { %v355_v9 = vadd.f32 %v354_v4, %v66_v2  ;;  %v55_v10 = vld [vmem:[#allocation2 + $0x18] sm:$0xff]  ;;  %v340_v11 = vadd.f32 %v53_v6, %v52_v5  ;;  %v70_v12 = vld [vmem:[#allocation2 + $0x90] sm:$0xff]  ;;  %v72_v14 = vld [vmem:[#allocation2 + $0xa0] sm:$0xff]  ;;  %p3471_p10 = scmp.ne.s32.totalorder %s3002_s21, %s3470_s22  ;;  %p3476_p12 = scmp.lt.s32.totalorder %s3470_s22, %s3470_s22 }
  0x3a   :  { %v71_v13 = vld [vmem:[#allocation2 + $0x98] sm:$0xff]  ;;  %v69_v15 = vld [vmem:[#allocation2 + $0x88] sm:$0xff]  ;;  %v56_v17 = vld [vmem:[#allocation2 + $0x20] sm:$0xff] }
  0x3b   :  { %v356_v16 = vadd.f32 %v355_v9, %v67_v3  ;;  %v341_v18 = vadd.f32 %v340_v11, %v54_v7  ;;  %v73_v19 = vld [vmem:[#allocation2 + $0xa8] sm:$0xff]  ;;  %v361_v20 = vadd.f32 %v71_v13, %v70_v12  ;;  %v58_v21 = vld [vmem:[#allocation2 + $0x30] sm:$0xff]  ;;  %v59_v22 = vld [vmem:[#allocation2 + $0x38] sm:$0xff]  ;;  %p3477_p13 = por %p3476_p12, %p3475_p11 }
  0x3c   :  { %v60_v23 = vld [vmem:[#allocation2 + $0x40] sm:$0xff]  ;;  %v57_v25 = vld [vmem:[#allocation2 + $0x28] sm:$0xff]  ;;  %v74_v27 = vld [vmem:[#allocation2 + $0xb0] sm:$0xff]  ;;  %v347_v29 = vadd.f32 %v59_v22, %v58_v21 }
  0x3d   :  { %v357_v24 = vadd.f32 %v356_v16, %v68_v8  ;;  %v342_v26 = vadd.f32 %v341_v18, %v55_v10  ;;  %v362_v28 = vadd.f32 %v361_v20, %v72_v14  ;;  %v61_v30 = vld [vmem:[#allocation2 + $0x48] sm:$0xff]  ;;  %v82_v31 = vld [vmem:[#allocation2 + $0xf0] sm:$0xff]  ;;  %v83_v32 = vld [vmem:[#allocation2 + $0xf8] sm:$0xff]  ;;  %p3478_p0 = pnand %p3477_p13, %p3471_p10 }
  0x3e   :  { %v75_v35 = vld [vmem:[#allocation2 + $0xb8] sm:$0xff]  ;;  %v62_v37 = vld [vmem:[#allocation2 + $0x50] sm:$0xff]  ;;  %v348_v38 = vadd.f32 %v347_v29, %v60_v23  ;;  %v84_v39 = vld [vmem:[#allocation2 + $0x100] sm:$0xff]  ;;  %v375_v41 = vadd.f32 %v83_v32, %v82_v31 }
  0x3f   :  { %v358_v33 = vadd.f32 %v357_v24, %v69_v15  ;;  %v343_v34 = vadd.f32 %v342_v26, %v56_v17  ;;  %v363_v36 = vadd.f32 %v362_v28, %v73_v19  ;;  %v63_v40 = vld [vmem:[#allocation2 + $0x58] sm:$0xff]  ;;  %v76_v42 = vld [vmem:[#allocation2 + $0xc0] sm:$0xff]  ;;  %v77_v43 = vld [vmem:[#allocation2 + $0xc8] sm:$0xff] }
  0x40   :  { %v78_v44 = vld [vmem:[#allocation2 + $0xd0] sm:$0xff]  ;;  %v349_v47 = vadd.f32 %v348_v38, %v61_v30  ;;  %v85_v48 = vld [vmem:[#allocation2 + $0x108] sm:$0xff]  ;;  %v79_v50 = vld [vmem:[#allocation2 + $0xd8] sm:$0xff]  ;;  %v368_v51 = vadd.f32 %v77_v43, %v76_v42  ;;  %v376_v52 = vadd.f32 %v375_v41, %v84_v39 }
  0x41   :  { %359 = vadd.xlane.f32.xlu1 %v358_v33  ;;  %v344_v45 = vadd.f32 %v343_v34, %v57_v25  ;;  %v364_v46 = vadd.f32 %v363_v36, %v74_v27  ;;  %v86_v49 = vld [vmem:[#allocation2 + $0x110] sm:$0xff]  ;;  %v95_v54 = vld [vmem:[#allocation2 + $0x158] sm:$0xff]  ;;  %v96_v55 = vld [vmem:[#allocation2 + $0x160] sm:$0xff] }
  0x42   :  { %v94_v53 = vld [vmem:[#allocation2 + $0x150] sm:$0xff]  ;;  %v350_v57 = vadd.f32 %v349_v47, %v62_v37  ;;  %v87_v58 = vld [vmem:[#allocation2 + $0x118] sm:$0xff]  ;;  %v80_v59 = vld [vmem:[#allocation2 + $0xe0] sm:$0xff]  ;;  %v369_v60 = vadd.f32 %v368_v51, %v78_v44  ;;  %v377_v63 = vadd.f32 %v376_v52, %v85_v48 }
  0x43   :  { %345 = vadd.xlane.f32.xlu0 %v344_v45  ;;  %v365_v56 = vadd.f32 %v364_v46, %v75_v35  ;;  %v97_v61 = vld [vmem:[#allocation2 + $0x168] sm:$0xff]  ;;  %v389_v62 = vadd.f32 %v95_v54, %v94_v53  ;;  %v88_v0 = vld [vmem:[#allocation2 + $0x120] sm:$0xff]  ;;  %v90_v2 = vld [vmem:[#allocation2 + $0x130] sm:$0xff] }
  0x44   :  { %v89_v1 = vld [vmem:[#allocation2 + $0x128] sm:$0xff]  ;;  %v351_v3 = vadd.f32 %v350_v57, %v63_v40  ;;  %v370_v5 = vadd.f32 %v369_v60, %v79_v50  ;;  %v98_v6 = vld [vmem:[#allocation2 + $0x170] sm:$0xff]  ;;  %v91_v8 = vld [vmem:[#allocation2 + $0x138] sm:$0xff]  ;;  %v378_v10 = vadd.f32 %v377_v63, %v86_v49 }
  0x45   :  { %366 = vadd.xlane.f32.xlu1 %v365_v56  ;;  %v81_v4 = vld [vmem:[#allocation2 + $0xe8] sm:$0xff]  ;;  %v390_v7 = vadd.f32 %v389_v62, %v96_v55  ;;  %v382_v9 = vadd.f32 %v89_v1, %v88_v0  ;;  %v106_v11 = vld [vmem:[#allocation2 + $0x1b0] sm:$0xff]  ;;  %v107_v12 = vld [vmem:[#allocation2 + $0x1b8] sm:$0xff] }
  0x46   :  { %v108_v13 = vld [vmem:[#allocation2 + $0x1c0] sm:$0xff]  ;;  %v371_v14 = vadd.f32 %v370_v5, %v80_v59  ;;  %v99_v15 = vld [vmem:[#allocation2 + $0x178] sm:$0xff]  ;;  %v403_v19 = vadd.f32 %v107_v12, %v106_v11  ;;  %v379_v20 = vadd.f32 %v378_v10, %v87_v58  ;;  %v109_v21 = vld [vmem:[#allocation2 + $0x1c8] sm:$0xff] }
  0x47   :  { %352 = vadd.xlane.f32.xlu0 %v351_v3  ;;  %v391_v16 = vadd.f32 %v390_v7, %v97_v61  ;;  %v92_v17 = vld [vmem:[#allocation2 + $0x140] sm:$0xff]  ;;  %v383_v18 = vadd.f32 %v382_v9, %v90_v2  ;;  %v101_v23 = vld [vmem:[#allocation2 + $0x188] sm:$0xff]  ;;  %v110_v28 = vld [vmem:[#allocation2 + $0x1d0] sm:$0xff] }
  0x48   :  { %v100_v22 = vld [vmem:[#allocation2 + $0x180] sm:$0xff]  ;;  %v372_v24 = vadd.f32 %v371_v14, %v81_v4  ;;  %v93_v26 = vld [vmem:[#allocation2 + $0x148] sm:$0xff]  ;;  %v404_v29 = vadd.f32 %v403_v19, %v108_v13  ;;  %v102_v30 = vld [vmem:[#allocation2 + $0x190] sm:$0xff] }
  0x49   :  { %v392_v25 = vadd.f32 %v391_v16, %v98_v6  ;;  %v384_v27 = vadd.f32 %v383_v18, %v91_v8  ;;  %380 = vadd.xlane.f32.xlu1 %v379_v20  ;;  %v111_v31 = vld [vmem:[#allocation2 + $0x1d8] sm:$0xff]  ;;  %v396_v32 = vadd.f32 %v101_v23, %v100_v22  ;;  %v118_v33 = vld [vmem:[#allocation2 + $0x210] sm:$0xff]  ;;  %v120_v35 = vld [vmem:[#allocation2 + $0x220] sm:$0xff] }
  0x4a   :  { %v119_v34 = vld [vmem:[#allocation2 + $0x218] sm:$0xff]  ;;  %v405_v38 = vadd.f32 %v404_v29, %v109_v21  ;;  %v104_v40 = vld [vmem:[#allocation2 + $0x1a0] sm:$0xff]  ;;  %v121_v41 = vld [vmem:[#allocation2 + $0x228] sm:$0xff] }
  0x4b   :  { %373 = vadd.xlane.f32.xlu0 %v372_v24  ;;  %v393_v36 = vadd.f32 %v392_v25, %v99_v15  ;;  %v385_v37 = vadd.f32 %v384_v27, %v92_v17  ;;  %v103_v39 = vld [vmem:[#allocation2 + $0x198] sm:$0xff]  ;;  %v417_v42 = vadd.f32 %v119_v34, %v118_v33  ;;  %v397_v43 = vadd.f32 %v396_v32, %v102_v30  ;;  %v112_v44 = vld [vmem:[#allocation2 + $0x1e0] sm:$0xff]  ;;  %v113_v45 = vld [vmem:[#allocation2 + $0x1e8] sm:$0xff] }
  0x4c   :  { %v114_v46 = vld [vmem:[#allocation2 + $0x1f0] sm:$0xff]  ;;  %v406_v48 = vadd.f32 %v405_v38, %v110_v28  ;;  %v105_v49 = vld [vmem:[#allocation2 + $0x1a8] sm:$0xff]  ;;  %v115_v52 = vld [vmem:[#allocation2 + $0x1f8] sm:$0xff]  ;;  %v410_v53 = vadd.f32 %v113_v45, %v112_v44 }
  0x4d   :  { %v386_v47 = vadd.f32 %v385_v37, %v93_v26  ;;  %v122_v50 = vld [vmem:[#allocation2 + $0x230] sm:$0xff]  ;;  %v418_v51 = vadd.f32 %v417_v42, %v120_v35  ;;  %394 = vadd.xlane.f32.xlu1 %v393_v36  ;;  %v398_v54 = vadd.f32 %v397_v43, %v103_v39  ;;  %v131_v56 = vld [vmem:[#allocation2 + $0x278] sm:$0xff]  ;;  %v132_v57 = vld [vmem:[#allocation2 + $0x280] sm:$0xff] }
  0x4e   :  { %v130_v55 = vld [vmem:[#allocation2 + $0x270] sm:$0xff]  ;;  %v407_v58 = vadd.f32 %v406_v48, %v111_v31  ;;  %v123_v59 = vld [vmem:[#allocation2 + $0x238] sm:$0xff]  ;;  %v116_v61 = vld [vmem:[#allocation2 + $0x200] sm:$0xff]  ;;  %v411_v62 = vadd.f32 %v410_v53, %v114_v46 }
  0x4f   :  { %387 = vadd.xlane.f32.xlu0 %v386_v47  ;;  %v419_v60 = vadd.f32 %v418_v51, %v121_v41  ;;  %v133_v63 = vld [vmem:[#allocation2 + $0x288] sm:$0xff]  ;;  %v431_v0 = vadd.f32 %v131_v56, %v130_v55  ;;  %v399_v1 = vadd.f32 %v398_v54, %v104_v40  ;;  %v124_v2 = vld [vmem:[#allocation2 + $0x240] sm:$0xff]  ;;  %v126_v4 = vld [vmem:[#allocation2 + $0x250] sm:$0xff] }
  0x50   :  { %v125_v3 = vld [vmem:[#allocation2 + $0x248] sm:$0xff]  ;;  %v412_v7 = vadd.f32 %v411_v62, %v115_v52  ;;  %v134_v8 = vld [vmem:[#allocation2 + $0x290] sm:$0xff]  ;;  %v127_v12 = vld [vmem:[#allocation2 + $0x258] sm:$0xff] }
  0x51   :  { %v420_v5 = vadd.f32 %v419_v60, %v122_v50  ;;  %v117_v6 = vld [vmem:[#allocation2 + $0x208] sm:$0xff]  ;;  %v432_v9 = vadd.f32 %v431_v0, %v132_v57  ;;  %v424_v10 = vadd.f32 %v125_v3, %v124_v2  ;;  %408 = vadd.xlane.f32.xlu1 %v407_v58  ;;  %v400_v11 = vadd.f32 %v399_v1, %v105_v49  ;;  %v142_v13 = vld [vmem:[#allocation2 + $0x2d0] sm:$0xff]  ;;  %v143_v14 = vld [vmem:[#allocation2 + $0x2d8] sm:$0xff] }
  0x52   :  { %v413_v16 = vadd.f32 %v412_v7, %v116_v61  ;;  %v135_v17 = vld [vmem:[#allocation2 + $0x298] sm:$0xff]  ;;  %v128_v19 = vld [vmem:[#allocation2 + $0x260] sm:$0xff]  ;;  %v129_v22 = vld [vmem:[#allocation2 + $0x268] sm:$0xff]  ;;  %v445_v23 = vadd.f32 %v143_v14, %v142_v13 }
  0x53   :  { %v421_v15 = vadd.f32 %v420_v5, %v123_v59  ;;  %v433_v18 = vadd.f32 %v432_v9, %v133_v63  ;;  %v425_v20 = vadd.f32 %v424_v10, %v126_v4  ;;  %v144_v21 = vld [vmem:[#allocation2 + $0x2e0] sm:$0xff]  ;;  %401 = vadd.xlane.f32.xlu0 %v400_v11  ;;  %v137_v25 = vld [vmem:[#allocation2 + $0x2a8] sm:$0xff]  ;;  %v138_v26 = vld [vmem:[#allocation2 + $0x2b0] sm:$0xff] }
  0x54   :  { %v136_v24 = vld [vmem:[#allocation2 + $0x2a0] sm:$0xff]  ;;  %v414_v27 = vadd.f32 %v413_v16, %v117_v6  ;;  %v145_v30 = vld [vmem:[#allocation2 + $0x2e8] sm:$0xff]  ;;  %v146_v31 = vld [vmem:[#allocation2 + $0x2f0] sm:$0xff]  ;;  %v446_v34 = vadd.f32 %v445_v23, %v144_v21 }
  0x55   :  { %v434_v28 = vadd.f32 %v433_v18, %v134_v8  ;;  %v426_v29 = vadd.f32 %v425_v20, %v127_v12  ;;  %v139_v32 = vld [vmem:[#allocation2 + $0x2b8] sm:$0xff]  ;;  %v438_v33 = vadd.f32 %v137_v25, %v136_v24  ;;  %422 = vadd.xlane.f32.xlu1 %v421_v15  ;;  %v154_v35 = vld [vmem:[#allocation2 + $0x330] sm:$0xff]  ;;  %v156_v37 = vld [vmem:[#allocation2 + $0x340] sm:$0xff] }
  0x56   :  { %v155_v36 = vld [vmem:[#allocation2 + $0x338] sm:$0xff]  ;;  %v140_v41 = vld [vmem:[#allocation2 + $0x2c0] sm:$0xff]  ;;  %v157_v43 = vld [vmem:[#allocation2 + $0x348] sm:$0xff]  ;;  %v447_v45 = vadd.f32 %v446_v34, %v145_v30 }
  0x57   :  { %v435_v38 = vadd.f32 %v434_v28, %v135_v17  ;;  %v427_v39 = vadd.f32 %v426_v29, %v128_v19  ;;  %v147_v40 = vld [vmem:[#allocation2 + $0x2f8] sm:$0xff]  ;;  %v439_v42 = vadd.f32 %v438_v33, %v138_v26  ;;  %v459_v44 = vadd.f32 %v155_v36, %v154_v35  ;;  %415 = vadd.xlane.f32.xlu0 %v414_v27  ;;  %v148_v46 = vld [vmem:[#allocation2 + $0x300] sm:$0xff]  ;;  %v149_v47 = vld [vmem:[#allocation2 + $0x308] sm:$0xff] }
  0x58   :  { %v150_v48 = vld [vmem:[#allocation2 + $0x310] sm:$0xff]  ;;  %v141_v50 = vld [vmem:[#allocation2 + $0x2c8] sm:$0xff]  ;;  %v151_v54 = vld [vmem:[#allocation2 + $0x318] sm:$0xff]  ;;  %v452_v55 = vadd.f32 %v149_v47, %v148_v46  ;;  %v448_v56 = vadd.f32 %v447_v45, %v146_v31 }
  0x59   :  { %v428_v49 = vadd.f32 %v427_v39, %v129_v22  ;;  %v440_v51 = vadd.f32 %v439_v42, %v139_v32  ;;  %v158_v52 = vld [vmem:[#allocation2 + $0x350] sm:$0xff]  ;;  %v460_v53 = vadd.f32 %v459_v44, %v156_v37  ;;  %436 = vadd.xlane.f32.xlu1 %v435_v38  ;;  %v167_v58 = vld [vmem:[#allocation2 + $0x398] sm:$0xff]  ;;  %v168_v59 = vld [vmem:[#allocation2 + $0x3a0] sm:$0xff] }
  0x5a   :  { %v166_v57 = vld [vmem:[#allocation2 + $0x390] sm:$0xff]  ;;  %v159_v61 = vld [vmem:[#allocation2 + $0x358] sm:$0xff]  ;;  %v152_v63 = vld [vmem:[#allocation2 + $0x320] sm:$0xff]  ;;  %v453_v0 = vadd.f32 %v452_v55, %v150_v48  ;;  %v449_v2 = vadd.f32 %v448_v56, %v147_v40 }
  0x5b   :  { %v441_v60 = vadd.f32 %v440_v51, %v140_v41  ;;  %v461_v62 = vadd.f32 %v460_v53, %v157_v43  ;;  %v473_v1 = vadd.f32 %v167_v58, %v166_v57  ;;  %429 = vadd.xlane.f32.xlu0 %v428_v49  ;;  %v169_v3 = vld [vmem:[#allocation2 + $0x3a8] sm:$0xff]  ;;  %v160_v4 = vld [vmem:[#allocation2 + $0x360] sm:$0xff]  ;;  %v170_v10 = vld [vmem:[#allocation2 + $0x3b0] sm:$0xff] }
  0x5c   :  { %v161_v5 = vld [vmem:[#allocation2 + $0x368] sm:$0xff]  ;;  %v454_v9 = vadd.f32 %v453_v0, %v151_v54  ;;  %v162_v12 = vld [vmem:[#allocation2 + $0x370] sm:$0xff]  ;;  %v171_v13 = vld [vmem:[#allocation2 + $0x3b8] sm:$0xff] }
  0x5d   :  { %v442_v6 = vadd.f32 %v441_v60, %v141_v50  ;;  %v462_v7 = vadd.f32 %v461_v62, %v158_v52  ;;  %v153_v8 = vld [vmem:[#allocation2 + $0x328] sm:$0xff]  ;;  %v474_v11 = vadd.f32 %v473_v1, %v168_v59  ;;  %450 = vadd.xlane.f32.xlu1 %v449_v2  ;;  %v466_v14 = vadd.f32 %v161_v5, %v160_v4  ;;  %v178_v15 = vld [vmem:[#allocation2 + $0x3f0] sm:$0xff]  ;;  %v179_v16 = vld [vmem:[#allocation2 + $0x3f8] sm:$0xff] }
  0x5e   :  { %v180_v17 = vld [vmem:[#allocation2 + $0x400] sm:$0xff]  ;;  %v455_v19 = vadd.f32 %v454_v9, %v152_v63  ;;  %v163_v21 = vld [vmem:[#allocation2 + $0x378] sm:$0xff]  ;;  %v181_v23 = vld [vmem:[#allocation2 + $0x408] sm:$0xff]  ;;  %v487_v24 = vadd.f32 %v179_v16, %v178_v15 }
  0x5f   :  { %v463_v18 = vadd.f32 %v462_v7, %v159_v61  ;;  %v475_v20 = vadd.f32 %v474_v11, %v169_v3  ;;  %v164_v22 = vld [vmem:[#allocation2 + $0x380] sm:$0xff]  ;;  %443 = vadd.xlane.f32.xlu0 %v442_v6  ;;  %v467_v25 = vadd.f32 %v466_v14, %v162_v12  ;;  %v173_v27 = vld [vmem:[#allocation2 + $0x3c8] sm:$0xff]  ;;  %v174_v28 = vld [vmem:[#allocation2 + $0x3d0] sm:$0xff] }
  0x60   :  { %v172_v26 = vld [vmem:[#allocation2 + $0x3c0] sm:$0xff]  ;;  %v456_v29 = vadd.f32 %v455_v19, %v153_v8  ;;  %v165_v31 = vld [vmem:[#allocation2 + $0x388] sm:$0xff]  ;;  %v182_v32 = vld [vmem:[#allocation2 + $0x410] sm:$0xff]  ;;  %v488_v33 = vadd.f32 %v487_v24, %v180_v17 }
  0x61   :  { %v476_v30 = vadd.f32 %v475_v20, %v170_v10  ;;  %v175_v34 = vld [vmem:[#allocation2 + $0x3d8] sm:$0xff]  ;;  %v480_v35 = vadd.f32 %v173_v27, %v172_v26  ;;  %464 = vadd.xlane.f32.xlu1 %v463_v18  ;;  %v468_v36 = vadd.f32 %v467_v25, %v163_v21  ;;  %v190_v37 = vld [vmem:[#allocation2 + $0x450] sm:$0xff]  ;;  %v192_v39 = vld [vmem:[#allocation2 + $0x460] sm:$0xff] }
  0x62   :  { %v191_v38 = vld [vmem:[#allocation2 + $0x458] sm:$0xff]  ;;  %v489_v42 = vadd.f32 %v488_v33, %v181_v23  ;;  %v176_v43 = vld [vmem:[#allocation2 + $0x3e0] sm:$0xff]  ;;  %v193_v45 = vld [vmem:[#allocation2 + $0x468] sm:$0xff] }
  0x63   :  { %v477_v40 = vadd.f32 %v476_v30, %v171_v13  ;;  %v183_v41 = vld [vmem:[#allocation2 + $0x418] sm:$0xff]  ;;  %v481_v44 = vadd.f32 %v480_v35, %v174_v28  ;;  %v501_v46 = vadd.f32 %v191_v38, %v190_v37  ;;  %457 = vadd.xlane.f32.xlu0 %v456_v29  ;;  %v469_v47 = vadd.f32 %v468_v36, %v164_v22  ;;  %v184_v48 = vld [vmem:[#allocation2 + $0x420] sm:$0xff]  ;;  %v185_v49 = vld [vmem:[#allocation2 + $0x428] sm:$0xff] }
  0x64   :  { %v186_v50 = vld [vmem:[#allocation2 + $0x430] sm:$0xff]  ;;  %v490_v51 = vadd.f32 %v489_v42, %v182_v32  ;;  %v177_v52 = vld [vmem:[#allocation2 + $0x3e8] sm:$0xff]  ;;  %v494_v56 = vadd.f32 %v185_v49, %v184_v48  ;;  %v187_v58 = vld [vmem:[#allocation2 + $0x438] sm:$0xff] }
  0x65   :  { %v482_v53 = vadd.f32 %v481_v44, %v175_v34  ;;  %v194_v54 = vld [vmem:[#allocation2 + $0x470] sm:$0xff]  ;;  %v502_v55 = vadd.f32 %v501_v46, %v192_v39  ;;  %478 = vadd.xlane.f32.xlu1 %v477_v40  ;;  %v470_v57 = vadd.f32 %v469_v47, %v165_v31  ;;  %v203_v60 = vld [vmem:[#allocation2 + $0x4b8] sm:$0xff]  ;;  %v188_v1 = vld [vmem:[#allocation2 + $0x440] sm:$0xff] }
  0x66   :  { %v202_v59 = vld [vmem:[#allocation2 + $0x4b0] sm:$0xff]  ;;  %v491_v61 = vadd.f32 %v490_v51, %v183_v41  ;;  %v195_v63 = vld [vmem:[#allocation2 + $0x478] sm:$0xff]  ;;  %v495_v2 = vadd.f32 %v494_v56, %v186_v50  ;;  %v204_v3 = vld [vmem:[#allocation2 + $0x4c0] sm:$0xff] }
  0x67   :  { %v483_v62 = vadd.f32 %v482_v53, %v176_v43  ;;  %v503_v0 = vadd.f32 %v502_v55, %v193_v45  ;;  %471 = vadd.xlane.f32.xlu0 %v470_v57  ;;  %v189_v4 = vld [vmem:[#allocation2 + $0x448] sm:$0xff]  ;;  %v515_v5 = vadd.f32 %v203_v60, %v202_v59  ;;  %v196_v6 = vld [vmem:[#allocation2 + $0x480] sm:$0xff]  ;;  %v198_v8 = vld [vmem:[#allocation2 + $0x490] sm:$0xff] }
  0x68   :  { %v197_v7 = vld [vmem:[#allocation2 + $0x488] sm:$0xff]  ;;  %v496_v11 = vadd.f32 %v495_v2, %v187_v58  ;;  %v206_v13 = vld [vmem:[#allocation2 + $0x4d0] sm:$0xff]  ;;  %v199_v14 = vld [vmem:[#allocation2 + $0x498] sm:$0xff] }
  0x69   :  { %v484_v9 = vadd.f32 %v483_v62, %v177_v52  ;;  %v504_v10 = vadd.f32 %v503_v0, %v194_v54  ;;  %v205_v12 = vld [vmem:[#allocation2 + $0x4c8] sm:$0xff]  ;;  %v508_v15 = vadd.f32 %v197_v7, %v196_v6  ;;  %492 = vadd.xlane.f32.xlu1 %v491_v61  ;;  %v516_v16 = vadd.f32 %v515_v5, %v204_v3  ;;  %v214_v17 = vld [vmem:[#allocation2 + $0x510] sm:$0xff]  ;;  %v215_v18 = vld [vmem:[#allocation2 + $0x518] sm:$0xff] }
  0x6a   :  { %v216_v19 = vld [vmem:[#allocation2 + $0x520] sm:$0xff]  ;;  %v497_v21 = vadd.f32 %v496_v11, %v188_v1  ;;  %v207_v22 = vld [vmem:[#allocation2 + $0x4d8] sm:$0xff]  ;;  %v217_v25 = vld [vmem:[#allocation2 + $0x528] sm:$0xff]  ;;  %v529_v26 = vadd.f32 %v215_v18, %v214_v17 }
  0x6b   :  { %v505_v20 = vadd.f32 %v504_v10, %v195_v63  ;;  %v200_v23 = vld [vmem:[#allocation2 + $0x4a0] sm:$0xff]  ;;  %v509_v24 = vadd.f32 %v508_v15, %v198_v8  ;;  %485 = vadd.xlane.f32.xlu0 %v484_v9  ;;  %v517_v27 = vadd.f32 %v516_v16, %v205_v12  ;;  %v209_v29 = vld [vmem:[#allocation2 + $0x4e8] sm:$0xff]  ;;  %v210_v30 = vld [vmem:[#allocation2 + $0x4f0] sm:$0xff] }
  0x6c   :  { %v208_v28 = vld [vmem:[#allocation2 + $0x4e0] sm:$0xff]  ;;  %v498_v31 = vadd.f32 %v497_v21, %v189_v4  ;;  %v201_v32 = vld [vmem:[#allocation2 + $0x4a8] sm:$0xff]  ;;  %v218_v34 = vld [vmem:[#allocation2 + $0x530] sm:$0xff]  ;;  %v530_v35 = vadd.f32 %v529_v26, %v216_v19 }
  0x6d   :  { %v510_v33 = vadd.f32 %v509_v24, %v199_v14  ;;  %v211_v36 = vld [vmem:[#allocation2 + $0x4f8] sm:$0xff]  ;;  %v522_v37 = vadd.f32 %v209_v29, %v208_v28  ;;  %506 = vadd.xlane.f32.xlu1 %v505_v20  ;;  %v518_v38 = vadd.f32 %v517_v27, %v206_v13  ;;  %v226_v39 = vld [vmem:[#allocation2 + $0x570] sm:$0xff]  ;;  %v228_v41 = vld [vmem:[#allocation2 + $0x580] sm:$0xff] }
  0x6e   :  { %v227_v40 = vld [vmem:[#allocation2 + $0x578] sm:$0xff]  ;;  %v531_v44 = vadd.f32 %v530_v35, %v217_v25  ;;  %v212_v45 = vld [vmem:[#allocation2 + $0x500] sm:$0xff]  ;;  %v229_v49 = vld [vmem:[#allocation2 + $0x588] sm:$0xff] }
  0x6f   :  { %v511_v42 = vadd.f32 %v510_v33, %v200_v23  ;;  %v219_v43 = vld [vmem:[#allocation2 + $0x538] sm:$0xff]  ;;  %v523_v46 = vadd.f32 %v522_v37, %v210_v30  ;;  %v543_v47 = vadd.f32 %v227_v40, %v226_v39  ;;  %499 = vadd.xlane.f32.xlu0 %v498_v31  ;;  %v519_v48 = vadd.f32 %v518_v38, %v207_v22  ;;  %v220_v50 = vld [vmem:[#allocation2 + $0x540] sm:$0xff]  ;;  %v221_v51 = vld [vmem:[#allocation2 + $0x548] sm:$0xff] }
  0x70   :  { %v532_v53 = vadd.f32 %v531_v44, %v218_v34  ;;  %v213_v54 = vld [vmem:[#allocation2 + $0x508] sm:$0xff]  ;;  %v230_v56 = vld [vmem:[#allocation2 + $0x590] sm:$0xff]  ;;  %v231_v59 = vld [vmem:[#allocation2 + $0x598] sm:$0xff]  ;;  %v536_v60 = vadd.f32 %v221_v51, %v220_v50 }
  0x71   :  { %v512_v52 = vadd.f32 %v511_v42, %v201_v32  ;;  %v524_v55 = vadd.f32 %v523_v46, %v211_v36  ;;  %v544_v57 = vadd.f32 %v543_v47, %v228_v41  ;;  %v222_v58 = vld [vmem:[#allocation2 + $0x550] sm:$0xff]  ;;  %520 = vadd.xlane.f32.xlu1 %v519_v48  ;;  %v239_v62 = vld [vmem:[#allocation2 + $0x5d8] sm:$0xff]  ;;  %v240_v63 = vld [vmem:[#allocation2 + $0x5e0] sm:$0xff] }
  0x72   :  { %v238_v61 = vld [vmem:[#allocation2 + $0x5d0] sm:$0xff]  ;;  %v533_v0 = vadd.f32 %v532_v53, %v219_v43  ;;  %v223_v3 = vld [vmem:[#allocation2 + $0x558] sm:$0xff]  ;;  %v224_v4 = vld [vmem:[#allocation2 + $0x560] sm:$0xff]  ;;  %v537_v7 = vadd.f32 %v536_v60, %v222_v58 }
  0x73   :  { %v525_v1 = vadd.f32 %v524_v55, %v212_v45  ;;  %v545_v2 = vadd.f32 %v544_v57, %v229_v49  ;;  %v241_v5 = vld [vmem:[#allocation2 + $0x5e8] sm:$0xff]  ;;  %v557_v6 = vadd.f32 %v239_v62, %v238_v61  ;;  %513 = vadd.xlane.f32.xlu0 %v512_v52  ;;  %v232_v8 = vld [vmem:[#allocation2 + $0x5a0] sm:$0xff]  ;;  %v234_v10 = vld [vmem:[#allocation2 + $0x5b0] sm:$0xff] }
  0x74   :  { %v233_v9 = vld [vmem:[#allocation2 + $0x5a8] sm:$0xff]  ;;  %v242_v14 = vld [vmem:[#allocation2 + $0x5f0] sm:$0xff]  ;;  %v235_v16 = vld [vmem:[#allocation2 + $0x5b8] sm:$0xff]  ;;  %v538_v18 = vadd.f32 %v537_v7, %v223_v3 }
  0x75   :  { %v526_v11 = vadd.f32 %v525_v1, %v213_v54  ;;  %v546_v12 = vadd.f32 %v545_v2, %v230_v56  ;;  %v225_v13 = vld [vmem:[#allocation2 + $0x568] sm:$0xff]  ;;  %v558_v15 = vadd.f32 %v557_v6, %v240_v63  ;;  %v550_v17 = vadd.f32 %v233_v9, %v232_v8  ;;  %534 = vadd.xlane.f32.xlu1 %v533_v0  ;;  %v250_v19 = vld [vmem:[#allocation2 + $0x630] sm:$0xff]  ;;  %v251_v20 = vld [vmem:[#allocation2 + $0x638] sm:$0xff] }
  0x76   :  { %v252_v21 = vld [vmem:[#allocation2 + $0x640] sm:$0xff]  ;;  %v243_v23 = vld [vmem:[#allocation2 + $0x5f8] sm:$0xff]  ;;  %v253_v27 = vld [vmem:[#allocation2 + $0x648] sm:$0xff]  ;;  %v571_v28 = vadd.f32 %v251_v20, %v250_v19  ;;  %v539_v29 = vadd.f32 %v538_v18, %v224_v4 }
  0x77   :  { %v547_v22 = vadd.f32 %v546_v12, %v231_v59  ;;  %v559_v24 = vadd.f32 %v558_v15, %v241_v5  ;;  %v236_v25 = vld [vmem:[#allocation2 + $0x5c0] sm:$0xff]  ;;  %v551_v26 = vadd.f32 %v550_v17, %v234_v10  ;;  %527 = vadd.xlane.f32.xlu0 %v526_v11  ;;  %v245_v31 = vld [vmem:[#allocation2 + $0x608] sm:$0xff]  ;;  %v246_v32 = vld [vmem:[#allocation2 + $0x610] sm:$0xff] }
  0x78   :  { %v244_v30 = vld [vmem:[#allocation2 + $0x600] sm:$0xff]  ;;  %v237_v34 = vld [vmem:[#allocation2 + $0x5c8] sm:$0xff]  ;;  %v254_v36 = vld [vmem:[#allocation2 + $0x650] sm:$0xff]  ;;  %v572_v37 = vadd.f32 %v571_v28, %v252_v21  ;;  %v540_v39 = vadd.f32 %v539_v29, %v225_v13 }
  0x79   :  { %v560_v33 = vadd.f32 %v559_v24, %v242_v14  ;;  %v552_v35 = vadd.f32 %v551_v26, %v235_v16  ;;  %v564_v38 = vadd.f32 %v245_v31, %v244_v30  ;;  %548 = vadd.xlane.f32.xlu1 %v547_v22  ;;  %v247_v40 = vld [vmem:[#allocation2 + $0x618] sm:$0xff]  ;;  %v262_v41 = vld [vmem:[#allocation2 + $0x690] sm:$0xff]  ;;  %v248_v47 = vld [vmem:[#allocation2 + $0x620] sm:$0xff] }
  0x7a   :  { %v263_v42 = vld [vmem:[#allocation2 + $0x698] sm:$0xff]  ;;  %v573_v46 = vadd.f32 %v572_v37, %v253_v27  ;;  %v264_v49 = vld [vmem:[#allocation2 + $0x6a0] sm:$0xff]  ;;  %v249_v50 = vld [vmem:[#allocation2 + $0x628] sm:$0xff] }
  0x7b   :  { %v561_v43 = vadd.f32 %v560_v33, %v243_v23  ;;  %v553_v44 = vadd.f32 %v552_v35, %v236_v25  ;;  %v255_v45 = vld [vmem:[#allocation2 + $0x658] sm:$0xff]  ;;  %v565_v48 = vadd.f32 %v564_v38, %v246_v32  ;;  %541 = vadd.xlane.f32.xlu0 %v540_v39  ;;  %v585_v51 = vadd.f32 %v263_v42, %v262_v41  ;;  %v256_v52 = vld [vmem:[#allocation2 + $0x660] sm:$0xff]  ;;  %v257_v53 = vld [vmem:[#allocation2 + $0x668] sm:$0xff] }
  0x7c   :  { %v258_v54 = vld [vmem:[#allocation2 + $0x670] sm:$0xff]  ;;  %v574_v56 = vadd.f32 %v573_v46, %v254_v36  ;;  %v265_v58 = vld [vmem:[#allocation2 + $0x6a8] sm:$0xff]  ;;  %v259_v60 = vld [vmem:[#allocation2 + $0x678] sm:$0xff]  ;;  %v578_v61 = vadd.f32 %v257_v53, %v256_v52 }
  0x7d   :  { %v554_v55 = vadd.f32 %v553_v44, %v237_v34  ;;  %v566_v57 = vadd.f32 %v565_v48, %v247_v40  ;;  %v266_v59 = vld [vmem:[#allocation2 + $0x6b0] sm:$0xff]  ;;  %562 = vadd.xlane.f32.xlu1 %v561_v43  ;;  %v586_v62 = vadd.f32 %v585_v51, %v264_v49  ;;  %v275_v0 = vld [vmem:[#allocation2 + $0x6f8] sm:$0xff]  ;;  %v276_v1 = vld [vmem:[#allocation2 + $0x700] sm:$0xff] }
  0x7e   :  { %v274_v63 = vld [vmem:[#allocation2 + $0x6f0] sm:$0xff]  ;;  %v575_v2 = vadd.f32 %v574_v56, %v255_v45  ;;  %v267_v4 = vld [vmem:[#allocation2 + $0x6b8] sm:$0xff]  ;;  %v260_v5 = vld [vmem:[#allocation2 + $0x680] sm:$0xff]  ;;  %v579_v6 = vadd.f32 %v578_v61, %v258_v54 }
  0x7f   :  { %v567_v3 = vadd.f32 %v566_v57, %v248_v47  ;;  %v277_v7 = vld [vmem:[#allocation2 + $0x708] sm:$0xff]  ;;  %v599_v8 = vadd.f32 %v275_v0, %v274_v63  ;;  %555 = vadd.xlane.f32.xlu0 %v554_v55  ;;  %v587_v9 = vadd.f32 %v586_v62, %v265_v58  ;;  %v268_v10 = vld [vmem:[#allocation2 + $0x6c0] sm:$0xff]  ;;  %v270_v12 = vld [vmem:[#allocation2 + $0x6d0] sm:$0xff] }
  0x80   :  { %v269_v11 = vld [vmem:[#allocation2 + $0x6c8] sm:$0xff]  ;;  %v580_v15 = vadd.f32 %v579_v6, %v259_v60  ;;  %v278_v16 = vld [vmem:[#allocation2 + $0x710] sm:$0xff]  ;;  %v271_v18 = vld [vmem:[#allocation2 + $0x6d8] sm:$0xff] }
  0x81   :  { %v568_v13 = vadd.f32 %v567_v3, %v249_v50  ;;  %v261_v14 = vld [vmem:[#allocation2 + $0x688] sm:$0xff]  ;;  %v600_v17 = vadd.f32 %v599_v8, %v276_v1  ;;  %v592_v19 = vadd.f32 %v269_v11, %v268_v10  ;;  %576 = vadd.xlane.f32.xlu1 %v575_v2  ;;  %v588_v20 = vadd.f32 %v587_v9, %v266_v59  ;;  %v286_v21 = vld [vmem:[#allocation2 + $0x750] sm:$0xff]  ;;  %v287_v22 = vld [vmem:[#allocation2 + $0x758] sm:$0xff] }
  0x82   :  { %v288_v23 = vld [vmem:[#allocation2 + $0x760] sm:$0xff]  ;;  %v581_v24 = vadd.f32 %v580_v15, %v260_v5  ;;  %v279_v25 = vld [vmem:[#allocation2 + $0x718] sm:$0xff]  ;;  %v613_v29 = vadd.f32 %v287_v22, %v286_v21  ;;  %v289_v31 = vld [vmem:[#allocation2 + $0x768] sm:$0xff] }
  0x83   :  { %v601_v26 = vadd.f32 %v600_v17, %v277_v7  ;;  %v272_v27 = vld [vmem:[#allocation2 + $0x6e0] sm:$0xff]  ;;  %v593_v28 = vadd.f32 %v592_v19, %v270_v12  ;;  %569 = vadd.xlane.f32.xlu0 %v568_v13  ;;  %v589_v30 = vadd.f32 %v588_v20, %v267_v4  ;;  %v281_v33 = vld [vmem:[#allocation2 + $0x728] sm:$0xff]  ;;  %v290_v38 = vld [vmem:[#allocation2 + $0x770] sm:$0xff] }
  0x84   :  { %v280_v32 = vld [vmem:[#allocation2 + $0x720] sm:$0xff]  ;;  %v582_v34 = vadd.f32 %v581_v24, %v261_v14  ;;  %v273_v36 = vld [vmem:[#allocation2 + $0x6e8] sm:$0xff]  ;;  %v614_v39 = vadd.f32 %v613_v29, %v288_v23  ;;  %v282_v40 = vld [vmem:[#allocation2 + $0x730] sm:$0xff] }
  0x85   :  { %v602_v35 = vadd.f32 %v601_v26, %v278_v16  ;;  %v594_v37 = vadd.f32 %v593_v28, %v271_v18  ;;  %590 = vadd.xlane.f32.xlu1 %v589_v30  ;;  %v291_v41 = vld [vmem:[#allocation2 + $0x778] sm:$0xff]  ;;  %v606_v42 = vadd.f32 %v281_v33, %v280_v32  ;;  %v298_v43 = vld [vmem:[#allocation2 + $0x7b0] sm:$0xff]  ;;  %v300_v45 = vld [vmem:[#allocation2 + $0x7c0] sm:$0xff] }
  0x86   :  { %v299_v44 = vld [vmem:[#allocation2 + $0x7b8] sm:$0xff]  ;;  %v615_v48 = vadd.f32 %v614_v39, %v289_v31  ;;  %v284_v50 = vld [vmem:[#allocation2 + $0x740] sm:$0xff]  ;;  %v301_v51 = vld [vmem:[#allocation2 + $0x7c8] sm:$0xff] }
  0x87   :  { %v603_v46 = vadd.f32 %v602_v35, %v279_v25  ;;  %v595_v47 = vadd.f32 %v594_v37, %v272_v27  ;;  %v283_v49 = vld [vmem:[#allocation2 + $0x738] sm:$0xff]  ;;  %v627_v52 = vadd.f32 %v299_v44, %v298_v43  ;;  %583 = vadd.xlane.f32.xlu0 %v582_v34  ;;  %v607_v53 = vadd.f32 %v606_v42, %v282_v40  ;;  %v292_v54 = vld [vmem:[#allocation2 + $0x780] sm:$0xff]  ;;  %v293_v55 = vld [vmem:[#allocation2 + $0x788] sm:$0xff] }
  0x88   :  { %v294_v56 = vld [vmem:[#allocation2 + $0x790] sm:$0xff]  ;;  %v616_v58 = vadd.f32 %v615_v48, %v290_v38  ;;  %v285_v59 = vld [vmem:[#allocation2 + $0x748] sm:$0xff]  ;;  %v295_v62 = vld [vmem:[#allocation2 + $0x798] sm:$0xff]  ;;  %v620_v63 = vadd.f32 %v293_v55, %v292_v54 }
  0x89   :  { %v596_v57 = vadd.f32 %v595_v47, %v273_v36  ;;  %v302_v60 = vld [vmem:[#allocation2 + $0x7d0] sm:$0xff]  ;;  %v628_v61 = vadd.f32 %v627_v52, %v300_v45  ;;  %604 = vadd.xlane.f32.xlu1 %v603_v46  ;;  %v608_v0 = vadd.f32 %v607_v53, %v283_v49  ;;  %v311_v2 = vld [vmem:[#allocation2 + $0x818] sm:$0xff]  ;;  %v312_v3 = vld [vmem:[#allocation2 + $0x820] sm:$0xff] }
  0x8a   :  { %v310_v1 = vld [vmem:[#allocation2 + $0x810] sm:$0xff]  ;;  %v617_v4 = vadd.f32 %v616_v58, %v291_v41  ;;  %v303_v5 = vld [vmem:[#allocation2 + $0x7d8] sm:$0xff]  ;;  %v296_v7 = vld [vmem:[#allocation2 + $0x7a0] sm:$0xff]  ;;  %v621_v8 = vadd.f32 %v620_v63, %v294_v56 }
  0x8b   :  { %v629_v6 = vadd.f32 %v628_v61, %v301_v51  ;;  %v313_v9 = vld [vmem:[#allocation2 + $0x828] sm:$0xff]  ;;  %v641_v10 = vadd.f32 %v311_v2, %v310_v1  ;;  %597 = vadd.xlane.f32.xlu0 %v596_v57  ;;  %v609_v11 = vadd.f32 %v608_v0, %v284_v50  ;;  %v304_v12 = vld [vmem:[#allocation2 + $0x7e0] sm:$0xff]  ;;  %v306_v14 = vld [vmem:[#allocation2 + $0x7f0] sm:$0xff] }
  0x8c   :  { %v305_v13 = vld [vmem:[#allocation2 + $0x7e8] sm:$0xff]  ;;  %v622_v17 = vadd.f32 %v621_v8, %v295_v62  ;;  %v314_v18 = vld [vmem:[#allocation2 + $0x830] sm:$0xff]  ;;  %v307_v22 = vld [vmem:[#allocation2 + $0x7f8] sm:$0xff] }
  0x8d   :  { %v630_v15 = vadd.f32 %v629_v6, %v302_v60  ;;  %v297_v16 = vld [vmem:[#allocation2 + $0x7a8] sm:$0xff]  ;;  %v642_v19 = vadd.f32 %v641_v10, %v312_v3  ;;  %v634_v20 = vadd.f32 %v305_v13, %v304_v12  ;;  %618 = vadd.xlane.f32.xlu1 %v617_v4  ;;  %v610_v21 = vadd.f32 %v609_v11, %v285_v59  ;;  %v322_v23 = vld [vmem:[#allocation2 + $0x870] sm:$0xff]  ;;  %v323_v24 = vld [vmem:[#allocation2 + $0x878] sm:$0xff] }
  0x8e   :  { %v623_v26 = vadd.f32 %v622_v17, %v296_v7  ;;  %v315_v27 = vld [vmem:[#allocation2 + $0x838] sm:$0xff]  ;;  %v308_v29 = vld [vmem:[#allocation2 + $0x800] sm:$0xff]  ;;  %v655_v32 = vadd.f32 %v323_v24, %v322_v23  ;;  %v317_v34 = vld [vmem:[#allocation2 + $0x848] sm:$0xff] }
  0x8f   :  { %v631_v25 = vadd.f32 %v630_v15, %v303_v5  ;;  %v643_v28 = vadd.f32 %v642_v19, %v313_v9  ;;  %v635_v30 = vadd.f32 %v634_v20, %v306_v14  ;;  %v324_v31 = vld [vmem:[#allocation2 + $0x880] sm:$0xff]  ;;  %611 = vadd.xlane.f32.xlu0 %v610_v21  ;;  %v318_v35 = vld [vmem:[#allocation2 + $0x850] sm:$0xff]  ;;  %v309_v38 = vld [vmem:[#allocation2 + $0x808] sm:$0xff] }
  0x90   :  { %v316_v33 = vld [vmem:[#allocation2 + $0x840] sm:$0xff]  ;;  %v624_v36 = vadd.f32 %v623_v26, %v297_v16  ;;  %v325_v40 = vld [vmem:[#allocation2 + $0x888] sm:$0xff]  ;;  %v319_v41 = vld [vmem:[#allocation2 + $0x858] sm:$0xff]  ;;  %v656_v43 = vadd.f32 %v655_v32, %v324_v31 }
  0x91   :  { %v644_v37 = vadd.f32 %v643_v28, %v314_v18  ;;  %v636_v39 = vadd.f32 %v635_v30, %v307_v22  ;;  %v648_v42 = vadd.f32 %v317_v34, %v316_v33  ;;  %632 = vadd.xlane.f32.xlu1 %v631_v25  ;;  %v334_v44 = vld [vmem:[#allocation2 + $0x8d0] sm:$0xff]  ;;  %v335_v45 = vld [vmem:[#allocation2 + $0x8d8] sm:$0xff]  ;;  %v336_v46 = vld [vmem:[#allocation2 + $0x8e0] sm:$0xff] }
  0x92   :  { %v326_v49 = vld [vmem:[#allocation2 + $0x890] sm:$0xff]  ;;  %v320_v50 = vld [vmem:[#allocation2 + $0x860] sm:$0xff]  ;;  %v337_v52 = vld [vmem:[#allocation2 + $0x8e8] sm:$0xff]  ;;  %v669_v53 = vadd.f32 %v335_v45, %v334_v44  ;;  %v657_v54 = vadd.f32 %v656_v43, %v325_v40 }
  0x93   :  { %v645_v47 = vadd.f32 %v644_v37, %v315_v27  ;;  %v637_v48 = vadd.f32 %v636_v39, %v308_v29  ;;  %v649_v51 = vadd.f32 %v648_v42, %v318_v35  ;;  %625 = vadd.xlane.f32.xlu0 %v624_v36  ;;  %v328_v55 = vld [vmem:[#allocation2 + $0x8a0] sm:$0xff]  ;;  %v329_v56 = vld [vmem:[#allocation2 + $0x8a8] sm:$0xff]  ;;  %v330_v57 = vld [vmem:[#allocation2 + $0x8b0] sm:$0xff] }
  0x94   :  { %v327_v59 = vld [vmem:[#allocation2 + $0x898] sm:$0xff]  ;;  %v670_v61 = vadd.f32 %v669_v53, %v336_v46  ;;  %v662_v62 = vadd.f32 %v329_v56, %v328_v55  ;;  %v658_v63 = vadd.f32 %v657_v54, %v326_v49  ;;  %v321_v0 = vld [vmem:[#allocation2 + $0x868] sm:$0xff]  ;;  %v338_v1 = vld [vmem:[#allocation2 + $0x8f0] sm:$0xff] }
  0x95   :  { %v638_v58 = vadd.f32 %v637_v48, %v309_v38  ;;  %v650_v60 = vadd.f32 %v649_v51, %v319_v41  ;;  %646 = vadd.xlane.f32.xlu1 %v645_v47  ;;  %v331_v2 = vld [vmem:[#allocation2 + $0x8b8] sm:$0xff]  ;;  %v332_v8 = vld [vmem:[#allocation2 + $0x8c0] sm:$0xff]  ;;  %v333_v12 = vld [vmem:[#allocation2 + $0x8c8] sm:$0xff] }
  0x96   :  { %v671_v4 = vadd.f32 %v670_v61, %v337_v52  ;;  %v663_v5 = vadd.f32 %v662_v62, %v330_v57  ;;  %v659_v6 = vadd.f32 %v658_v63, %v327_v59  ;;  %v339_v7 = vld [vmem:[#allocation2 + $0x8f8] sm:$0xff]  ;;  %v3116_v20 = vld [vmem:[#allocation2 + $0x60] sm:$0xff]  ;;  %v3117_v23 = vld [vmem:[#allocation2 + $0x68] sm:$0xff] }
  0x97   :  { %v651_v3 = vadd.f32 %v650_v60, %v320_v50  ;;  %639 = vadd.xlane.f32.xlu0 %v638_v58  ;;  %v3118_v25 = vld [vmem:[#allocation2 + $0x70] sm:$0xff]  ;;  %v3119_v27 = vld [vmem:[#allocation2] sm:$0xff]  ;;  %v3120_v29 = vld [vmem:[#allocation2 + $0x8] sm:$0xff] }
  0x98   :  { %v672_v10 = vadd.f32 %v671_v4, %v338_v1  ;;  %v664_v11 = vadd.f32 %v663_v5, %v331_v2  ;;  %v3121_v31 = vld [vmem:[#allocation2 + $0x10] sm:$0xff]  ;;  %v3122_v33 = vld [vmem:[#allocation2 + $0x78] sm:$0xff]  ;;  %v3124_v38 = vld [vmem:[#allocation2 + $0x20] sm:$0xff] }
  0x99   :  { %v652_v9 = vadd.f32 %v651_v3, %v321_v0  ;;  %660 = vadd.xlane.f32.xlu1 %v659_v6  ;;  %v3123_v36 = vld [vmem:[#allocation2 + $0x18] sm:$0xff]  ;;  %v3125_v40 = vld [vmem:[#allocation2 + $0x28] sm:$0xff]  ;;  %v3126_v46 = vld [vmem:[#allocation2 + $0x80] sm:$0xff] }
  0x9a   :  { %v673_v13 = vadd.f32 %v672_v10, %v339_v7  ;;  %v665_v14 = vadd.f32 %v664_v11, %v332_v8  ;;  %v3127_v50 = vld [vmem:[#allocation2 + $0x88] sm:$0xff]  ;;  %v3128_v62 = vld [vmem:[#allocation2 + $0x30] sm:$0xff]  ;;  %v3129_v2 = vld [vmem:[#allocation2 + $0x38] sm:$0xff] }
  0x9b   :  { %653 = vadd.xlane.f32.xlu0 %v652_v9  ;;  %v3130_v4 = vld [vmem:[#allocation2 + $0x40] sm:$0xff]  ;;  %v3131_v9 = vld [vmem:[#allocation2 + $0x48] sm:$0xff] }
  0x9c   :  { %v666_v15 = vadd.f32 %v665_v14, %v333_v12 }
  0x9d   :  { %674 = vadd.xlane.f32.xlu1 %v673_v13  ;;  %v3132_v13 = vld [vmem:[#allocation2 + $0x50] sm:$0xff] }
  0x9f   :  { %667 = vadd.xlane.f32.xlu0 %v666_v15 }
  0xce   :  { %v360_v16 = vpop.xlane.xlu1 %359 }
  0xcf   :  { %v678_v17 = vmul.f32 0.0013020834, %v360_v16 }
  0xd0   :  { %v346_v18 = vpop.xlane.xlu0 %345 }
  0xd1   :  { %v676_v19 = vmul.f32 0.0013020834, %v346_v18  ;;  %v3570_v21 = vsub.f32 %v3116_v20, %v678_v17  ;;  %v3572_v24 = vsub.f32 %v3117_v23, %v678_v17  ;;  %v3574_v26 = vsub.f32 %v3118_v25, %v678_v17  ;;  %v3133_v20 = vld [vmem:[#allocation2 + $0x58] sm:$0xff] }
  0xd2   :  { %v367_v22 = vpop.xlane.xlu1 %366  ;;  %v3582_v34 = vsub.f32 %v3122_v33, %v678_v17  ;;  %v3596_v47 = vsub.f32 %v3126_v46, %v678_v17  ;;  %v3602_v51 = vsub.f32 %v3127_v50, %v678_v17  ;;  %v3137_v50 = vld [vmem:[#allocation2 + $0xa8] sm:$0xff] }
  0xd3   :  { %v3576_v28 = vsub.f32 %v3119_v27, %v676_v19  ;;  %v3578_v30 = vsub.f32 %v3120_v29, %v676_v19  ;;  %v3580_v32 = vsub.f32 %v3121_v31, %v676_v19  ;;  %v3584_v37 = vsub.f32 %v3123_v36, %v676_v19 }
  0xd4   :  { %v353_v35 = vpop.xlane.xlu0 %352  ;;  %v3586_v39 = vsub.f32 %v3124_v38, %v676_v19  ;;  %v3588_v41 = vsub.f32 %v3125_v40, %v676_v19  ;;  %v1024_v42 = vmul.f32 %v3570_v21, %v3570_v21  ;;  %v3598_v48 = vmul.f32 0.0013020834, %v367_v22  ;;  %v3135_v38 = vld [vmem:[#allocation2 + $0x98] sm:$0xff] }
  0xd5   :  { %v677_v43 = vmul.f32 0.0013020834, %v353_v35  ;;  %v1012_v44 = vmul.f32 %v3576_v28, %v3576_v28  ;;  %v1013_v45 = vmul.f32 %v3578_v30, %v3578_v30  ;;  %v1014_v49 = vmul.f32 %v3580_v32, %v3580_v32  ;;  %v3134_v35 = vld [vmem:[#allocation2 + $0x90] sm:$0xff] }
  0xd6   :  { %v1025_v52 = vmul.f32 %v3572_v24, %v3572_v24  ;;  %v381_v53 = vpop.xlane.xlu1 %380  ;;  %v1015_v54 = vmul.f32 %v3584_v37, %v3584_v37  ;;  %v1016_v55 = vmul.f32 %v3586_v39, %v3586_v39  ;;  %v1026_v57 = vmul.f32 %v3574_v26, %v3574_v26 }
  0xd7   :  { %v1300_v56 = vadd.f32 %v1013_v45, %v1012_v44  ;;  %v1017_v59 = vmul.f32 %v3588_v41, %v3588_v41  ;;  %v1027_v60 = vmul.f32 %v3582_v34, %v3582_v34  ;;  %v3616_v63 = vsub.f32 %v3128_v62, %v677_v43 }
  0xd8   :  { %v374_v58 = vpop.xlane.xlu0 %373  ;;  %v1314_v61 = vadd.f32 %v1025_v52, %v1024_v42  ;;  %v1028_v1 = vmul.f32 %v3596_v47, %v3596_v47  ;;  %v3620_v3 = vsub.f32 %v3129_v2, %v677_v43  ;;  %v3622_v5 = vsub.f32 %v3130_v4, %v677_v43  ;;  %v3136_v42 = vld [vmem:[#allocation2 + $0xa0] sm:$0xff] }
  0xd9   :  { %v1301_v0 = vadd.f32 %v1300_v56, %v1014_v49  ;;  %v3624_v6 = vmul.f32 0.0013020834, %v381_v53  ;;  %v1029_v7 = vmul.f32 %v3602_v51, %v3602_v51  ;;  %v3628_v10 = vsub.f32 %v3131_v9, %v677_v43 }
  0xda   :  { %v1315_v8 = vadd.f32 %v1314_v61, %v1026_v57  ;;  %v395_v11 = vpop.xlane.xlu1 %394  ;;  %v3630_v14 = vsub.f32 %v3132_v13, %v677_v43  ;;  %v1018_v15 = vmul.f32 %v3616_v63, %v3616_v63  ;;  %v1019_v16 = vmul.f32 %v3620_v3, %v3620_v3 }
  0xdb   :  { %v1302_v12 = vadd.f32 %v1301_v0, %v1015_v54  ;;  %v680_v17 = vmul.f32 0.0013020834, %v374_v58  ;;  %v3636_v22 = vsub.f32 %v3133_v20, %v677_v43  ;;  %v1020_v23 = vmul.f32 %v3622_v5, %v3622_v5  ;;  %v3143_v20 = vld [vmem:[#allocation2 + $0xd8] sm:$0xff] }
  0xdc   :  { %v388_v18 = vpop.xlane.xlu0 %387  ;;  %v1316_v19 = vadd.f32 %v1315_v8, %v1027_v60  ;;  %v3640_v25 = vmul.f32 0.0013020834, %v395_v11  ;;  %v1021_v29 = vmul.f32 %v3628_v10, %v3628_v10  ;;  %v1307_v31 = vadd.f32 %v1019_v16, %v1018_v15  ;;  %v3140_v8 = vld [vmem:[#allocation2 + $0xc0] sm:$0xff]  ;;  %v3141_v15 = vld [vmem:[#allocation2 + $0xc8] sm:$0xff] }
  0xdd   :  { %v1303_v27 = vadd.f32 %v1302_v12, %v1016_v55  ;;  %v3645_v36 = vsub.f32 %v3134_v35, %v3598_v48  ;;  %v3648_v40 = vsub.f32 %v3135_v38, %v3598_v48  ;;  %v3651_v43 = vsub.f32 %v3136_v42, %v3598_v48  ;;  %v3138_v55 = vld [vmem:[#allocation2 + $0xb0] sm:$0xff] }
  0xde   :  { %v1317_v33 = vadd.f32 %v1316_v19, %v1028_v1  ;;  %v409_v44 = vpop.xlane.xlu1 %408  ;;  %v1022_v46 = vmul.f32 %v3630_v14, %v3630_v14  ;;  %v1308_v49 = vadd.f32 %v1307_v31, %v1020_v23  ;;  %v3656_v52 = vsub.f32 %v3137_v50, %v3598_v48  ;;  %v3139_v1 = vld [vmem:[#allocation2 + $0xb8] sm:$0xff]  ;;  %v3144_v23 = vld [vmem:[#allocation2 + $0xe0] sm:$0xff] }
  0xdf   :  { %v1304_v45 = vadd.f32 %v1303_v27, %v1017_v59  ;;  %v3658_v53 = vmul.f32 0.0013020834, %v388_v18  ;;  %v1023_v54 = vmul.f32 %v3636_v22, %v3636_v22  ;;  %v3663_v56 = vsub.f32 %v3138_v55, %v3598_v48  ;;  %v3142_v18 = vld [vmem:[#allocation2 + $0xd0] sm:$0xff] }
  0xe0   :  { %v1030_v57 = vmul.f32 %v3645_v36, %v3645_v36  ;;  %v3667_v58 = vmul.f32 0.0013020834, %v409_v44  ;;  %v402_v59 = vpop.xlane.xlu0 %401  ;;  %v1309_v60 = vadd.f32 %v1308_v49, %v1021_v29  ;;  %v1031_v61 = vmul.f32 %v3648_v40, %v3648_v40  ;;  %v3145_v29 = vld [vmem:[#allocation2 + $0xe8] sm:$0xff] }
  0xe1   :  { %1305 = vadd.xlane.f32.xlu0 %v1304_v45  ;;  %v1032_v62 = vmul.f32 %v3651_v43, %v3651_v43  ;;  %v1318_v0 = vadd.f32 %v1317_v33, %v1029_v7  ;;  %v3674_v2 = vsub.f32 %v3139_v1, %v3598_v48  ;;  %v1033_v4 = vmul.f32 %v3656_v52, %v3656_v52  ;;  %v3148_v1 = vld [vmem:[#allocation2 + $0x100] sm:$0xff] }
  0xe2   :  { %v3678_v9 = vsub.f32 %v3140_v8, %v680_v17  ;;  %v423_v11 = vpop.xlane.xlu1 %422  ;;  %v1310_v12 = vadd.f32 %v1309_v60, %v1022_v46  ;;  %v1321_v13 = vadd.f32 %v1031_v61, %v1030_v57  ;;  %v3680_v16 = vsub.f32 %v3141_v15, %v680_v17 }
  0xe3   :  { %v3682_v19 = vsub.f32 %v3142_v18, %v680_v17  ;;  %v3684_v7 = vmul.f32 0.0013020834, %v402_v59  ;;  %v3686_v48 = vsub.f32 %v3143_v20, %v680_v17  ;;  %v3688_v27 = vsub.f32 %v3144_v23, %v680_v17  ;;  %v3146_v59 = vld [vmem:[#allocation2 + $0xf0] sm:$0xff] }
  0xe4   :  { %6665 = vst [vmem:[#allocation12_spill] sm:$0xff] %v3678_v9  ;;  %6666 = vst [vmem:[#allocation13_spill] sm:$0xff] %v3680_v16  ;;  %v3690_v31 = vsub.f32 %v3145_v29, %v680_v17  ;;  %v416_v33 = vpop.xlane.xlu0 %415  ;;  %v1311_v35 = vadd.f32 %v1310_v12, %v1023_v54  ;;  %v1322_v38 = vadd.f32 %v1321_v13, %v1032_v62  ;;  %v3696_v45 = vmul.f32 0.0013020834, %v423_v11  ;;  %v3147_v62 = vld [vmem:[#allocation2 + $0xf8] sm:$0xff]  ;;  %v3149_v11 = vld [vmem:[#allocation2 + $0x108] sm:$0xff] }
  0xe5   :  { %6667 = vst [vmem:[#allocation14_spill] sm:$0xff] %v3682_v19  ;;  %6668 = vst [vmem:[#allocation15_spill] sm:$0xff] %v3686_v48  ;;  %1319 = vadd.xlane.f32.xlu0 %v1318_v0  ;;  %v1036_v42 = vmul.f32 %v3678_v9, %v3678_v9  ;;  %v1037_v44 = vmul.f32 %v3680_v16, %v3680_v16  ;;  %v1034_v46 = vmul.f32 %v3663_v56, %v3663_v56  ;;  %v3150_v23 = vld [vmem:[#allocation2 + $0x110] sm:$0xff] }
  0xe6   :  { %6669 = vst [vmem:[#allocation16_spill] sm:$0xff] %v3688_v27  ;;  %6670 = vst [vmem:[#allocation17_spill] sm:$0xff] %v3690_v31  ;;  %v1035_v49 = vmul.f32 %v3674_v2, %v3674_v2  ;;  %v1038_v17 = vmul.f32 %v3682_v19, %v3682_v19  ;;  %1312 = vadd.xlane.f32.xlu1 %v1311_v35  ;;  %v437_v50 = vpop.xlane.xlu1 %436  ;;  %v1323_v54 = vadd.f32 %v1322_v38, %v1033_v4 }
  0xe7   :  { %v1039_v55 = vmul.f32 %v3686_v48, %v3686_v48  ;;  %v1328_v57 = vadd.f32 %v1037_v44, %v1036_v42  ;;  %v3707_v60 = vsub.f32 %v3146_v59, %v3624_v6  ;;  %v3709_v61 = vmul.f32 0.0013020834, %v416_v33  ;;  %v3151_v59 = vld [vmem:[#allocation2 + $0x118] sm:$0xff] }
  0xe8   :  { %v3712_v0 = vsub.f32 %v3147_v62, %v3624_v6  ;;  %v3715_v8 = vsub.f32 %v3148_v1, %v3624_v6  ;;  %v3718_v4 = vsub.f32 %v3149_v11, %v3624_v6  ;;  %v430_v12 = vpop.xlane.xlu0 %429  ;;  %v1324_v13 = vadd.f32 %v1323_v54, %v1034_v46  ;;  %v3152_v11 = vld [vmem:[#allocation2 + $0x120] sm:$0xff] }
  0xe9   :  { %6671 = vst [vmem:[#allocation18_spill] sm:$0xff] %v3707_v60  ;;  %v1040_v15 = vmul.f32 %v3688_v27, %v3688_v27  ;;  %v1041_v18 = vmul.f32 %v3690_v31, %v3690_v31  ;;  %v1329_v20 = vadd.f32 %v1328_v57, %v1038_v17  ;;  %v3725_v29 = vsub.f32 %v3150_v23, %v3624_v6 }
  0xea   :  { %6672 = vst [vmem:[#allocation19_spill] sm:$0xff] %v3712_v0  ;;  %6673 = vst [vmem:[#allocation20_spill] sm:$0xff] %v3715_v8  ;;  %v1042_v33 = vmul.f32 %v3707_v60, %v3707_v60  ;;  %v1043_v35 = vmul.f32 %v3712_v0, %v3712_v0  ;;  %v1044_v38 = vmul.f32 %v3715_v8, %v3715_v8  ;;  %v3733_v42 = vmul.f32 0.0013020834, %v437_v50  ;;  %v451_v54 = vpop.xlane.xlu1 %450  ;;  %v3177_v0 = vld [vmem:[#allocation2 + $0x1e8] sm:$0xff]  ;;  %v3347_v60 = vld [vmem:[#allocation2 + $0x738] sm:$0xff] }
  0xeb   :  { %6674 = vst [vmem:[#allocation21_spill] sm:$0xff] %v3718_v4  ;;  %6675 = vst [vmem:[#allocation22_spill] sm:$0xff] %v3725_v29  ;;  %v1325_v44 = vadd.f32 %v1324_v13, %v1035_v49  ;;  %v1330_v46 = vadd.f32 %v1329_v20, %v1039_v55  ;;  %v3736_v17 = vsub.f32 %v3151_v59, %v3624_v6  ;;  %v3738_v57 = vmul.f32 0.0013020834, %v430_v12  ;;  %v3153_v49 = vld [vmem:[#allocation2 + $0x128] sm:$0xff]  ;;  %v3154_v13 = vld [vmem:[#allocation2 + $0x130] sm:$0xff] }
  0xec   :  { %v1045_v62 = vmul.f32 %v3718_v4, %v3718_v4  ;;  %v1335_v1 = vadd.f32 %v1043_v35, %v1042_v33  ;;  %v3743_v23 = vsub.f32 %v3152_v11, %v3658_v53  ;;  %v444_v8 = vpop.xlane.xlu0 %443  ;;  %v3746_v55 = vsub.f32 %v3153_v49, %v3658_v53  ;;  %v3155_v12 = vld [vmem:[#allocation2 + $0x138] sm:$0xff]  ;;  %v3156_v59 = vld [vmem:[#allocation2 + $0x140] sm:$0xff] }
  0xed   :  { %6676 = vst [vmem:[#allocation23_spill] sm:$0xff] %v3736_v17  ;;  %1326 = vadd.xlane.f32.xlu1 %v1325_v44  ;;  %v1331_v50 = vadd.f32 %v1330_v46, %v1040_v15  ;;  %v3749_v6 = vsub.f32 %v3154_v13, %v3658_v53  ;;  %v3752_v20 = vsub.f32 %v3155_v12, %v3658_v53  ;;  %v3157_v44 = vld [vmem:[#allocation2 + $0x148] sm:$0xff] }
  0xee   :  { %6677 = vst [vmem:[#allocation24_spill] sm:$0xff] %v3743_v23  ;;  %6678 = vst [vmem:[#allocation25_spill] sm:$0xff] %v3746_v55  ;;  %v1046_v33 = vmul.f32 %v3725_v29, %v3725_v29  ;;  %v1336_v35 = vadd.f32 %v1335_v1, %v1044_v38  ;;  %v3757_v15 = vsub.f32 %v3156_v59, %v3658_v53  ;;  %v3768_v29 = vmul.f32 0.0013020834, %v451_v54 }
  0xef   :  { %6679 = vst [vmem:[#allocation26_spill] sm:$0xff] %v3749_v6  ;;  %6680 = vst [vmem:[#allocation27_spill] sm:$0xff] %v3752_v20  ;;  %v3760_v46 = vsub.f32 %v3157_v44, %v3658_v53  ;;  %v1332_v11 = vadd.f32 %v1331_v50, %v1041_v18  ;;  %v1048_v49 = vmul.f32 %v3743_v23, %v3743_v23  ;;  %v3770_v38 = vmul.f32 0.0013020834, %v444_v8  ;;  %v465_v53 = vpop.xlane.xlu1 %464  ;;  %v3158_v44 = vld [vmem:[#allocation2 + $0x150] sm:$0xff]  ;;  %v3159_v23 = vld [vmem:[#allocation2 + $0x158] sm:$0xff] }
  0xf0   :  { %6681 = vst [vmem:[#allocation28_spill] sm:$0xff] %v3757_v15  ;;  %v1049_v13 = vmul.f32 %v3746_v55, %v3746_v55  ;;  %v1050_v12 = vmul.f32 %v3749_v6, %v3749_v6  ;;  %v1047_v1 = vmul.f32 %v3736_v17, %v3736_v17  ;;  %v1337_v59 = vadd.f32 %v1336_v35, %v1045_v62  ;;  %v3160_v17 = vld [vmem:[#allocation2 + $0x160] sm:$0xff]  ;;  %v3161_v35 = vld [vmem:[#allocation2 + $0x168] sm:$0xff]  ;;  %v458_v4 = vpop.xlane.xlu0 %457 }
  0xf1   :  { %6682 = vst [vmem:[#allocation29_spill] sm:$0xff] %v3760_v46  ;;  %1333 = vadd.xlane.f32.xlu0 %v1332_v11  ;;  %v1051_v18 = vmul.f32 %v3752_v20, %v3752_v20  ;;  %v3777_v55 = vsub.f32 %v3158_v44, %v3640_v25  ;;  %v3780_v54 = vsub.f32 %v3159_v23, %v3640_v25  ;;  %v3792_v44 = vmul.f32 0.0013020834, %v465_v53 }
  0xf2   :  { %v1342_v50 = vadd.f32 %v1049_v13, %v1048_v49  ;;  %v1338_v8 = vadd.f32 %v1337_v59, %v1046_v33  ;;  %v1052_v6 = vmul.f32 %v3757_v15, %v3757_v15  ;;  %v3785_v62 = vsub.f32 %v3160_v17, %v3640_v25  ;;  %v3162_v59 = vld [vmem:[#allocation2 + $0x170] sm:$0xff] }
  0xf3   :  { %6683 = vst [vmem:[#allocation30_spill] sm:$0xff] %v3777_v55  ;;  %6684 = vst [vmem:[#allocation31_spill] sm:$0xff] %v3780_v54  ;;  %v3788_v11 = vsub.f32 %v3161_v35, %v3640_v25  ;;  %v1053_v49 = vmul.f32 %v3760_v46, %v3760_v46  ;;  %v1054_v23 = vmul.f32 %v3777_v55, %v3777_v55  ;;  %v3163_v46 = vld [vmem:[#allocation2 + $0x178] sm:$0xff] }
  0xf4   :  { %6685 = vst [vmem:[#allocation32_spill] sm:$0xff] %v3785_v62  ;;  %v1343_v13 = vadd.f32 %v1342_v50, %v1050_v12  ;;  %v1339_v33 = vadd.f32 %v1338_v8, %v1047_v1  ;;  %v3797_v15 = vsub.f32 %v3162_v59, %v3640_v25  ;;  %v1055_v17 = vmul.f32 %v3780_v54, %v3780_v54  ;;  %v3164_v1 = vld [vmem:[#allocation2 + $0x180] sm:$0xff]  ;;  %v3165_v59 = vld [vmem:[#allocation2 + $0x188] sm:$0xff] }
  0xf5   :  { %6686 = vst [vmem:[#allocation33_spill] sm:$0xff] %v3788_v11  ;;  %v1056_v35 = vmul.f32 %v3785_v62, %v3785_v62  ;;  %v3804_v12 = vsub.f32 %v3163_v46, %v3640_v25  ;;  %v1057_v53 = vmul.f32 %v3788_v11, %v3788_v11  ;;  %v3809_v50 = vsub.f32 %v3164_v1, %v3684_v7  ;;  %v3166_v62 = vld [vmem:[#allocation2 + $0x190] sm:$0xff]  ;;  %v3168_v11 = vld [vmem:[#allocation2 + $0x1a0] sm:$0xff]  ;;  %v3169_v1 = vld [vmem:[#allocation2 + $0x1a8] sm:$0xff] }
  0xf6   :  { %6687 = vst [vmem:[#allocation34_spill] sm:$0xff] %v3797_v15  ;;  %v1344_v20 = vadd.f32 %v1343_v13, %v1051_v18  ;;  %1340 = vadd.xlane.f32.xlu1 %v1339_v33  ;;  %v1349_v8 = vadd.f32 %v1055_v17, %v1054_v23  ;;  %v3812_v54 = vsub.f32 %v3165_v59, %v3684_v7  ;;  %v3167_v13 = vld [vmem:[#allocation2 + $0x198] sm:$0xff]  ;;  %v3828_v17 = vmul.f32 0.0013020834, %v458_v4 }
  0xf7   :  { %6688 = vst [vmem:[#allocation35_spill] sm:$0xff] %v3804_v12  ;;  %6689 = vst [vmem:[#allocation36_spill] sm:$0xff] %v3809_v50  ;;  %v3815_v18 = vsub.f32 %v3166_v62, %v3684_v7  ;;  %v3818_v25 = vsub.f32 %v3167_v13, %v3684_v7  ;;  %v3821_v55 = vsub.f32 %v3168_v11, %v3684_v7 }
  0xf8   :  { %6690 = vst [vmem:[#allocation37_spill] sm:$0xff] %v3812_v54  ;;  %v1345_v46 = vadd.f32 %v1344_v20, %v1052_v6  ;;  %v3824_v23 = vsub.f32 %v3169_v1, %v3684_v7  ;;  %v1060_v33 = vmul.f32 %v3809_v50, %v3809_v50  ;;  %v1350_v62 = vadd.f32 %v1349_v8, %v1056_v35  ;;  %v479_v1 = vpop.xlane.xlu1 %478 }
  0xf9   :  { %6691 = vst [vmem:[#allocation38_spill] sm:$0xff] %v3815_v18  ;;  %6692 = vst [vmem:[#allocation39_spill] sm:$0xff] %v3818_v25  ;;  %v1061_v59 = vmul.f32 %v3812_v54, %v3812_v54  ;;  %v1062_v6 = vmul.f32 %v3815_v18, %v3815_v18  ;;  %v1058_v11 = vmul.f32 %v3797_v15, %v3797_v15  ;;  %v3170_v54 = vld [vmem:[#allocation2 + $0x1b0] sm:$0xff] }
  0xfa   :  { %6693 = vst [vmem:[#allocation40_spill] sm:$0xff] %v3821_v55  ;;  %6694 = vst [vmem:[#allocation41_spill] sm:$0xff] %v3824_v23  ;;  %v1346_v20 = vadd.f32 %v1345_v46, %v1053_v49  ;;  %v1059_v7 = vmul.f32 %v3804_v12, %v3804_v12  ;;  %v1063_v13 = vmul.f32 %v3818_v25, %v3818_v25  ;;  %v3171_v46 = vld [vmem:[#allocation2 + $0x1b8] sm:$0xff]  ;;  %v3172_v12 = vld [vmem:[#allocation2 + $0x1c0] sm:$0xff] }
  0xfb   :  { %v1351_v4 = vadd.f32 %v1350_v62, %v1057_v53  ;;  %v1064_v35 = vmul.f32 %v3821_v55, %v3821_v55  ;;  %v1356_v8 = vadd.f32 %v1061_v59, %v1060_v33  ;;  %v3843_v50 = vsub.f32 %v3170_v54, %v3667_v58  ;;  %v3173_v53 = vld [vmem:[#allocation2 + $0x1c8] sm:$0xff] }
  0xfc   :  { %1347 = vadd.xlane.f32.xlu0 %v1346_v20  ;;  %v1065_v49 = vmul.f32 %v3824_v23, %v3824_v23  ;;  %v3848_v18 = vsub.f32 %v3171_v46, %v3667_v58  ;;  %v3851_v25 = vsub.f32 %v3172_v12, %v3667_v58  ;;  %v3854_v62 = vsub.f32 %v3173_v53, %v3667_v58  ;;  %v3174_v23 = vld [vmem:[#allocation2 + $0x1d0] sm:$0xff]  ;;  %v3175_v46 = vld [vmem:[#allocation2 + $0x1d8] sm:$0xff]  ;;  %v3176_v53 = vld [vmem:[#allocation2 + $0x1e0] sm:$0xff] }
  0xfd   :  { %6695 = vst [vmem:[#allocation42_spill] sm:$0xff] %v3843_v50  ;;  %v1352_v33 = vadd.f32 %v1351_v4, %v1058_v11  ;;  %v1357_v59 = vadd.f32 %v1356_v8, %v1062_v6  ;;  %v3856_v54 = vmul.f32 0.0013020834, %v479_v1  ;;  %v1066_v20 = vmul.f32 %v3843_v50, %v3843_v50  ;;  %v472_v4 = vpop.xlane.xlu0 %471 }
  0xfe   :  { %6696 = vst [vmem:[#allocation43_spill] sm:$0xff] %v3848_v18  ;;  %6697 = vst [vmem:[#allocation44_spill] sm:$0xff] %v3851_v25  ;;  %v3861_v55 = vsub.f32 %v3174_v23, %v3667_v58  ;;  %v3864_v15 = vsub.f32 %v3175_v46, %v3667_v58  ;;  %v1067_v12 = vmul.f32 %v3848_v18, %v3848_v18  ;;  %v3178_v46 = vld [vmem:[#allocation2 + $0x1f0] sm:$0xff] }
  0xff   :  { %6698 = vst [vmem:[#allocation45_spill] sm:$0xff] %v3854_v62  ;;  %v1068_v11 = vmul.f32 %v3851_v25, %v3851_v25  ;;  %v1353_v6 = vadd.f32 %v1352_v33, %v1059_v7  ;;  %v1358_v1 = vadd.f32 %v1357_v59, %v1063_v13  ;;  %v1069_v8 = vmul.f32 %v3854_v62, %v3854_v62  ;;  %v3179_v25 = vld [vmem:[#allocation2 + $0x1f8] sm:$0xff]  ;;  %v3180_v33 = vld [vmem:[#allocation2 + $0x200] sm:$0xff]  ;;  %v3189_v62 = vld [vmem:[#allocation2 + $0x248] sm:$0xff] }
 0x100   :  { %6699 = vst [vmem:[#allocation46_spill] sm:$0xff] %v3861_v55  ;;  %6700 = vst [vmem:[#allocation47_spill] sm:$0xff] %v3864_v15  ;;  %v3873_v23 = vsub.f32 %v3176_v53, %v3709_v61  ;;  %v1363_v50 = vadd.f32 %v1067_v12, %v1066_v20  ;;  %v3876_v58 = vsub.f32 %v3177_v0, %v3709_v61  ;;  %v3181_v53 = vld [vmem:[#allocation2 + $0x208] sm:$0xff]  ;;  %v3892_v12 = vmul.f32 0.0013020834, %v472_v4 }
 0x101   :  { %v3879_v18 = vsub.f32 %v3178_v46, %v3709_v61  ;;  %v3882_v7 = vsub.f32 %v3179_v25, %v3709_v61  ;;  %1354 = vadd.xlane.f32.xlu1 %v1353_v6  ;;  %v1359_v13 = vadd.f32 %v1358_v1, %v1064_v35  ;;  %v3885_v59 = vsub.f32 %v3180_v33, %v3709_v61 }
 0x102   :  { %6701 = vst [vmem:[#allocation48_spill] sm:$0xff] %v3873_v23  ;;  %6702 = vst [vmem:[#allocation49_spill] sm:$0xff] %v3876_v58  ;;  %v3888_v20 = vsub.f32 %v3181_v53, %v3709_v61  ;;  %v1072_v0 = vmul.f32 %v3873_v23, %v3873_v23  ;;  %v1364_v46 = vadd.f32 %v1363_v50, %v1068_v11  ;;  %v493_v53 = vpop.xlane.xlu1 %492 }
 0x103   :  { %6703 = vst [vmem:[#allocation50_spill] sm:$0xff] %v3879_v18  ;;  %6704 = vst [vmem:[#allocation51_spill] sm:$0xff] %v3882_v7  ;;  %v1073_v25 = vmul.f32 %v3876_v58, %v3876_v58  ;;  %v1074_v35 = vmul.f32 %v3879_v18, %v3879_v18  ;;  %v1360_v6 = vadd.f32 %v1359_v13, %v1065_v49  ;;  %v3182_v58 = vld [vmem:[#allocation2 + $0x210] sm:$0xff]  ;;  %v3183_v13 = vld [vmem:[#allocation2 + $0x218] sm:$0xff] }
 0x104   :  { %6705 = vst [vmem:[#allocation52_spill] sm:$0xff] %v3885_v59  ;;  %6706 = vst [vmem:[#allocation53_spill] sm:$0xff] %v3888_v20  ;;  %v1070_v1 = vmul.f32 %v3861_v55, %v3861_v55  ;;  %v1071_v61 = vmul.f32 %v3864_v15, %v3864_v15  ;;  %v1075_v33 = vmul.f32 %v3882_v7, %v3882_v7  ;;  %v3184_v15 = vld [vmem:[#allocation2 + $0x220] sm:$0xff] }
 0x105   :  { %v1365_v4 = vadd.f32 %v1364_v46, %v1069_v8  ;;  %v1076_v50 = vmul.f32 %v3885_v59, %v3885_v59  ;;  %v1370_v11 = vadd.f32 %v1073_v25, %v1072_v0  ;;  %v3907_v23 = vsub.f32 %v3182_v58, %v3696_v45  ;;  %1361 = vadd.xlane.f32.xlu0 %v1360_v6  ;;  %v3185_v8 = vld [vmem:[#allocation2 + $0x228] sm:$0xff] }
 0x106   :  { %v1077_v49 = vmul.f32 %v3888_v20, %v3888_v20  ;;  %v3912_v18 = vsub.f32 %v3183_v13, %v3696_v45  ;;  %v3915_v7 = vsub.f32 %v3184_v15, %v3696_v45  ;;  %v3918_v46 = vsub.f32 %v3185_v8, %v3696_v45  ;;  %v3186_v20 = vld [vmem:[#allocation2 + $0x230] sm:$0xff]  ;;  %v3187_v13 = vld [vmem:[#allocation2 + $0x238] sm:$0xff]  ;;  %v3188_v8 = vld [vmem:[#allocation2 + $0x240] sm:$0xff] }
 0x107   :  { %6707 = vst [vmem:[#allocation54_spill] sm:$0xff] %v3907_v23  ;;  %v1366_v0 = vadd.f32 %v1365_v4, %v1070_v1  ;;  %v1371_v25 = vadd.f32 %v1370_v11, %v1074_v35  ;;  %v3920_v58 = vmul.f32 0.0013020834, %v493_v53  ;;  %v1078_v6 = vmul.f32 %v3907_v23, %v3907_v23  ;;  %v486_v4 = vpop.xlane.xlu0 %485 }
 0x108   :  { %6708 = vst [vmem:[#allocation55_spill] sm:$0xff] %v3912_v18  ;;  %6709 = vst [vmem:[#allocation56_spill] sm:$0xff] %v3915_v7  ;;  %v3925_v59 = vsub.f32 %v3186_v20, %v3696_v45  ;;  %v3928_v55 = vsub.f32 %v3187_v13, %v3696_v45  ;;  %v1079_v15 = vmul.f32 %v3912_v18, %v3912_v18  ;;  %v3190_v13 = vld [vmem:[#allocation2 + $0x250] sm:$0xff] }
 0x109   :  { %6710 = vst [vmem:[#allocation57_spill] sm:$0xff] %v3918_v46  ;;  %v1080_v1 = vmul.f32 %v3915_v7, %v3915_v7  ;;  %v1367_v35 = vadd.f32 %v1366_v0, %v1071_v61  ;;  %v1372_v53 = vadd.f32 %v1371_v25, %v1075_v33  ;;  %v1081_v11 = vmul.f32 %v3918_v46, %v3918_v46  ;;  %v3191_v7 = vld [vmem:[#allocation2 + $0x258] sm:$0xff]  ;;  %v3192_v0 = vld [vmem:[#allocation2 + $0x260] sm:$0xff]  ;;  %v3201_v46 = vld [vmem:[#allocation2 + $0x2a8] sm:$0xff] }
 0x10a   :  { %6711 = vst [vmem:[#allocation58_spill] sm:$0xff] %v3925_v59  ;;  %6712 = vst [vmem:[#allocation59_spill] sm:$0xff] %v3928_v55  ;;  %v3937_v20 = vsub.f32 %v3188_v8, %v3738_v57  ;;  %v1377_v23 = vadd.f32 %v1079_v15, %v1078_v6  ;;  %v3940_v45 = vsub.f32 %v3189_v62, %v3738_v57  ;;  %v3193_v8 = vld [vmem:[#allocation2 + $0x268] sm:$0xff]  ;;  %v3956_v15 = vmul.f32 0.0013020834, %v486_v4 }
 0x10b   :  { %v3943_v18 = vsub.f32 %v3190_v13, %v3738_v57  ;;  %v3946_v61 = vsub.f32 %v3191_v7, %v3738_v57  ;;  %1368 = vadd.xlane.f32.xlu1 %v1367_v35  ;;  %v1373_v33 = vadd.f32 %v1372_v53, %v1076_v50  ;;  %v3949_v25 = vsub.f32 %v3192_v0, %v3738_v57 }
 0x10c   :  { %6713 = vst [vmem:[#allocation60_spill] sm:$0xff] %v3937_v20  ;;  %6714 = vst [vmem:[#allocation61_spill] sm:$0xff] %v3940_v45  ;;  %v3952_v6 = vsub.f32 %v3193_v8, %v3738_v57  ;;  %v1084_v62 = vmul.f32 %v3937_v20, %v3937_v20  ;;  %v1378_v13 = vadd.f32 %v1377_v23, %v1080_v1  ;;  %v507_v8 = vpop.xlane.xlu1 %506 }
 0x10d   :  { %6715 = vst [vmem:[#allocation62_spill] sm:$0xff] %v3943_v18  ;;  %6716 = vst [vmem:[#allocation63_spill] sm:$0xff] %v3946_v61  ;;  %v1085_v7 = vmul.f32 %v3940_v45, %v3940_v45  ;;  %v1086_v50 = vmul.f32 %v3943_v18, %v3943_v18  ;;  %v1374_v35 = vadd.f32 %v1373_v33, %v1077_v49  ;;  %v3194_v45 = vld [vmem:[#allocation2 + $0x270] sm:$0xff]  ;;  %v3195_v33 = vld [vmem:[#allocation2 + $0x278] sm:$0xff] }
 0x10e   :  { %6717 = vst [vmem:[#allocation64_spill] sm:$0xff] %v3949_v25  ;;  %6718 = vst [vmem:[#allocation65_spill] sm:$0xff] %v3952_v6  ;;  %v1082_v53 = vmul.f32 %v3925_v59, %v3925_v59  ;;  %v1083_v57 = vmul.f32 %v3928_v55, %v3928_v55  ;;  %v1087_v0 = vmul.f32 %v3946_v61, %v3946_v61  ;;  %v3196_v55 = vld [vmem:[#allocation2 + $0x280] sm:$0xff] }
 0x10f   :  { %v1379_v4 = vadd.f32 %v1378_v13, %v1081_v11  ;;  %v1088_v23 = vmul.f32 %v3949_v25, %v3949_v25  ;;  %v1384_v1 = vadd.f32 %v1085_v7, %v1084_v62  ;;  %v3971_v20 = vsub.f32 %v3194_v45, %v3733_v42  ;;  %1375 = vadd.xlane.f32.xlu0 %v1374_v35  ;;  %v3197_v11 = vld [vmem:[#allocation2 + $0x288] sm:$0xff] }
 0x110   :  { %v1089_v49 = vmul.f32 %v3952_v6, %v3952_v6  ;;  %v3976_v18 = vsub.f32 %v3195_v33, %v3733_v42  ;;  %v3979_v61 = vsub.f32 %v3196_v55, %v3733_v42  ;;  %v3982_v13 = vsub.f32 %v3197_v11, %v3733_v42  ;;  %v3198_v6 = vld [vmem:[#allocation2 + $0x290] sm:$0xff]  ;;  %v3199_v33 = vld [vmem:[#allocation2 + $0x298] sm:$0xff]  ;;  %v3200_v11 = vld [vmem:[#allocation2 + $0x2a0] sm:$0xff] }
 0x111   :  { %6719 = vst [vmem:[#allocation66_spill] sm:$0xff] %v3971_v20  ;;  %v1380_v62 = vadd.f32 %v1379_v4, %v1082_v53  ;;  %v1385_v7 = vadd.f32 %v1384_v1, %v1086_v50  ;;  %v3984_v45 = vmul.f32 0.0013020834, %v507_v8  ;;  %v1090_v35 = vmul.f32 %v3971_v20, %v3971_v20  ;;  %v500_v4 = vpop.xlane.xlu0 %499 }
 0x112   :  { %6720 = vst [vmem:[#allocation67_spill] sm:$0xff] %v3976_v18  ;;  %6721 = vst [vmem:[#allocation68_spill] sm:$0xff] %v3979_v61  ;;  %v3989_v25 = vsub.f32 %v3198_v6, %v3733_v42  ;;  %v3992_v59 = vsub.f32 %v3199_v33, %v3733_v42  ;;  %v1091_v55 = vmul.f32 %v3976_v18, %v3976_v18  ;;  %v3202_v33 = vld [vmem:[#allocation2 + $0x2b0] sm:$0xff] }
 0x113   :  { %6722 = vst [vmem:[#allocation69_spill] sm:$0xff] %v3982_v13  ;;  %v1092_v53 = vmul.f32 %v3979_v61, %v3979_v61  ;;  %v1381_v50 = vadd.f32 %v1380_v62, %v1083_v57  ;;  %v1386_v8 = vadd.f32 %v1385_v7, %v1087_v0  ;;  %v1093_v1 = vmul.f32 %v3982_v13, %v3982_v13  ;;  %v3203_v61 = vld [vmem:[#allocation2 + $0x2b8] sm:$0xff]  ;;  %v3204_v62 = vld [vmem:[#allocation2 + $0x2c0] sm:$0xff]  ;;  %v3213_v13 = vld [vmem:[#allocation2 + $0x308] sm:$0xff] }
 0x114   :  { %6723 = vst [vmem:[#allocation70_spill] sm:$0xff] %v3989_v25  ;;  %6724 = vst [vmem:[#allocation71_spill] sm:$0xff] %v3992_v59  ;;  %v4001_v6 = vsub.f32 %v3200_v11, %v3770_v38  ;;  %v1391_v20 = vadd.f32 %v1091_v55, %v1090_v35  ;;  %v4004_v42 = vsub.f32 %v3201_v46, %v3770_v38  ;;  %v3205_v11 = vld [vmem:[#allocation2 + $0x2c8] sm:$0xff]  ;;  %v4020_v55 = vmul.f32 0.0013020834, %v500_v4 }
 0x115   :  { %v4007_v18 = vsub.f32 %v3202_v33, %v3770_v38  ;;  %v4010_v57 = vsub.f32 %v3203_v61, %v3770_v38  ;;  %1382 = vadd.xlane.f32.xlu1 %v1381_v50  ;;  %v1387_v0 = vadd.f32 %v1386_v8, %v1088_v23  ;;  %v4013_v7 = vsub.f32 %v3204_v62, %v3770_v38 }
 0x116   :  { %6725 = vst [vmem:[#allocation72_spill] sm:$0xff] %v4001_v6  ;;  %6726 = vst [vmem:[#allocation73_spill] sm:$0xff] %v4004_v42  ;;  %v4016_v35 = vsub.f32 %v3205_v11, %v3770_v38  ;;  %v1096_v46 = vmul.f32 %v4001_v6, %v4001_v6  ;;  %v1392_v33 = vadd.f32 %v1391_v20, %v1092_v53  ;;  %v521_v11 = vpop.xlane.xlu1 %520 }
 0x117   :  { %6727 = vst [vmem:[#allocation74_spill] sm:$0xff] %v4007_v18  ;;  %6728 = vst [vmem:[#allocation75_spill] sm:$0xff] %v4010_v57  ;;  %v1097_v61 = vmul.f32 %v4004_v42, %v4004_v42  ;;  %v1098_v23 = vmul.f32 %v4007_v18, %v4007_v18  ;;  %v1388_v50 = vadd.f32 %v1387_v0, %v1089_v49  ;;  %v3206_v42 = vld [vmem:[#allocation2 + $0x2d0] sm:$0xff]  ;;  %v3207_v0 = vld [vmem:[#allocation2 + $0x2d8] sm:$0xff] }
 0x118   :  { %6729 = vst [vmem:[#allocation76_spill] sm:$0xff] %v4013_v7  ;;  %6730 = vst [vmem:[#allocation77_spill] sm:$0xff] %v4016_v35  ;;  %v1094_v8 = vmul.f32 %v3989_v25, %v3989_v25  ;;  %v1095_v38 = vmul.f32 %v3992_v59, %v3992_v59  ;;  %v1099_v62 = vmul.f32 %v4010_v57, %v4010_v57  ;;  %v3208_v59 = vld [vmem:[#allocation2 + $0x2e0] sm:$0xff] }
 0x119   :  { %v1393_v4 = vadd.f32 %v1392_v33, %v1093_v1  ;;  %v1100_v20 = vmul.f32 %v4013_v7, %v4013_v7  ;;  %v1398_v53 = vadd.f32 %v1097_v61, %v1096_v46  ;;  %v4035_v6 = vsub.f32 %v3206_v42, %v3768_v29  ;;  %1389 = vadd.xlane.f32.xlu0 %v1388_v50  ;;  %v3209_v1 = vld [vmem:[#allocation2 + $0x2e8] sm:$0xff] }
 0x11a   :  { %v1101_v49 = vmul.f32 %v4016_v35, %v4016_v35  ;;  %v4040_v18 = vsub.f32 %v3207_v0, %v3768_v29  ;;  %v4043_v57 = vsub.f32 %v3208_v59, %v3768_v29  ;;  %v4046_v33 = vsub.f32 %v3209_v1, %v3768_v29  ;;  %v3210_v35 = vld [vmem:[#allocation2 + $0x2f0] sm:$0xff]  ;;  %v3211_v0 = vld [vmem:[#allocation2 + $0x2f8] sm:$0xff]  ;;  %v3212_v1 = vld [vmem:[#allocation2 + $0x300] sm:$0xff] }
 0x11b   :  { %6731 = vst [vmem:[#allocation78_spill] sm:$0xff] %v4035_v6  ;;  %v1394_v46 = vadd.f32 %v1393_v4, %v1094_v8  ;;  %v1399_v61 = vadd.f32 %v1398_v53, %v1098_v23  ;;  %v4048_v42 = vmul.f32 0.0013020834, %v521_v11  ;;  %v1102_v50 = vmul.f32 %v4035_v6, %v4035_v6  ;;  %v514_v4 = vpop.xlane.xlu0 %513 }
 0x11c   :  { %6732 = vst [vmem:[#allocation79_spill] sm:$0xff] %v4040_v18  ;;  %6733 = vst [vmem:[#allocation80_spill] sm:$0xff] %v4043_v57  ;;  %v4053_v7 = vsub.f32 %v3210_v35, %v3768_v29  ;;  %v4056_v25 = vsub.f32 %v3211_v0, %v3768_v29  ;;  %v1103_v59 = vmul.f32 %v4040_v18, %v4040_v18  ;;  %v3214_v0 = vld [vmem:[#allocation2 + $0x310] sm:$0xff] }
 0x11d   :  { %6734 = vst [vmem:[#allocation81_spill] sm:$0xff] %v4046_v33  ;;  %v1104_v8 = vmul.f32 %v4043_v57, %v4043_v57  ;;  %v1395_v23 = vadd.f32 %v1394_v46, %v1095_v38  ;;  %v1400_v11 = vadd.f32 %v1399_v61, %v1099_v62  ;;  %v1105_v53 = vmul.f32 %v4046_v33, %v4046_v33  ;;  %v3215_v57 = vld [vmem:[#allocation2 + $0x318] sm:$0xff]  ;;  %v3216_v46 = vld [vmem:[#allocation2 + $0x320] sm:$0xff]  ;;  %v3225_v33 = vld [vmem:[#allocation2 + $0x368] sm:$0xff] }
 0x11e   :  { %6735 = vst [vmem:[#allocation82_spill] sm:$0xff] %v4053_v7  ;;  %6736 = vst [vmem:[#allocation83_spill] sm:$0xff] %v4056_v25  ;;  %v4065_v35 = vsub.f32 %v3212_v1, %v3828_v17  ;;  %v1405_v6 = vadd.f32 %v1103_v59, %v1102_v50  ;;  %v4068_v29 = vsub.f32 %v3213_v13, %v3828_v17  ;;  %v3217_v1 = vld [vmem:[#allocation2 + $0x328] sm:$0xff]  ;;  %v4084_v59 = vmul.f32 0.0013020834, %v514_v4 }
 0x11f   :  { %v4071_v18 = vsub.f32 %v3214_v0, %v3828_v17  ;;  %v4074_v38 = vsub.f32 %v3215_v57, %v3828_v17  ;;  %1396 = vadd.xlane.f32.xlu1 %v1395_v23  ;;  %v1401_v62 = vadd.f32 %v1400_v11, %v1100_v20  ;;  %v4077_v61 = vsub.f32 %v3216_v46, %v3828_v17 }
 0x120   :  { %6737 = vst [vmem:[#allocation84_spill] sm:$0xff] %v4065_v35  ;;  %6738 = vst [vmem:[#allocation85_spill] sm:$0xff] %v4068_v29  ;;  %v4080_v50 = vsub.f32 %v3217_v1, %v3828_v17  ;;  %v1108_v13 = vmul.f32 %v4065_v35, %v4065_v35  ;;  %v1406_v0 = vadd.f32 %v1405_v6, %v1104_v8  ;;  %v535_v1 = vpop.xlane.xlu1 %534 }
 0x121   :  { %6739 = vst [vmem:[#allocation86_spill] sm:$0xff] %v4071_v18  ;;  %6740 = vst [vmem:[#allocation87_spill] sm:$0xff] %v4074_v38  ;;  %v1109_v57 = vmul.f32 %v4068_v29, %v4068_v29  ;;  %v1110_v20 = vmul.f32 %v4071_v18, %v4071_v18  ;;  %v1402_v23 = vadd.f32 %v1401_v62, %v1101_v49  ;;  %v3218_v29 = vld [vmem:[#allocation2 + $0x330] sm:$0xff]  ;;  %v3219_v62 = vld [vmem:[#allocation2 + $0x338] sm:$0xff] }
 0x122   :  { %6741 = vst [vmem:[#allocation88_spill] sm:$0xff] %v4077_v61  ;;  %6742 = vst [vmem:[#allocation89_spill] sm:$0xff] %v4080_v50  ;;  %v1106_v11 = vmul.f32 %v4053_v7, %v4053_v7  ;;  %v1107_v17 = vmul.f32 %v4056_v25, %v4056_v25  ;;  %v1111_v46 = vmul.f32 %v4074_v38, %v4074_v38  ;;  %v3220_v25 = vld [vmem:[#allocation2 + $0x340] sm:$0xff] }
 0x123   :  { %v1407_v4 = vadd.f32 %v1406_v0, %v1105_v53  ;;  %v1112_v6 = vmul.f32 %v4077_v61, %v4077_v61  ;;  %v1412_v8 = vadd.f32 %v1109_v57, %v1108_v13  ;;  %v4099_v35 = vsub.f32 %v3218_v29, %v3792_v44  ;;  %1403 = vadd.xlane.f32.xlu0 %v1402_v23  ;;  %v3221_v53 = vld [vmem:[#allocation2 + $0x348] sm:$0xff] }
 0x124   :  { %v1113_v49 = vmul.f32 %v4080_v50, %v4080_v50  ;;  %v4104_v18 = vsub.f32 %v3219_v62, %v3792_v44  ;;  %v4107_v38 = vsub.f32 %v3220_v25, %v3792_v44  ;;  %v4110_v0 = vsub.f32 %v3221_v53, %v3792_v44  ;;  %v3222_v50 = vld [vmem:[#allocation2 + $0x350] sm:$0xff]  ;;  %v3223_v62 = vld [vmem:[#allocation2 + $0x358] sm:$0xff]  ;;  %v3224_v53 = vld [vmem:[#allocation2 + $0x360] sm:$0xff] }
 0x125   :  { %6743 = vst [vmem:[#allocation90_spill] sm:$0xff] %v4099_v35  ;;  %v1408_v13 = vadd.f32 %v1407_v4, %v1106_v11  ;;  %v1413_v57 = vadd.f32 %v1412_v8, %v1110_v20  ;;  %v4112_v29 = vmul.f32 0.0013020834, %v535_v1  ;;  %v1114_v23 = vmul.f32 %v4099_v35, %v4099_v35  ;;  %v528_v4 = vpop.xlane.xlu0 %527 }
 0x126   :  { %6744 = vst [vmem:[#allocation91_spill] sm:$0xff] %v4104_v18  ;;  %6745 = vst [vmem:[#allocation92_spill] sm:$0xff] %v4107_v38  ;;  %v4117_v61 = vsub.f32 %v3222_v50, %v3792_v44  ;;  %v4120_v7 = vsub.f32 %v3223_v62, %v3792_v44  ;;  %v1115_v25 = vmul.f32 %v4104_v18, %v4104_v18  ;;  %v3226_v62 = vld [vmem:[#allocation2 + $0x370] sm:$0xff] }
 0x127   :  { %6746 = vst [vmem:[#allocation93_spill] sm:$0xff] %v4110_v0  ;;  %v1116_v11 = vmul.f32 %v4107_v38, %v4107_v38  ;;  %v1409_v20 = vadd.f32 %v1408_v13, %v1107_v17  ;;  %v1414_v1 = vadd.f32 %v1413_v57, %v1111_v46  ;;  %v1117_v8 = vmul.f32 %v4110_v0, %v4110_v0  ;;  %v3227_v38 = vld [vmem:[#allocation2 + $0x378] sm:$0xff]  ;;  %v3228_v13 = vld [vmem:[#allocation2 + $0x380] sm:$0xff]  ;;  %v3237_v0 = vld [vmem:[#allocation2 + $0x3c8] sm:$0xff] }
 0x128   :  { %6747 = vst [vmem:[#allocation94_spill] sm:$0xff] %v4117_v61  ;;  %6748 = vst [vmem:[#allocation95_spill] sm:$0xff] %v4120_v7  ;;  %v4129_v50 = vsub.f32 %v3224_v53, %v3892_v12  ;;  %v1419_v35 = vadd.f32 %v1115_v25, %v1114_v23  ;;  %v4132_v44 = vsub.f32 %v3225_v33, %v3892_v12  ;;  %v3229_v53 = vld [vmem:[#allocation2 + $0x388] sm:$0xff]  ;;  %v4148_v25 = vmul.f32 0.0013020834, %v528_v4 }
 0x129   :  { %v4135_v18 = vsub.f32 %v3226_v62, %v3892_v12  ;;  %v4138_v17 = vsub.f32 %v3227_v38, %v3892_v12  ;;  %1410 = vadd.xlane.f32.xlu1 %v1409_v20  ;;  %v1415_v46 = vadd.f32 %v1414_v1, %v1112_v6  ;;  %v4141_v57 = vsub.f32 %v3228_v13, %v3892_v12 }
 0x12a   :  { %6749 = vst [vmem:[#allocation96_spill] sm:$0xff] %v4129_v50  ;;  %6750 = vst [vmem:[#allocation97_spill] sm:$0xff] %v4132_v44  ;;  %v4144_v23 = vsub.f32 %v3229_v53, %v3892_v12  ;;  %v1120_v33 = vmul.f32 %v4129_v50, %v4129_v50  ;;  %v1420_v62 = vadd.f32 %v1419_v35, %v1116_v11  ;;  %v549_v53 = vpop.xlane.xlu1 %548 }
 0x12b   :  { %6751 = vst [vmem:[#allocation98_spill] sm:$0xff] %v4135_v18  ;;  %6752 = vst [vmem:[#allocation99_spill] sm:$0xff] %v4138_v17  ;;  %v1121_v38 = vmul.f32 %v4132_v44, %v4132_v44  ;;  %v1122_v6 = vmul.f32 %v4135_v18, %v4135_v18  ;;  %v1416_v20 = vadd.f32 %v1415_v46, %v1113_v49  ;;  %v3230_v44 = vld [vmem:[#allocation2 + $0x390] sm:$0xff]  ;;  %v3231_v46 = vld [vmem:[#allocation2 + $0x398] sm:$0xff] }
 0x12c   :  { %6753 = vst [vmem:[#allocation100_spill] sm:$0xff] %v4141_v57  ;;  %6754 = vst [vmem:[#allocation101_spill] sm:$0xff] %v4144_v23  ;;  %v1118_v1 = vmul.f32 %v4117_v61, %v4117_v61  ;;  %v1119_v12 = vmul.f32 %v4120_v7, %v4120_v7  ;;  %v1123_v13 = vmul.f32 %v4138_v17, %v4138_v17  ;;  %v3232_v7 = vld [vmem:[#allocation2 + $0x3a0] sm:$0xff] }
 0x12d   :  { %v1421_v4 = vadd.f32 %v1420_v62, %v1117_v8  ;;  %v1124_v35 = vmul.f32 %v4141_v57, %v4141_v57  ;;  %v1426_v11 = vadd.f32 %v1121_v38, %v1120_v33  ;;  %v4163_v50 = vsub.f32 %v3230_v44, %v3856_v54  ;;  %1417 = vadd.xlane.f32.xlu0 %v1416_v20  ;;  %v3233_v8 = vld [vmem:[#allocation2 + $0x3a8] sm:$0xff] }
 0x12e   :  { %v1125_v49 = vmul.f32 %v4144_v23, %v4144_v23  ;;  %v4168_v18 = vsub.f32 %v3231_v46, %v3856_v54  ;;  %v4171_v17 = vsub.f32 %v3232_v7, %v3856_v54  ;;  %v4174_v62 = vsub.f32 %v3233_v8, %v3856_v54  ;;  %v3234_v23 = vld [vmem:[#allocation2 + $0x3b0] sm:$0xff]  ;;  %v3235_v46 = vld [vmem:[#allocation2 + $0x3b8] sm:$0xff]  ;;  %v3236_v8 = vld [vmem:[#allocation2 + $0x3c0] sm:$0xff] }
 0x12f   :  { %6755 = vst [vmem:[#allocation102_spill] sm:$0xff] %v4163_v50  ;;  %v1422_v33 = vadd.f32 %v1421_v4, %v1118_v1  ;;  %v1427_v38 = vadd.f32 %v1426_v11, %v1122_v6  ;;  %v4176_v44 = vmul.f32 0.0013020834, %v549_v53  ;;  %v1126_v20 = vmul.f32 %v4163_v50, %v4163_v50  ;;  %v542_v4 = vpop.xlane.xlu0 %541 }
 0x130   :  { %6756 = vst [vmem:[#allocation103_spill] sm:$0xff] %v4168_v18  ;;  %6757 = vst [vmem:[#allocation104_spill] sm:$0xff] %v4171_v17  ;;  %v4181_v57 = vsub.f32 %v3234_v23, %v3856_v54  ;;  %v4184_v61 = vsub.f32 %v3235_v46, %v3856_v54  ;;  %v1127_v7 = vmul.f32 %v4168_v18, %v4168_v18  ;;  %v3238_v46 = vld [vmem:[#allocation2 + $0x3d0] sm:$0xff] }
 0x131   :  { %6758 = vst [vmem:[#allocation105_spill] sm:$0xff] %v4174_v62  ;;  %v1128_v1 = vmul.f32 %v4171_v17, %v4171_v17  ;;  %v1423_v6 = vadd.f32 %v1422_v33, %v1119_v12  ;;  %v1428_v53 = vadd.f32 %v1427_v38, %v1123_v13  ;;  %v1129_v11 = vmul.f32 %v4174_v62, %v4174_v62  ;;  %v3239_v17 = vld [vmem:[#allocation2 + $0x3d8] sm:$0xff]  ;;  %v3240_v33 = vld [vmem:[#allocation2 + $0x3e0] sm:$0xff]  ;;  %v3249_v62 = vld [vmem:[#allocation2 + $0x428] sm:$0xff] }
 0x132   :  { %6759 = vst [vmem:[#allocation106_spill] sm:$0xff] %v4181_v57  ;;  %6760 = vst [vmem:[#allocation107_spill] sm:$0xff] %v4184_v61  ;;  %v4193_v23 = vsub.f32 %v3236_v8, %v3956_v15  ;;  %v1433_v50 = vadd.f32 %v1127_v7, %v1126_v20  ;;  %v4196_v54 = vsub.f32 %v3237_v0, %v3956_v15  ;;  %v3241_v8 = vld [vmem:[#allocation2 + $0x3e8] sm:$0xff]  ;;  %v4212_v7 = vmul.f32 0.0013020834, %v542_v4 }
 0x133   :  { %v4199_v18 = vsub.f32 %v3238_v46, %v3956_v15  ;;  %v4202_v12 = vsub.f32 %v3239_v17, %v3956_v15  ;;  %1424 = vadd.xlane.f32.xlu1 %v1423_v6  ;;  %v1429_v13 = vadd.f32 %v1428_v53, %v1124_v35  ;;  %v4205_v38 = vsub.f32 %v3240_v33, %v3956_v15 }
 0x134   :  { %6761 = vst [vmem:[#allocation108_spill] sm:$0xff] %v4193_v23  ;;  %6762 = vst [vmem:[#allocation109_spill] sm:$0xff] %v4196_v54  ;;  %v4208_v20 = vsub.f32 %v3241_v8, %v3956_v15  ;;  %v1132_v0 = vmul.f32 %v4193_v23, %v4193_v23  ;;  %v1434_v46 = vadd.f32 %v1433_v50, %v1128_v1  ;;  %v563_v8 = vpop.xlane.xlu1 %562 }
 0x135   :  { %6763 = vst [vmem:[#allocation110_spill] sm:$0xff] %v4199_v18  ;;  %6764 = vst [vmem:[#allocation111_spill] sm:$0xff] %v4202_v12  ;;  %v1133_v17 = vmul.f32 %v4196_v54, %v4196_v54  ;;  %v1134_v35 = vmul.f32 %v4199_v18, %v4199_v18  ;;  %v1430_v6 = vadd.f32 %v1429_v13, %v1125_v49  ;;  %v3242_v54 = vld [vmem:[#allocation2 + $0x3f0] sm:$0xff]  ;;  %v3243_v13 = vld [vmem:[#allocation2 + $0x3f8] sm:$0xff] }
 0x136   :  { %6765 = vst [vmem:[#allocation112_spill] sm:$0xff] %v4205_v38  ;;  %6766 = vst [vmem:[#allocation113_spill] sm:$0xff] %v4208_v20  ;;  %v1130_v53 = vmul.f32 %v4181_v57, %v4181_v57  ;;  %v1131_v15 = vmul.f32 %v4184_v61, %v4184_v61  ;;  %v1135_v33 = vmul.f32 %v4202_v12, %v4202_v12  ;;  %v3244_v61 = vld [vmem:[#allocation2 + $0x400] sm:$0xff] }
 0x137   :  { %v1435_v4 = vadd.f32 %v1434_v46, %v1129_v11  ;;  %v1136_v50 = vmul.f32 %v4205_v38, %v4205_v38  ;;  %v1440_v1 = vadd.f32 %v1133_v17, %v1132_v0  ;;  %v4227_v23 = vsub.f32 %v3242_v54, %v3920_v58  ;;  %1431 = vadd.xlane.f32.xlu0 %v1430_v6  ;;  %v3245_v11 = vld [vmem:[#allocation2 + $0x408] sm:$0xff] }
 0x138   :  { %v1137_v49 = vmul.f32 %v4208_v20, %v4208_v20  ;;  %v4232_v18 = vsub.f32 %v3243_v13, %v3920_v58  ;;  %v4235_v12 = vsub.f32 %v3244_v61, %v3920_v58  ;;  %v4238_v46 = vsub.f32 %v3245_v11, %v3920_v58  ;;  %v3246_v20 = vld [vmem:[#allocation2 + $0x410] sm:$0xff]  ;;  %v3247_v13 = vld [vmem:[#allocation2 + $0x418] sm:$0xff]  ;;  %v3248_v11 = vld [vmem:[#allocation2 + $0x420] sm:$0xff] }
 0x139   :  { %6767 = vst [vmem:[#allocation114_spill] sm:$0xff] %v4227_v23  ;;  %v1436_v0 = vadd.f32 %v1435_v4, %v1130_v53  ;;  %v1441_v17 = vadd.f32 %v1440_v1, %v1134_v35  ;;  %v4240_v54 = vmul.f32 0.0013020834, %v563_v8  ;;  %v1138_v6 = vmul.f32 %v4227_v23, %v4227_v23  ;;  %v556_v4 = vpop.xlane.xlu0 %555 }
 0x13a   :  { %6768 = vst [vmem:[#allocation115_spill] sm:$0xff] %v4232_v18  ;;  %6769 = vst [vmem:[#allocation116_spill] sm:$0xff] %v4235_v12  ;;  %v4245_v38 = vsub.f32 %v3246_v20, %v3920_v58  ;;  %v4248_v57 = vsub.f32 %v3247_v13, %v3920_v58  ;;  %v1139_v61 = vmul.f32 %v4232_v18, %v4232_v18  ;;  %v3250_v13 = vld [vmem:[#allocation2 + $0x430] sm:$0xff] }
 0x13b   :  { %6770 = vst [vmem:[#allocation117_spill] sm:$0xff] %v4238_v46  ;;  %v1140_v53 = vmul.f32 %v4235_v12, %v4235_v12  ;;  %v1437_v35 = vadd.f32 %v1436_v0, %v1131_v15  ;;  %v1442_v8 = vadd.f32 %v1441_v17, %v1135_v33  ;;  %v1141_v1 = vmul.f32 %v4238_v46, %v4238_v46  ;;  %v3251_v12 = vld [vmem:[#allocation2 + $0x438] sm:$0xff]  ;;  %v3252_v0 = vld [vmem:[#allocation2 + $0x440] sm:$0xff]  ;;  %v3261_v46 = vld [vmem:[#allocation2 + $0x488] sm:$0xff] }
 0x13c   :  { %6771 = vst [vmem:[#allocation118_spill] sm:$0xff] %v4245_v38  ;;  %6772 = vst [vmem:[#allocation119_spill] sm:$0xff] %v4248_v57  ;;  %v4257_v20 = vsub.f32 %v3248_v11, %v4020_v55  ;;  %v1447_v23 = vadd.f32 %v1139_v61, %v1138_v6  ;;  %v4260_v58 = vsub.f32 %v3249_v62, %v4020_v55  ;;  %v3253_v11 = vld [vmem:[#allocation2 + $0x448] sm:$0xff]  ;;  %v4276_v61 = vmul.f32 0.0013020834, %v556_v4 }
 0x13d   :  { %v4263_v18 = vsub.f32 %v3250_v13, %v4020_v55  ;;  %v4266_v15 = vsub.f32 %v3251_v12, %v4020_v55  ;;  %1438 = vadd.xlane.f32.xlu1 %v1437_v35  ;;  %v1443_v33 = vadd.f32 %v1442_v8, %v1136_v50  ;;  %v4269_v17 = vsub.f32 %v3252_v0, %v4020_v55 }
 0x13e   :  { %6773 = vst [vmem:[#allocation120_spill] sm:$0xff] %v4257_v20  ;;  %6774 = vst [vmem:[#allocation121_spill] sm:$0xff] %v4260_v58  ;;  %v4272_v6 = vsub.f32 %v3253_v11, %v4020_v55  ;;  %v1144_v62 = vmul.f32 %v4257_v20, %v4257_v20  ;;  %v1448_v13 = vadd.f32 %v1447_v23, %v1140_v53  ;;  %v577_v11 = vpop.xlane.xlu1 %576 }
 0x13f   :  { %6775 = vst [vmem:[#allocation122_spill] sm:$0xff] %v4263_v18  ;;  %6776 = vst [vmem:[#allocation123_spill] sm:$0xff] %v4266_v15  ;;  %v1145_v12 = vmul.f32 %v4260_v58, %v4260_v58  ;;  %v1146_v50 = vmul.f32 %v4263_v18, %v4263_v18  ;;  %v1444_v35 = vadd.f32 %v1443_v33, %v1137_v49  ;;  %v3254_v58 = vld [vmem:[#allocation2 + $0x450] sm:$0xff]  ;;  %v3255_v33 = vld [vmem:[#allocation2 + $0x458] sm:$0xff] }
 0x140   :  { %6777 = vst [vmem:[#allocation124_spill] sm:$0xff] %v4269_v17  ;;  %6778 = vst [vmem:[#allocation125_spill] sm:$0xff] %v4272_v6  ;;  %v1142_v8 = vmul.f32 %v4245_v38, %v4245_v38  ;;  %v1143_v55 = vmul.f32 %v4248_v57, %v4248_v57  ;;  %v1147_v0 = vmul.f32 %v4266_v15, %v4266_v15  ;;  %v3256_v57 = vld [vmem:[#allocation2 + $0x460] sm:$0xff] }
 0x141   :  { %v1449_v4 = vadd.f32 %v1448_v13, %v1141_v1  ;;  %v1148_v23 = vmul.f32 %v4269_v17, %v4269_v17  ;;  %v1454_v53 = vadd.f32 %v1145_v12, %v1144_v62  ;;  %v4291_v20 = vsub.f32 %v3254_v58, %v3984_v45  ;;  %1445 = vadd.xlane.f32.xlu0 %v1444_v35  ;;  %v3257_v1 = vld [vmem:[#allocation2 + $0x468] sm:$0xff] }
 0x142   :  { %v1149_v49 = vmul.f32 %v4272_v6, %v4272_v6  ;;  %v4296_v18 = vsub.f32 %v3255_v33, %v3984_v45  ;;  %v4299_v15 = vsub.f32 %v3256_v57, %v3984_v45  ;;  %v4302_v13 = vsub.f32 %v3257_v1, %v3984_v45  ;;  %v3258_v6 = vld [vmem:[#allocation2 + $0x470] sm:$0xff]  ;;  %v3259_v33 = vld [vmem:[#allocation2 + $0x478] sm:$0xff]  ;;  %v3260_v1 = vld [vmem:[#allocation2 + $0x480] sm:$0xff] }
 0x143   :  { %6779 = vst [vmem:[#allocation126_spill] sm:$0xff] %v4291_v20  ;;  %v1450_v62 = vadd.f32 %v1449_v4, %v1142_v8  ;;  %v1455_v12 = vadd.f32 %v1454_v53, %v1146_v50  ;;  %v4304_v58 = vmul.f32 0.0013020834, %v577_v11  ;;  %v1150_v35 = vmul.f32 %v4291_v20, %v4291_v20  ;;  %v570_v4 = vpop.xlane.xlu0 %569 }
 0x144   :  { %6780 = vst [vmem:[#allocation127_spill] sm:$0xff] %v4296_v18  ;;  %6781 = vst [vmem:[#allocation128_spill] sm:$0xff] %v4299_v15  ;;  %v4309_v17 = vsub.f32 %v3258_v6, %v3984_v45  ;;  %v4312_v38 = vsub.f32 %v3259_v33, %v3984_v45  ;;  %v1151_v57 = vmul.f32 %v4296_v18, %v4296_v18  ;;  %v3262_v33 = vld [vmem:[#allocation2 + $0x490] sm:$0xff] }
 0x145   :  { %6782 = vst [vmem:[#allocation129_spill] sm:$0xff] %v4302_v13  ;;  %v1152_v8 = vmul.f32 %v4299_v15, %v4299_v15  ;;  %v1451_v50 = vadd.f32 %v1450_v62, %v1143_v55  ;;  %v1456_v11 = vadd.f32 %v1455_v12, %v1147_v0  ;;  %v1153_v53 = vmul.f32 %v4302_v13, %v4302_v13  ;;  %v3263_v15 = vld [vmem:[#allocation2 + $0x498] sm:$0xff]  ;;  %v3264_v62 = vld [vmem:[#allocation2 + $0x4a0] sm:$0xff]  ;;  %v3273_v13 = vld [vmem:[#allocation2 + $0x4e8] sm:$0xff] }
 0x146   :  { %6783 = vst [vmem:[#allocation130_spill] sm:$0xff] %v4309_v17  ;;  %6784 = vst [vmem:[#allocation131_spill] sm:$0xff] %v4312_v38  ;;  %v4321_v6 = vsub.f32 %v3260_v1, %v4084_v59  ;;  %v1461_v20 = vadd.f32 %v1151_v57, %v1150_v35  ;;  %v4324_v45 = vsub.f32 %v3261_v46, %v4084_v59  ;;  %v3265_v1 = vld [vmem:[#allocation2 + $0x4a8] sm:$0xff]  ;;  %v4340_v57 = vmul.f32 0.0013020834, %v570_v4 }
 0x147   :  { %v4327_v18 = vsub.f32 %v3262_v33, %v4084_v59  ;;  %v4330_v55 = vsub.f32 %v3263_v15, %v4084_v59  ;;  %1452 = vadd.xlane.f32.xlu1 %v1451_v50  ;;  %v1457_v0 = vadd.f32 %v1456_v11, %v1148_v23  ;;  %v4333_v12 = vsub.f32 %v3264_v62, %v4084_v59 }
 0x148   :  { %6785 = vst [vmem:[#allocation132_spill] sm:$0xff] %v4321_v6  ;;  %6786 = vst [vmem:[#allocation133_spill] sm:$0xff] %v4324_v45  ;;  %v4336_v35 = vsub.f32 %v3265_v1, %v4084_v59  ;;  %v1156_v46 = vmul.f32 %v4321_v6, %v4321_v6  ;;  %v1462_v33 = vadd.f32 %v1461_v20, %v1152_v8  ;;  %v591_v1 = vpop.xlane.xlu1 %590 }
 0x149   :  { %6787 = vst [vmem:[#allocation134_spill] sm:$0xff] %v4327_v18  ;;  %6788 = vst [vmem:[#allocation135_spill] sm:$0xff] %v4330_v55  ;;  %v1157_v15 = vmul.f32 %v4324_v45, %v4324_v45  ;;  %v1158_v23 = vmul.f32 %v4327_v18, %v4327_v18  ;;  %v1458_v50 = vadd.f32 %v1457_v0, %v1149_v49  ;;  %v3266_v45 = vld [vmem:[#allocation2 + $0x4b0] sm:$0xff]  ;;  %v3267_v0 = vld [vmem:[#allocation2 + $0x4b8] sm:$0xff] }
 0x14a   :  { %6789 = vst [vmem:[#allocation136_spill] sm:$0xff] %v4333_v12  ;;  %6790 = vst [vmem:[#allocation137_spill] sm:$0xff] %v4336_v35  ;;  %v1154_v11 = vmul.f32 %v4309_v17, %v4309_v17  ;;  %v1155_v59 = vmul.f32 %v4312_v38, %v4312_v38  ;;  %v1159_v62 = vmul.f32 %v4330_v55, %v4330_v55  ;;  %v3268_v38 = vld [vmem:[#allocation2 + $0x4c0] sm:$0xff] }
 0x14b   :  { %v1463_v4 = vadd.f32 %v1462_v33, %v1153_v53  ;;  %v1160_v20 = vmul.f32 %v4333_v12, %v4333_v12  ;;  %v1468_v8 = vadd.f32 %v1157_v15, %v1156_v46  ;;  %v4355_v6 = vsub.f32 %v3266_v45, %v4048_v42  ;;  %1459 = vadd.xlane.f32.xlu0 %v1458_v50  ;;  %v3269_v53 = vld [vmem:[#allocation2 + $0x4c8] sm:$0xff] }
 0x14c   :  { %v1161_v49 = vmul.f32 %v4336_v35, %v4336_v35  ;;  %v4360_v18 = vsub.f32 %v3267_v0, %v4048_v42  ;;  %v4363_v55 = vsub.f32 %v3268_v38, %v4048_v42  ;;  %v4366_v33 = vsub.f32 %v3269_v53, %v4048_v42  ;;  %v3270_v35 = vld [vmem:[#allocation2 + $0x4d0] sm:$0xff]  ;;  %v3271_v0 = vld [vmem:[#allocation2 + $0x4d8] sm:$0xff]  ;;  %v3272_v53 = vld [vmem:[#allocation2 + $0x4e0] sm:$0xff] }
 0x14d   :  { %6791 = vst [vmem:[#allocation138_spill] sm:$0xff] %v4355_v6  ;;  %v1464_v46 = vadd.f32 %v1463_v4, %v1154_v11  ;;  %v1469_v15 = vadd.f32 %v1468_v8, %v1158_v23  ;;  %v4368_v45 = vmul.f32 0.0013020834, %v591_v1  ;;  %v1162_v50 = vmul.f32 %v4355_v6, %v4355_v6  ;;  %v584_v4 = vpop.xlane.xlu0 %583 }
 0x14e   :  { %6792 = vst [vmem:[#allocation139_spill] sm:$0xff] %v4360_v18  ;;  %6793 = vst [vmem:[#allocation140_spill] sm:$0xff] %v4363_v55  ;;  %v4373_v12 = vsub.f32 %v3270_v35, %v4048_v42  ;;  %v4376_v17 = vsub.f32 %v3271_v0, %v4048_v42  ;;  %v1163_v38 = vmul.f32 %v4360_v18, %v4360_v18  ;;  %v3274_v0 = vld [vmem:[#allocation2 + $0x4f0] sm:$0xff] }
 0x14f   :  { %6794 = vst [vmem:[#allocation141_spill] sm:$0xff] %v4366_v33  ;;  %v1164_v11 = vmul.f32 %v4363_v55, %v4363_v55  ;;  %v1465_v23 = vadd.f32 %v1464_v46, %v1155_v59  ;;  %v1470_v1 = vadd.f32 %v1469_v15, %v1159_v62  ;;  %v1165_v8 = vmul.f32 %v4366_v33, %v4366_v33  ;;  %v3275_v55 = vld [vmem:[#allocation2 + $0x4f8] sm:$0xff]  ;;  %v3276_v46 = vld [vmem:[#allocation2 + $0x500] sm:$0xff]  ;;  %v3285_v33 = vld [vmem:[#allocation2 + $0x548] sm:$0xff] }
 0x150   :  { %6795 = vst [vmem:[#allocation142_spill] sm:$0xff] %v4373_v12  ;;  %6796 = vst [vmem:[#allocation143_spill] sm:$0xff] %v4376_v17  ;;  %v4385_v35 = vsub.f32 %v3272_v53, %v4148_v25  ;;  %v1475_v6 = vadd.f32 %v1163_v38, %v1162_v50  ;;  %v4388_v42 = vsub.f32 %v3273_v13, %v4148_v25  ;;  %v3277_v53 = vld [vmem:[#allocation2 + $0x508] sm:$0xff]  ;;  %v4404_v38 = vmul.f32 0.0013020834, %v584_v4 }
 0x151   :  { %v4391_v18 = vsub.f32 %v3274_v0, %v4148_v25  ;;  %v4394_v59 = vsub.f32 %v3275_v55, %v4148_v25  ;;  %1466 = vadd.xlane.f32.xlu1 %v1465_v23  ;;  %v1471_v62 = vadd.f32 %v1470_v1, %v1160_v20  ;;  %v4397_v15 = vsub.f32 %v3276_v46, %v4148_v25 }
 0x152   :  { %6797 = vst [vmem:[#allocation144_spill] sm:$0xff] %v4385_v35  ;;  %6798 = vst [vmem:[#allocation145_spill] sm:$0xff] %v4388_v42  ;;  %v4400_v50 = vsub.f32 %v3277_v53, %v4148_v25  ;;  %v1168_v13 = vmul.f32 %v4385_v35, %v4385_v35  ;;  %v1476_v0 = vadd.f32 %v1475_v6, %v1164_v11  ;;  %v605_v53 = vpop.xlane.xlu1 %604 }
 0x153   :  { %6799 = vst [vmem:[#allocation146_spill] sm:$0xff] %v4391_v18  ;;  %6800 = vst [vmem:[#allocation147_spill] sm:$0xff] %v4394_v59  ;;  %v1169_v55 = vmul.f32 %v4388_v42, %v4388_v42  ;;  %v1170_v20 = vmul.f32 %v4391_v18, %v4391_v18  ;;  %v1472_v23 = vadd.f32 %v1471_v62, %v1161_v49  ;;  %v3278_v42 = vld [vmem:[#allocation2 + $0x510] sm:$0xff]  ;;  %v3279_v62 = vld [vmem:[#allocation2 + $0x518] sm:$0xff] }
 0x154   :  { %6801 = vst [vmem:[#allocation148_spill] sm:$0xff] %v4397_v15  ;;  %6802 = vst [vmem:[#allocation149_spill] sm:$0xff] %v4400_v50  ;;  %v1166_v1 = vmul.f32 %v4373_v12, %v4373_v12  ;;  %v1167_v25 = vmul.f32 %v4376_v17, %v4376_v17  ;;  %v1171_v46 = vmul.f32 %v4394_v59, %v4394_v59  ;;  %v3280_v17 = vld [vmem:[#allocation2 + $0x520] sm:$0xff] }
 0x155   :  { %v1477_v4 = vadd.f32 %v1476_v0, %v1165_v8  ;;  %v1172_v6 = vmul.f32 %v4397_v15, %v4397_v15  ;;  %v1482_v11 = vadd.f32 %v1169_v55, %v1168_v13  ;;  %v4419_v35 = vsub.f32 %v3278_v42, %v4112_v29  ;;  %1473 = vadd.xlane.f32.xlu0 %v1472_v23  ;;  %v3281_v8 = vld [vmem:[#allocation2 + $0x528] sm:$0xff] }
 0x156   :  { %v1173_v49 = vmul.f32 %v4400_v50, %v4400_v50  ;;  %v4424_v18 = vsub.f32 %v3279_v62, %v4112_v29  ;;  %v4427_v59 = vsub.f32 %v3280_v17, %v4112_v29  ;;  %v4430_v0 = vsub.f32 %v3281_v8, %v4112_v29  ;;  %v3282_v50 = vld [vmem:[#allocation2 + $0x530] sm:$0xff]  ;;  %v3283_v62 = vld [vmem:[#allocation2 + $0x538] sm:$0xff]  ;;  %v3284_v8 = vld [vmem:[#allocation2 + $0x540] sm:$0xff] }
 0x157   :  { %6803 = vst [vmem:[#allocation150_spill] sm:$0xff] %v4419_v35  ;;  %v1478_v13 = vadd.f32 %v1477_v4, %v1166_v1  ;;  %v1483_v55 = vadd.f32 %v1482_v11, %v1170_v20  ;;  %v4432_v42 = vmul.f32 0.0013020834, %v605_v53  ;;  %v1174_v23 = vmul.f32 %v4419_v35, %v4419_v35  ;;  %v598_v4 = vpop.xlane.xlu0 %597 }
 0x158   :  { %6804 = vst [vmem:[#allocation151_spill] sm:$0xff] %v4424_v18  ;;  %6805 = vst [vmem:[#allocation152_spill] sm:$0xff] %v4427_v59  ;;  %v4437_v15 = vsub.f32 %v3282_v50, %v4112_v29  ;;  %v4440_v12 = vsub.f32 %v3283_v62, %v4112_v29  ;;  %v1175_v17 = vmul.f32 %v4424_v18, %v4424_v18  ;;  %v3286_v62 = vld [vmem:[#allocation2 + $0x550] sm:$0xff] }
 0x159   :  { %6806 = vst [vmem:[#allocation153_spill] sm:$0xff] %v4430_v0  ;;  %v1176_v1 = vmul.f32 %v4427_v59, %v4427_v59  ;;  %v1479_v20 = vadd.f32 %v1478_v13, %v1167_v25  ;;  %v1484_v53 = vadd.f32 %v1483_v55, %v1171_v46  ;;  %v1177_v11 = vmul.f32 %v4430_v0, %v4430_v0  ;;  %v3287_v59 = vld [vmem:[#allocation2 + $0x558] sm:$0xff]  ;;  %v3288_v13 = vld [vmem:[#allocation2 + $0x560] sm:$0xff]  ;;  %v3297_v0 = vld [vmem:[#allocation2 + $0x5a8] sm:$0xff] }
 0x15a   :  { %6807 = vst [vmem:[#allocation154_spill] sm:$0xff] %v4437_v15  ;;  %6808 = vst [vmem:[#allocation155_spill] sm:$0xff] %v4440_v12  ;;  %v4449_v50 = vsub.f32 %v3284_v8, %v4212_v7  ;;  %v1489_v35 = vadd.f32 %v1175_v17, %v1174_v23  ;;  %v4452_v29 = vsub.f32 %v3285_v33, %v4212_v7  ;;  %v3289_v8 = vld [vmem:[#allocation2 + $0x568] sm:$0xff]  ;;  %v4468_v17 = vmul.f32 0.0013020834, %v598_v4 }
 0x15b   :  { %v4455_v18 = vsub.f32 %v3286_v62, %v4212_v7  ;;  %v4458_v25 = vsub.f32 %v3287_v59, %v4212_v7  ;;  %1480 = vadd.xlane.f32.xlu1 %v1479_v20  ;;  %v1485_v46 = vadd.f32 %v1484_v53, %v1172_v6  ;;  %v4461_v55 = vsub.f32 %v3288_v13, %v4212_v7 }
 0x15c   :  { %6809 = vst [vmem:[#allocation156_spill] sm:$0xff] %v4449_v50  ;;  %6810 = vst [vmem:[#allocation157_spill] sm:$0xff] %v4452_v29  ;;  %v4464_v23 = vsub.f32 %v3289_v8, %v4212_v7  ;;  %v1180_v33 = vmul.f32 %v4449_v50, %v4449_v50  ;;  %v1490_v62 = vadd.f32 %v1489_v35, %v1176_v1  ;;  %v619_v8 = vpop.xlane.xlu1 %618 }
 0x15d   :  { %6811 = vst [vmem:[#allocation158_spill] sm:$0xff] %v4455_v18  ;;  %6812 = vst [vmem:[#allocation159_spill] sm:$0xff] %v4458_v25  ;;  %v1181_v59 = vmul.f32 %v4452_v29, %v4452_v29  ;;  %v1182_v6 = vmul.f32 %v4455_v18, %v4455_v18  ;;  %v1486_v20 = vadd.f32 %v1485_v46, %v1173_v49  ;;  %v3290_v29 = vld [vmem:[#allocation2 + $0x570] sm:$0xff]  ;;  %v3291_v46 = vld [vmem:[#allocation2 + $0x578] sm:$0xff] }
 0x15e   :  { %6813 = vst [vmem:[#allocation160_spill] sm:$0xff] %v4461_v55  ;;  %6814 = vst [vmem:[#allocation161_spill] sm:$0xff] %v4464_v23  ;;  %v1178_v53 = vmul.f32 %v4437_v15, %v4437_v15  ;;  %v1179_v7 = vmul.f32 %v4440_v12, %v4440_v12  ;;  %v1183_v13 = vmul.f32 %v4458_v25, %v4458_v25  ;;  %v3292_v12 = vld [vmem:[#allocation2 + $0x580] sm:$0xff] }
 0x15f   :  { %v1491_v4 = vadd.f32 %v1490_v62, %v1177_v11  ;;  %v1184_v35 = vmul.f32 %v4461_v55, %v4461_v55  ;;  %v1496_v1 = vadd.f32 %v1181_v59, %v1180_v33  ;;  %v4483_v50 = vsub.f32 %v3290_v29, %v4176_v44  ;;  %1487 = vadd.xlane.f32.xlu0 %v1486_v20  ;;  %v3293_v11 = vld [vmem:[#allocation2 + $0x588] sm:$0xff] }
 0x160   :  { %v1185_v49 = vmul.f32 %v4464_v23, %v4464_v23  ;;  %v4488_v18 = vsub.f32 %v3291_v46, %v4176_v44  ;;  %v4491_v25 = vsub.f32 %v3292_v12, %v4176_v44  ;;  %v4494_v62 = vsub.f32 %v3293_v11, %v4176_v44  ;;  %v3294_v23 = vld [vmem:[#allocation2 + $0x590] sm:$0xff]  ;;  %v3295_v46 = vld [vmem:[#allocation2 + $0x598] sm:$0xff]  ;;  %v3296_v11 = vld [vmem:[#allocation2 + $0x5a0] sm:$0xff] }
 0x161   :  { %6815 = vst [vmem:[#allocation162_spill] sm:$0xff] %v4483_v50  ;;  %v1492_v33 = vadd.f32 %v1491_v4, %v1178_v53  ;;  %v1497_v59 = vadd.f32 %v1496_v1, %v1182_v6  ;;  %v4496_v29 = vmul.f32 0.0013020834, %v619_v8  ;;  %v1186_v20 = vmul.f32 %v4483_v50, %v4483_v50  ;;  %v612_v4 = vpop.xlane.xlu0 %611 }
 0x162   :  { %6816 = vst [vmem:[#allocation163_spill] sm:$0xff] %v4488_v18  ;;  %6817 = vst [vmem:[#allocation164_spill] sm:$0xff] %v4491_v25  ;;  %v4501_v55 = vsub.f32 %v3294_v23, %v4176_v44  ;;  %v4504_v15 = vsub.f32 %v3295_v46, %v4176_v44  ;;  %v1187_v12 = vmul.f32 %v4488_v18, %v4488_v18  ;;  %v3298_v46 = vld [vmem:[#allocation2 + $0x5b0] sm:$0xff] }
 0x163   :  { %6818 = vst [vmem:[#allocation165_spill] sm:$0xff] %v4494_v62  ;;  %v1188_v53 = vmul.f32 %v4491_v25, %v4491_v25  ;;  %v1493_v6 = vadd.f32 %v1492_v33, %v1179_v7  ;;  %v1498_v8 = vadd.f32 %v1497_v59, %v1183_v13  ;;  %v1189_v1 = vmul.f32 %v4494_v62, %v4494_v62  ;;  %v3299_v25 = vld [vmem:[#allocation2 + $0x5b8] sm:$0xff]  ;;  %v3300_v33 = vld [vmem:[#allocation2 + $0x5c0] sm:$0xff]  ;;  %v3309_v62 = vld [vmem:[#allocation2 + $0x608] sm:$0xff] }
 0x164   :  { %6819 = vst [vmem:[#allocation166_spill] sm:$0xff] %v4501_v55  ;;  %6820 = vst [vmem:[#allocation167_spill] sm:$0xff] %v4504_v15  ;;  %v4513_v23 = vsub.f32 %v3296_v11, %v4276_v61  ;;  %v1503_v50 = vadd.f32 %v1187_v12, %v1186_v20  ;;  %v4516_v44 = vsub.f32 %v3297_v0, %v4276_v61  ;;  %v3301_v11 = vld [vmem:[#allocation2 + $0x5c8] sm:$0xff]  ;;  %v4532_v12 = vmul.f32 0.0013020834, %v612_v4 }
 0x165   :  { %v4519_v18 = vsub.f32 %v3298_v46, %v4276_v61  ;;  %v4522_v7 = vsub.f32 %v3299_v25, %v4276_v61  ;;  %1494 = vadd.xlane.f32.xlu1 %v1493_v6  ;;  %v1499_v13 = vadd.f32 %v1498_v8, %v1184_v35  ;;  %v4525_v59 = vsub.f32 %v3300_v33, %v4276_v61 }
 0x166   :  { %6821 = vst [vmem:[#allocation168_spill] sm:$0xff] %v4513_v23  ;;  %6822 = vst [vmem:[#allocation169_spill] sm:$0xff] %v4516_v44  ;;  %v4528_v20 = vsub.f32 %v3301_v11, %v4276_v61  ;;  %v1192_v0 = vmul.f32 %v4513_v23, %v4513_v23  ;;  %v1504_v46 = vadd.f32 %v1503_v50, %v1188_v53  ;;  %v633_v11 = vpop.xlane.xlu1 %632 }
 0x167   :  { %6823 = vst [vmem:[#allocation170_spill] sm:$0xff] %v4519_v18  ;;  %6824 = vst [vmem:[#allocation171_spill] sm:$0xff] %v4522_v7  ;;  %v1193_v25 = vmul.f32 %v4516_v44, %v4516_v44  ;;  %v1194_v35 = vmul.f32 %v4519_v18, %v4519_v18  ;;  %v1500_v6 = vadd.f32 %v1499_v13, %v1185_v49  ;;  %v3302_v44 = vld [vmem:[#allocation2 + $0x5d0] sm:$0xff]  ;;  %v3303_v13 = vld [vmem:[#allocation2 + $0x5d8] sm:$0xff] }
 0x168   :  { %6825 = vst [vmem:[#allocation172_spill] sm:$0xff] %v4525_v59  ;;  %6826 = vst [vmem:[#allocation173_spill] sm:$0xff] %v4528_v20  ;;  %v1190_v8 = vmul.f32 %v4501_v55, %v4501_v55  ;;  %v1191_v61 = vmul.f32 %v4504_v15, %v4504_v15  ;;  %v1195_v33 = vmul.f32 %v4522_v7, %v4522_v7  ;;  %v3304_v15 = vld [vmem:[#allocation2 + $0x5e0] sm:$0xff] }
 0x169   :  { %v1505_v4 = vadd.f32 %v1504_v46, %v1189_v1  ;;  %v1196_v50 = vmul.f32 %v4525_v59, %v4525_v59  ;;  %v1510_v53 = vadd.f32 %v1193_v25, %v1192_v0  ;;  %v4547_v23 = vsub.f32 %v3302_v44, %v4240_v54  ;;  %1501 = vadd.xlane.f32.xlu0 %v1500_v6  ;;  %v3305_v1 = vld [vmem:[#allocation2 + $0x5e8] sm:$0xff] }
 0x16a   :  { %v1197_v49 = vmul.f32 %v4528_v20, %v4528_v20  ;;  %v4552_v18 = vsub.f32 %v3303_v13, %v4240_v54  ;;  %v4555_v7 = vsub.f32 %v3304_v15, %v4240_v54  ;;  %v4558_v46 = vsub.f32 %v3305_v1, %v4240_v54  ;;  %v3306_v20 = vld [vmem:[#allocation2 + $0x5f0] sm:$0xff]  ;;  %v3307_v13 = vld [vmem:[#allocation2 + $0x5f8] sm:$0xff]  ;;  %v3308_v1 = vld [vmem:[#allocation2 + $0x600] sm:$0xff] }
 0x16b   :  { %6827 = vst [vmem:[#allocation174_spill] sm:$0xff] %v4547_v23  ;;  %v1506_v0 = vadd.f32 %v1505_v4, %v1190_v8  ;;  %v1511_v25 = vadd.f32 %v1510_v53, %v1194_v35  ;;  %v4560_v44 = vmul.f32 0.0013020834, %v633_v11  ;;  %v1198_v6 = vmul.f32 %v4547_v23, %v4547_v23  ;;  %v626_v4 = vpop.xlane.xlu0 %625 }
 0x16c   :  { %6828 = vst [vmem:[#allocation175_spill] sm:$0xff] %v4552_v18  ;;  %6829 = vst [vmem:[#allocation176_spill] sm:$0xff] %v4555_v7  ;;  %v4565_v59 = vsub.f32 %v3306_v20, %v4240_v54  ;;  %v4568_v55 = vsub.f32 %v3307_v13, %v4240_v54  ;;  %v1199_v15 = vmul.f32 %v4552_v18, %v4552_v18  ;;  %v3310_v13 = vld [vmem:[#allocation2 + $0x610] sm:$0xff] }
 0x16d   :  { %6830 = vst [vmem:[#allocation177_spill] sm:$0xff] %v4558_v46  ;;  %v1200_v8 = vmul.f32 %v4555_v7, %v4555_v7  ;;  %v1507_v35 = vadd.f32 %v1506_v0, %v1191_v61  ;;  %v1512_v11 = vadd.f32 %v1511_v25, %v1195_v33  ;;  %v1201_v53 = vmul.f32 %v4558_v46, %v4558_v46  ;;  %v3311_v7 = vld [vmem:[#allocation2 + $0x618] sm:$0xff]  ;;  %v3312_v0 = vld [vmem:[#allocation2 + $0x620] sm:$0xff]  ;;  %v3321_v46 = vld [vmem:[#allocation2 + $0x668] sm:$0xff] }
 0x16e   :  { %6831 = vst [vmem:[#allocation178_spill] sm:$0xff] %v4565_v59  ;;  %6832 = vst [vmem:[#allocation179_spill] sm:$0xff] %v4568_v55  ;;  %v4577_v20 = vsub.f32 %v3308_v1, %v4340_v57  ;;  %v1517_v23 = vadd.f32 %v1199_v15, %v1198_v6  ;;  %v4580_v54 = vsub.f32 %v3309_v62, %v4340_v57  ;;  %v3313_v1 = vld [vmem:[#allocation2 + $0x628] sm:$0xff]  ;;  %v4596_v15 = vmul.f32 0.0013020834, %v626_v4 }
 0x16f   :  { %v4583_v18 = vsub.f32 %v3310_v13, %v4340_v57  ;;  %v4586_v61 = vsub.f32 %v3311_v7, %v4340_v57  ;;  %1508 = vadd.xlane.f32.xlu1 %v1507_v35  ;;  %v1513_v33 = vadd.f32 %v1512_v11, %v1196_v50  ;;  %v4589_v25 = vsub.f32 %v3312_v0, %v4340_v57 }
 0x170   :  { %6833 = vst [vmem:[#allocation180_spill] sm:$0xff] %v4577_v20  ;;  %6834 = vst [vmem:[#allocation181_spill] sm:$0xff] %v4580_v54  ;;  %v4592_v6 = vsub.f32 %v3313_v1, %v4340_v57  ;;  %v1204_v62 = vmul.f32 %v4577_v20, %v4577_v20  ;;  %v1518_v13 = vadd.f32 %v1517_v23, %v1200_v8  ;;  %v647_v1 = vpop.xlane.xlu1 %646 }
 0x171   :  { %6835 = vst [vmem:[#allocation182_spill] sm:$0xff] %v4583_v18  ;;  %6836 = vst [vmem:[#allocation183_spill] sm:$0xff] %v4586_v61  ;;  %v1205_v7 = vmul.f32 %v4580_v54, %v4580_v54  ;;  %v1206_v50 = vmul.f32 %v4583_v18, %v4583_v18  ;;  %v1514_v35 = vadd.f32 %v1513_v33, %v1197_v49  ;;  %v3314_v54 = vld [vmem:[#allocation2 + $0x630] sm:$0xff]  ;;  %v3315_v33 = vld [vmem:[#allocation2 + $0x638] sm:$0xff] }
 0x172   :  { %6837 = vst [vmem:[#allocation184_spill] sm:$0xff] %v4589_v25  ;;  %6838 = vst [vmem:[#allocation185_spill] sm:$0xff] %v4592_v6  ;;  %v1202_v11 = vmul.f32 %v4565_v59, %v4565_v59  ;;  %v1203_v57 = vmul.f32 %v4568_v55, %v4568_v55  ;;  %v1207_v0 = vmul.f32 %v4586_v61, %v4586_v61  ;;  %v3316_v55 = vld [vmem:[#allocation2 + $0x640] sm:$0xff] }
 0x173   :  { %v1519_v4 = vadd.f32 %v1518_v13, %v1201_v53  ;;  %v1208_v23 = vmul.f32 %v4589_v25, %v4589_v25  ;;  %v1524_v8 = vadd.f32 %v1205_v7, %v1204_v62  ;;  %v4611_v20 = vsub.f32 %v3314_v54, %v4304_v58  ;;  %1515 = vadd.xlane.f32.xlu0 %v1514_v35  ;;  %v3317_v53 = vld [vmem:[#allocation2 + $0x648] sm:$0xff] }
 0x174   :  { %v1209_v49 = vmul.f32 %v4592_v6, %v4592_v6  ;;  %v4616_v18 = vsub.f32 %v3315_v33, %v4304_v58  ;;  %v4619_v61 = vsub.f32 %v3316_v55, %v4304_v58  ;;  %v4622_v13 = vsub.f32 %v3317_v53, %v4304_v58  ;;  %v3318_v6 = vld [vmem:[#allocation2 + $0x650] sm:$0xff]  ;;  %v3319_v33 = vld [vmem:[#allocation2 + $0x658] sm:$0xff]  ;;  %v3320_v53 = vld [vmem:[#allocation2 + $0x660] sm:$0xff] }
 0x175   :  { %6839 = vst [vmem:[#allocation186_spill] sm:$0xff] %v4611_v20  ;;  %v1520_v62 = vadd.f32 %v1519_v4, %v1202_v11  ;;  %v1525_v7 = vadd.f32 %v1524_v8, %v1206_v50  ;;  %v4624_v54 = vmul.f32 0.0013020834, %v647_v1  ;;  %v1210_v35 = vmul.f32 %v4611_v20, %v4611_v20  ;;  %v640_v4 = vpop.xlane.xlu0 %639 }
 0x176   :  { %6840 = vst [vmem:[#allocation187_spill] sm:$0xff] %v4616_v18  ;;  %6841 = vst [vmem:[#allocation188_spill] sm:$0xff] %v4619_v61  ;;  %v4629_v25 = vsub.f32 %v3318_v6, %v4304_v58  ;;  %v4632_v59 = vsub.f32 %v3319_v33, %v4304_v58  ;;  %v1211_v55 = vmul.f32 %v4616_v18, %v4616_v18  ;;  %v3322_v33 = vld [vmem:[#allocation2 + $0x670] sm:$0xff] }
 0x177   :  { %6842 = vst [vmem:[#allocation189_spill] sm:$0xff] %v4622_v13  ;;  %v1212_v11 = vmul.f32 %v4619_v61, %v4619_v61  ;;  %v1521_v50 = vadd.f32 %v1520_v62, %v1203_v57  ;;  %v1526_v1 = vadd.f32 %v1525_v7, %v1207_v0  ;;  %v1213_v8 = vmul.f32 %v4622_v13, %v4622_v13  ;;  %v3323_v61 = vld [vmem:[#allocation2 + $0x678] sm:$0xff]  ;;  %v3324_v62 = vld [vmem:[#allocation2 + $0x680] sm:$0xff]  ;;  %v3333_v13 = vld [vmem:[#allocation2 + $0x6c8] sm:$0xff] }
 0x178   :  { %6843 = vst [vmem:[#allocation190_spill] sm:$0xff] %v4629_v25  ;;  %6844 = vst [vmem:[#allocation191_spill] sm:$0xff] %v4632_v59  ;;  %v4641_v6 = vsub.f32 %v3320_v53, %v4404_v38  ;;  %v1531_v20 = vadd.f32 %v1211_v55, %v1210_v35  ;;  %v4644_v58 = vsub.f32 %v3321_v46, %v4404_v38  ;;  %v3325_v53 = vld [vmem:[#allocation2 + $0x688] sm:$0xff]  ;;  %v4660_v55 = vmul.f32 0.0013020834, %v640_v4 }
 0x179   :  { %v4647_v18 = vsub.f32 %v3322_v33, %v4404_v38  ;;  %v4650_v57 = vsub.f32 %v3323_v61, %v4404_v38  ;;  %1522 = vadd.xlane.f32.xlu1 %v1521_v50  ;;  %v1527_v0 = vadd.f32 %v1526_v1, %v1208_v23  ;;  %v4653_v7 = vsub.f32 %v3324_v62, %v4404_v38 }
 0x17a   :  { %6845 = vst [vmem:[#allocation192_spill] sm:$0xff] %v4641_v6  ;;  %6846 = vst [vmem:[#allocation193_spill] sm:$0xff] %v4644_v58  ;;  %v4656_v35 = vsub.f32 %v3325_v53, %v4404_v38  ;;  %v1216_v46 = vmul.f32 %v4641_v6, %v4641_v6  ;;  %v1532_v33 = vadd.f32 %v1531_v20, %v1212_v11  ;;  %v661_v53 = vpop.xlane.xlu1 %660 }
 0x17b   :  { %6847 = vst [vmem:[#allocation194_spill] sm:$0xff] %v4647_v18  ;;  %6848 = vst [vmem:[#allocation195_spill] sm:$0xff] %v4650_v57  ;;  %v1217_v61 = vmul.f32 %v4644_v58, %v4644_v58  ;;  %v1218_v23 = vmul.f32 %v4647_v18, %v4647_v18  ;;  %v1528_v50 = vadd.f32 %v1527_v0, %v1209_v49  ;;  %v3326_v58 = vld [vmem:[#allocation2 + $0x690] sm:$0xff]  ;;  %v3327_v0 = vld [vmem:[#allocation2 + $0x698] sm:$0xff] }
 0x17c   :  { %6849 = vst [vmem:[#allocation196_spill] sm:$0xff] %v4653_v7  ;;  %6850 = vst [vmem:[#allocation197_spill] sm:$0xff] %v4656_v35  ;;  %v1214_v1 = vmul.f32 %v4629_v25, %v4629_v25  ;;  %v1215_v38 = vmul.f32 %v4632_v59, %v4632_v59  ;;  %v1219_v62 = vmul.f32 %v4650_v57, %v4650_v57  ;;  %v3328_v59 = vld [vmem:[#allocation2 + $0x6a0] sm:$0xff] }
 0x17d   :  { %v1533_v4 = vadd.f32 %v1532_v33, %v1213_v8  ;;  %v1220_v20 = vmul.f32 %v4653_v7, %v4653_v7  ;;  %v1538_v11 = vadd.f32 %v1217_v61, %v1216_v46  ;;  %v4675_v6 = vsub.f32 %v3326_v58, %v4368_v45  ;;  %1529 = vadd.xlane.f32.xlu0 %v1528_v50  ;;  %v3329_v8 = vld [vmem:[#allocation2 + $0x6a8] sm:$0xff] }
 0x17e   :  { %v1221_v49 = vmul.f32 %v4656_v35, %v4656_v35  ;;  %v4680_v18 = vsub.f32 %v3327_v0, %v4368_v45  ;;  %v4683_v57 = vsub.f32 %v3328_v59, %v4368_v45  ;;  %v4686_v33 = vsub.f32 %v3329_v8, %v4368_v45  ;;  %v3330_v35 = vld [vmem:[#allocation2 + $0x6b0] sm:$0xff]  ;;  %v3331_v0 = vld [vmem:[#allocation2 + $0x6b8] sm:$0xff]  ;;  %v3332_v8 = vld [vmem:[#allocation2 + $0x6c0] sm:$0xff] }
 0x17f   :  { %6851 = vst [vmem:[#allocation198_spill] sm:$0xff] %v4675_v6  ;;  %v1534_v46 = vadd.f32 %v1533_v4, %v1214_v1  ;;  %v1539_v61 = vadd.f32 %v1538_v11, %v1218_v23  ;;  %v4688_v58 = vmul.f32 0.0013020834, %v661_v53  ;;  %v1222_v50 = vmul.f32 %v4675_v6, %v4675_v6  ;;  %v654_v4 = vpop.xlane.xlu0 %653 }
 0x180   :  { %6852 = vst [vmem:[#allocation199_spill] sm:$0xff] %v4680_v18  ;;  %6853 = vst [vmem:[#allocation200_spill] sm:$0xff] %v4683_v57  ;;  %v4693_v7 = vsub.f32 %v3330_v35, %v4368_v45  ;;  %v4696_v25 = vsub.f32 %v3331_v0, %v4368_v45  ;;  %v1223_v59 = vmul.f32 %v4680_v18, %v4680_v18  ;;  %v3334_v0 = vld [vmem:[#allocation2 + $0x6d0] sm:$0xff] }
 0x181   :  { %6854 = vst [vmem:[#allocation201_spill] sm:$0xff] %v4686_v33  ;;  %v1224_v1 = vmul.f32 %v4683_v57, %v4683_v57  ;;  %v1535_v23 = vadd.f32 %v1534_v46, %v1215_v38  ;;  %v1540_v53 = vadd.f32 %v1539_v61, %v1219_v62  ;;  %v1225_v11 = vmul.f32 %v4686_v33, %v4686_v33  ;;  %v3335_v57 = vld [vmem:[#allocation2 + $0x6d8] sm:$0xff]  ;;  %v3336_v46 = vld [vmem:[#allocation2 + $0x6e0] sm:$0xff]  ;;  %v3345_v33 = vld [vmem:[#allocation2 + $0x728] sm:$0xff] }
 0x182   :  { %6855 = vst [vmem:[#allocation202_spill] sm:$0xff] %v4693_v7  ;;  %6856 = vst [vmem:[#allocation203_spill] sm:$0xff] %v4696_v25  ;;  %v4705_v35 = vsub.f32 %v3332_v8, %v4468_v17  ;;  %v1545_v6 = vadd.f32 %v1223_v59, %v1222_v50  ;;  %v4708_v45 = vsub.f32 %v3333_v13, %v4468_v17  ;;  %v3337_v8 = vld [vmem:[#allocation2 + $0x6e8] sm:$0xff]  ;;  %v4724_v59 = vmul.f32 0.0013020834, %v654_v4  ;;  %v675_v4 = vpop.xlane.xlu1 %674 }
 0x183   :  { %v4711_v18 = vsub.f32 %v3334_v0, %v4468_v17  ;;  %v4714_v38 = vsub.f32 %v3335_v57, %v4468_v17  ;;  %1536 = vadd.xlane.f32.xlu1 %v1535_v23  ;;  %v1541_v62 = vadd.f32 %v1540_v53, %v1220_v20  ;;  %v4717_v61 = vsub.f32 %v3336_v46, %v4468_v17 }
 0x184   :  { %6857 = vst [vmem:[#allocation204_spill] sm:$0xff] %v4705_v35  ;;  %6858 = vst [vmem:[#allocation205_spill] sm:$0xff] %v4708_v45  ;;  %v4720_v50 = vsub.f32 %v3337_v8, %v4468_v17  ;;  %v1228_v13 = vmul.f32 %v4705_v35, %v4705_v35  ;;  %v1546_v0 = vadd.f32 %v1545_v6, %v1224_v1 }
 0x185   :  { %6859 = vst [vmem:[#allocation206_spill] sm:$0xff] %v4711_v18  ;;  %6860 = vst [vmem:[#allocation207_spill] sm:$0xff] %v4714_v38  ;;  %v1229_v57 = vmul.f32 %v4708_v45, %v4708_v45  ;;  %v1230_v20 = vmul.f32 %v4711_v18, %v4711_v18  ;;  %v1542_v23 = vadd.f32 %v1541_v62, %v1221_v49  ;;  %v3338_v45 = vld [vmem:[#allocation2 + $0x6f0] sm:$0xff]  ;;  %v3339_v62 = vld [vmem:[#allocation2 + $0x6f8] sm:$0xff] }
 0x186   :  { %6861 = vst [vmem:[#allocation208_spill] sm:$0xff] %v4717_v61  ;;  %6862 = vst [vmem:[#allocation209_spill] sm:$0xff] %v4720_v50  ;;  %v1226_v53 = vmul.f32 %v4693_v7, %v4693_v7  ;;  %v1227_v17 = vmul.f32 %v4696_v25, %v4696_v25  ;;  %v1231_v46 = vmul.f32 %v4714_v38, %v4714_v38  ;;  %v3340_v25 = vld [vmem:[#allocation2 + $0x700] sm:$0xff]  ;;  %v4757_v38 = vmul.f32 0.0013020834, %v675_v4  ;;  %v3343_v7 = vld [vmem:[#allocation2 + $0x718] sm:$0xff] }
 0x187   :  { %v1547_v8 = vadd.f32 %v1546_v0, %v1225_v11  ;;  %v1232_v6 = vmul.f32 %v4717_v61, %v4717_v61  ;;  %v1552_v1 = vadd.f32 %v1229_v57, %v1228_v13  ;;  %v4739_v35 = vsub.f32 %v3338_v45, %v4432_v42  ;;  %1543 = vadd.xlane.f32.xlu0 %v1542_v23  ;;  %v3341_v0 = vld [vmem:[#allocation2 + $0x708] sm:$0xff]  ;;  %v3342_v45 = vld [vmem:[#allocation2 + $0x710] sm:$0xff] }
 0x188   :  { %v1233_v49 = vmul.f32 %v4720_v50, %v4720_v50  ;;  %v4744_v18 = vsub.f32 %v3339_v62, %v4432_v42  ;;  %v4747_v11 = vsub.f32 %v3340_v25, %v4432_v42  ;;  %v4750_v13 = vsub.f32 %v3341_v0, %v4432_v42  ;;  %v668_v62 = vpop.xlane.xlu0 %667 }
 0x189   :  { %6863 = vst [vmem:[#allocation210_spill] sm:$0xff] %v4739_v35  ;;  %v1548_v57 = vadd.f32 %v1547_v8, %v1226_v53  ;;  %v1553_v61 = vadd.f32 %v1552_v1, %v1230_v20  ;;  %v4753_v23 = vsub.f32 %v3342_v45, %v4432_v42  ;;  %v1234_v50 = vmul.f32 %v4739_v35, %v4739_v35  ;;  %v3344_v45 = vld [vmem:[#allocation2 + $0x720] sm:$0xff] }
 0x18a   :  { %6864 = vst [vmem:[#allocation211_spill] sm:$0xff] %v4744_v18  ;;  %6865 = vst [vmem:[#allocation212_spill] sm:$0xff] %v4747_v11  ;;  %v4760_v25 = vsub.f32 %v3343_v7, %v4432_v42  ;;  %v1235_v0 = vmul.f32 %v4744_v18, %v4744_v18  ;;  %v1236_v20 = vmul.f32 %v4747_v11, %v4747_v11  ;;  %v3346_v7 = vld [vmem:[#allocation2 + $0x730] sm:$0xff] }
 0x18b   :  { %6866 = vst [vmem:[#allocation213_spill] sm:$0xff] %v4750_v13  ;;  %6867 = vst [vmem:[#allocation214_spill] sm:$0xff] %v4753_v23  ;;  %v1549_v53 = vadd.f32 %v1548_v57, %v1227_v17  ;;  %v1554_v8 = vadd.f32 %v1553_v61, %v1231_v46  ;;  %v1237_v1 = vmul.f32 %v4750_v13, %v4750_v13  ;;  %v4780_v46 = vmul.f32 0.0013020834, %v668_v62  ;;  %v3371_v13 = vld [vmem:[#allocation2 + $0x7f8] sm:$0xff] }
 0x18c   :  { %6868 = vst [vmem:[#allocation215_spill] sm:$0xff] %v4760_v25  ;;  %v4769_v4 = vsub.f32 %v3344_v45, %v4532_v12  ;;  %v1559_v35 = vadd.f32 %v1235_v0, %v1234_v50  ;;  %v4772_v42 = vsub.f32 %v3345_v33, %v4532_v12  ;;  %v4775_v18 = vsub.f32 %v3346_v7, %v4532_v12  ;;  %v3349_v7 = vld [vmem:[#allocation2 + $0x750] sm:$0xff] }
 0x18d   :  { %v4778_v17 = vsub.f32 %v3347_v60, %v4532_v12  ;;  %1550 = vadd.xlane.f32.xlu1 %v1549_v53  ;;  %v1555_v61 = vadd.f32 %v1554_v8, %v1232_v6  ;;  %v1238_v57 = vmul.f32 %v4753_v23, %v4753_v23  ;;  %v1239_v33 = vmul.f32 %v4760_v25, %v4760_v25  ;;  %v3348_v6 = vld [vmem:[#allocation2 + $0x740] sm:$0xff] }
 0x18e   :  { %6869 = vst [vmem:[#allocation216_spill] sm:$0xff] %v4769_v4  ;;  %6870 = vst [vmem:[#allocation217_spill] sm:$0xff] %v4772_v42  ;;  %v1240_v50 = vmul.f32 %v4769_v4, %v4769_v4  ;;  %v1560_v0 = vadd.f32 %v1559_v35, %v1236_v20  ;;  %v1241_v45 = vmul.f32 %v4772_v42, %v4772_v42  ;;  %v3350_v20 = vld [vmem:[#allocation2 + $0x758] sm:$0xff]  ;;  %v3351_v23 = vld [vmem:[#allocation2 + $0x760] sm:$0xff] }
 0x18f   :  { %6871 = vst [vmem:[#allocation218_spill] sm:$0xff] %v4775_v18  ;;  %6872 = vst [vmem:[#allocation219_spill] sm:$0xff] %v4778_v17  ;;  %v1242_v60 = vmul.f32 %v4775_v18, %v4775_v18  ;;  %v1556_v53 = vadd.f32 %v1555_v61, %v1233_v49  ;;  %v4793_v62 = vsub.f32 %v3348_v6, %v4532_v12  ;;  %v3352_v61 = vld [vmem:[#allocation2 + $0x748] sm:$0xff] }
 0x190   :  { %v1243_v8 = vmul.f32 %v4778_v17, %v4778_v17  ;;  %v4798_v4 = vsub.f32 %v3349_v7, %v4496_v29  ;;  %v1561_v25 = vadd.f32 %v1560_v0, %v1237_v1  ;;  %v1566_v35 = vadd.f32 %v1241_v45, %v1240_v50  ;;  %v3353_v17 = vld [vmem:[#allocation2 + $0x768] sm:$0xff]  ;;  %v3354_v7 = vld [vmem:[#allocation2 + $0x770] sm:$0xff] }
 0x191   :  { %6873 = vst [vmem:[#allocation220_spill] sm:$0xff] %v4793_v62  ;;  %v4801_v42 = vsub.f32 %v3350_v20, %v4496_v29  ;;  %v4804_v49 = vsub.f32 %v3351_v23, %v4496_v29  ;;  %1557 = vadd.xlane.f32.xlu0 %v1556_v53  ;;  %v4807_v6 = vsub.f32 %v3352_v61, %v4532_v12 }
 0x192   :  { %6874 = vst [vmem:[#allocation221_spill] sm:$0xff] %v4798_v4  ;;  %v4810_v18 = vsub.f32 %v3353_v17, %v4496_v29  ;;  %v4813_v1 = vsub.f32 %v3354_v7, %v4496_v29  ;;  %v1246_v50 = vmul.f32 %v4798_v4, %v4798_v4  ;;  %v1562_v0 = vadd.f32 %v1561_v25, %v1238_v57  ;;  %v3355_v17 = vld [vmem:[#allocation2 + $0x778] sm:$0xff]  ;;  %v3356_v7 = vld [vmem:[#allocation2 + $0x780] sm:$0xff]  ;;  %v4834_v4 = vpop.xlane.xlu0 %1305 }
 0x193   :  { %6875 = vst [vmem:[#allocation222_spill] sm:$0xff] %v4801_v42  ;;  %6876 = vst [vmem:[#allocation223_spill] sm:$0xff] %v4804_v49  ;;  %v1567_v45 = vadd.f32 %v1566_v35, %v1242_v60  ;;  %v1247_v23 = vmul.f32 %v4801_v42, %v4801_v42  ;;  %v1248_v12 = vmul.f32 %v4804_v49, %v4804_v49  ;;  %v3357_v42 = vld [vmem:[#allocation2 + $0x788] sm:$0xff] }
 0x194   :  { %6877 = vst [vmem:[#allocation224_spill] sm:$0xff] %v4807_v6  ;;  %6878 = vst [vmem:[#allocation225_spill] sm:$0xff] %v4810_v18  ;;  %v1244_v53 = vmul.f32 %v4793_v62, %v4793_v62  ;;  %v4824_v20 = vsub.f32 %v3355_v17, %v4496_v29  ;;  %v1249_v61 = vmul.f32 %v4810_v18, %v4810_v18  ;;  %v3358_v18 = vld [vmem:[#allocation2 + $0x790] sm:$0xff] }
 0x195   :  { %6879 = vst [vmem:[#allocation226_spill] sm:$0xff] %v4813_v1  ;;  %v4829_v25 = vsub.f32 %v3356_v7, %v4596_v15  ;;  %v1563_v57 = vadd.f32 %v1562_v0, %v1239_v33  ;;  %v1568_v60 = vadd.f32 %v1567_v45, %v1243_v8  ;;  %v1573_v35 = vadd.f32 %v1247_v23, %v1246_v50  ;;  %v3359_v7 = vld [vmem:[#allocation2 + $0x798] sm:$0xff]  ;;  %v3360_v23 = vld [vmem:[#allocation2 + $0x7a0] sm:$0xff] }
 0x196   :  { %6880 = vst [vmem:[#allocation227_spill] sm:$0xff] %v4824_v20  ;;  %v4832_v49 = vsub.f32 %v3357_v42, %v4596_v15  ;;  %v1245_v29 = vmul.f32 %v4807_v6, %v4807_v6  ;;  %v1250_v17 = vmul.f32 %v4813_v1, %v4813_v1  ;;  %v4841_v62 = vsub.f32 %v3358_v18, %v4596_v15 }
 0x197   :  { %6881 = vst [vmem:[#allocation228_spill] sm:$0xff] %v4829_v25  ;;  %v4844_v33 = vsub.f32 %v3359_v7, %v4596_v15  ;;  %1564 = vadd.xlane.f32.xlu1 %v1563_v57  ;;  %v1569_v8 = vadd.f32 %v1568_v60, %v1244_v53  ;;  %v1574_v42 = vadd.f32 %v1573_v35, %v1248_v12  ;;  %v3361_v35 = vld [vmem:[#allocation2 + $0x7b0] sm:$0xff] }
 0x198   :  { %6882 = vst [vmem:[#allocation229_spill] sm:$0xff] %v4832_v49  ;;  %6883 = vst [vmem:[#allocation230_spill] sm:$0xff] %v4841_v62  ;;  %v1252_v50 = vmul.f32 %v4829_v25, %v4829_v25  ;;  %v1253_v0 = vmul.f32 %v4832_v49, %v4832_v49  ;;  %v1251_v45 = vmul.f32 %v4824_v20, %v4824_v20  ;;  %v4862_v49 = vpop.xlane.xlu1 %1312  ;;  %v3362_v20 = vld [vmem:[#allocation2 + $0x7a8] sm:$0xff] }
 0x199   :  { %6884 = vst [vmem:[#allocation231_spill] sm:$0xff] %v4844_v33  ;;  %v4853_v18 = vsub.f32 %v3360_v23, %v4596_v15  ;;  %v1254_v7 = vmul.f32 %v4841_v62, %v4841_v62  ;;  %v1255_v53 = vmul.f32 %v4844_v33, %v4844_v33  ;;  %v1570_v12 = vadd.f32 %v1569_v8, %v1245_v29  ;;  %v3363_v23 = vld [vmem:[#allocation2 + $0x7b8] sm:$0xff]  ;;  %v3364_v62 = vld [vmem:[#allocation2 + $0x7c0] sm:$0xff] }
 0x19a   :  { %v1575_v57 = vadd.f32 %v1574_v42, %v1249_v61  ;;  %v1580_v60 = vadd.f32 %v1253_v0, %v1252_v50  ;;  %v4860_v25 = vsub.f32 %v3361_v35, %v4560_v44  ;;  %v4865_v1 = vsub.f32 %v3362_v20, %v4596_v15  ;;  %v3365_v61 = vld [vmem:[#allocation2 + $0x7c8] sm:$0xff]  ;;  %v3366_v50 = vld [vmem:[#allocation2 + $0x7d0] sm:$0xff]  ;;  %v4881_v20 = vpop.xlane.xlu0 %1319  ;;  %v3367_v35 = vld [vmem:[#allocation2 + $0x7d8] sm:$0xff] }
 0x19b   :  { %6885 = vst [vmem:[#allocation232_spill] sm:$0xff] %v4853_v18  ;;  %v4868_v6 = vsub.f32 %v3363_v23, %v4560_v44  ;;  %v4871_v33 = vsub.f32 %v3364_v62, %v4560_v44  ;;  %v4874_v29 = vsub.f32 %v3365_v61, %v4560_v44  ;;  %1571 = vadd.xlane.f32.xlu0 %v1570_v12  ;;  %v3368_v61 = vld [vmem:[#allocation2 + $0x7e0] sm:$0xff] }
 0x19c   :  { %6886 = vst [vmem:[#allocation233_spill] sm:$0xff] %v4860_v25  ;;  %6887 = vst [vmem:[#allocation234_spill] sm:$0xff] %v4865_v1  ;;  %v1576_v8 = vadd.f32 %v1575_v57, %v1250_v17  ;;  %v1581_v42 = vadd.f32 %v1580_v60, %v1254_v7  ;;  %v4877_v0 = vsub.f32 %v3366_v50, %v4560_v44 }
 0x19d   :  { %6888 = vst [vmem:[#allocation235_spill] sm:$0xff] %v4868_v6  ;;  %6889 = vst [vmem:[#allocation236_spill] sm:$0xff] %v4871_v33  ;;  %v1258_v15 = vmul.f32 %v4860_v25, %v4860_v25  ;;  %v1256_v62 = vmul.f32 %v4853_v18, %v4853_v18  ;;  %v4886_v23 = vsub.f32 %v3367_v35, %v4560_v44  ;;  %v3369_v18 = vld [vmem:[#allocation2 + $0x7e8] sm:$0xff]  ;;  %v3370_v35 = vld [vmem:[#allocation2 + $0x7f0] sm:$0xff] }
 0x19e   :  { %6890 = vst [vmem:[#allocation237_spill] sm:$0xff] %v4874_v29  ;;  %6891 = vst [vmem:[#allocation238_spill] sm:$0xff] %v4877_v0  ;;  %v1259_v17 = vmul.f32 %v4868_v6, %v4868_v6  ;;  %v1260_v7 = vmul.f32 %v4871_v33, %v4871_v33  ;;  %v1577_v12 = vadd.f32 %v1576_v8, %v1251_v45 }
 0x19f   :  { %6892 = vst [vmem:[#allocation239_spill] sm:$0xff] %v4886_v23  ;;  %v1582_v57 = vadd.f32 %v1581_v42, %v1255_v53  ;;  %v1261_v60 = vmul.f32 %v4874_v29, %v4874_v29  ;;  %v4895_v50 = vsub.f32 %v3368_v61, %v4660_v55  ;;  %v4898_v44 = vsub.f32 %v3369_v18, %v4660_v55 }
 0x1a0   :  { %v1587_v25 = vadd.f32 %v1259_v17, %v1258_v15  ;;  %v4901_v6 = vsub.f32 %v3370_v35, %v4660_v55  ;;  %v4904_v45 = vsub.f32 %v3371_v13, %v4660_v55  ;;  %1578 = vadd.xlane.f32.xlu1 %v1577_v12  ;;  %v1257_v53 = vmul.f32 %v4865_v1, %v4865_v1  ;;  %v4912_v15 = vpop.xlane.xlu1 %1326  ;;  %v3378_v1 = vld [vmem:[#allocation2 + $0x830] sm:$0xff] }
 0x1a1   :  { %6893 = vst [vmem:[#allocation240_spill] sm:$0xff] %v4895_v50  ;;  %6894 = vst [vmem:[#allocation241_spill] sm:$0xff] %v4898_v44  ;;  %v1583_v8 = vadd.f32 %v1582_v57, %v1256_v62  ;;  %v1262_v42 = vmul.f32 %v4877_v0, %v4877_v0  ;;  %v1264_v18 = vmul.f32 %v4895_v50, %v4895_v50  ;;  %v3372_v62 = vld [vmem:[#allocation2 + $0x800] sm:$0xff]  ;;  %v3373_v0 = vld [vmem:[#allocation2 + $0x810] sm:$0xff] }
 0x1a2   :  { %6895 = vst [vmem:[#allocation242_spill] sm:$0xff] %v4901_v6  ;;  %6896 = vst [vmem:[#allocation243_spill] sm:$0xff] %v4904_v45  ;;  %v1263_v17 = vmul.f32 %v4886_v23, %v4886_v23  ;;  %v1588_v61 = vadd.f32 %v1587_v25, %v1260_v7  ;;  %v1265_v13 = vmul.f32 %v4898_v44, %v4898_v44  ;;  %v4928_v23 = vpop.xlane.xlu0 %1333  ;;  %v3374_v44 = vld [vmem:[#allocation2 + $0x818] sm:$0xff] }
 0x1a3   :  { %v1266_v12 = vmul.f32 %v4901_v6, %v4901_v6  ;;  %v1584_v35 = vadd.f32 %v1583_v8, %v1257_v53  ;;  %v4921_v57 = vsub.f32 %v3372_v62, %v4660_v55  ;;  %v1267_v50 = vmul.f32 %v4904_v45, %v4904_v45  ;;  %v3375_v53 = vld [vmem:[#allocation2 + $0x820] sm:$0xff]  ;;  %v3376_v62 = vld [vmem:[#allocation2 + $0x808] sm:$0xff] }
 0x1a4   :  { %v4926_v29 = vsub.f32 %v3373_v0, %v4624_v54  ;;  %v1589_v25 = vadd.f32 %v1588_v61, %v1261_v60  ;;  %v1594_v7 = vadd.f32 %v1265_v13, %v1264_v18  ;;  %v4931_v33 = vsub.f32 %v3374_v44, %v4624_v54  ;;  %v3377_v6 = vld [vmem:[#allocation2 + $0x828] sm:$0xff] }
 0x1a5   :  { %6897 = vst [vmem:[#allocation244_spill] sm:$0xff] %v4921_v57  ;;  %v4934_v8 = vsub.f32 %v3375_v53, %v4624_v54  ;;  %1585 = vadd.xlane.f32.xlu0 %v1584_v35  ;;  %v4937_v45 = vsub.f32 %v3376_v62, %v4660_v55  ;;  %v4940_v0 = vsub.f32 %v3377_v6, %v4624_v54  ;;  %v3379_v6 = vld [vmem:[#allocation2 + $0x838] sm:$0xff]  ;;  %v3380_v62 = vld [vmem:[#allocation2 + $0x840] sm:$0xff]  ;;  %v1640_v16 = vmul.f32 0.0013020834, %v4928_v23 }
 0x1a6   :  { %6898 = vst [vmem:[#allocation245_spill] sm:$0xff] %v4926_v29  ;;  %6899 = vst [vmem:[#allocation246_spill] sm:$0xff] %v4931_v33  ;;  %v4943_v60 = vsub.f32 %v3378_v1, %v4624_v54  ;;  %v1270_v44 = vmul.f32 %v4926_v29, %v4926_v29  ;;  %v1590_v18 = vadd.f32 %v1589_v25, %v1262_v42 }
 0x1a7   :  { %6900 = vst [vmem:[#allocation247_spill] sm:$0xff] %v4934_v8  ;;  %6901 = vst [vmem:[#allocation248_spill] sm:$0xff] %v4937_v45  ;;  %v1595_v61 = vadd.f32 %v1594_v7, %v1266_v12  ;;  %v1271_v13 = vmul.f32 %v4931_v33, %v4931_v33  ;;  %v1272_v55 = vmul.f32 %v4934_v8, %v4934_v8  ;;  %v4961_v12 = vpop.xlane.xlu1 %1340  ;;  %v3381_v8 = vld [vmem:[#allocation2 + $0x848] sm:$0xff] }
 0x1a8   :  { %6902 = vst [vmem:[#allocation249_spill] sm:$0xff] %v4940_v0  ;;  %6903 = vst [vmem:[#allocation250_spill] sm:$0xff] %v4943_v60  ;;  %v1268_v35 = vmul.f32 %v4921_v57, %v4921_v57  ;;  %v4954_v53 = vsub.f32 %v3379_v6, %v4624_v54  ;;  %v1273_v1 = vmul.f32 %v4940_v0, %v4940_v0  ;;  %v3382_v0 = vld [vmem:[#allocation2 + $0x850] sm:$0xff]  ;;  %v1641_v9 = vmul.f32 0.0013020834, %v4961_v12 }
 0x1a9   :  { %v4959_v42 = vsub.f32 %v3380_v62, %v4724_v59  ;;  %v1591_v25 = vadd.f32 %v1590_v18, %v1263_v17  ;;  %v1596_v7 = vadd.f32 %v1595_v61, %v1267_v50  ;;  %v1601_v33 = vadd.f32 %v1271_v13, %v1270_v44  ;;  %v3383_v62 = vld [vmem:[#allocation2 + $0x858] sm:$0xff]  ;;  %v4976_v50 = vpop.xlane.xlu0 %1347 }
 0x1aa   :  { %6904 = vst [vmem:[#allocation251_spill] sm:$0xff] %v4954_v53  ;;  %v4964_v29 = vsub.f32 %v3381_v8, %v4724_v59  ;;  %v1269_v54 = vmul.f32 %v4937_v45, %v4937_v45  ;;  %v1274_v6 = vmul.f32 %v4943_v60, %v4943_v60  ;;  %v4971_v57 = vsub.f32 %v3382_v0, %v4724_v59  ;;  %v3384_v0 = vld [vmem:[#allocation2 + $0x860] sm:$0xff]  ;;  %v3387_v60 = vld [vmem:[#allocation2 + $0x878] sm:$0xff] }
 0x1ab   :  { %6905 = vst [vmem:[#allocation252_spill] sm:$0xff] %v4959_v42  ;;  %v4974_v11 = vsub.f32 %v3383_v62, %v4724_v59  ;;  %1592 = vadd.xlane.f32.xlu1 %v1591_v25  ;;  %v1597_v17 = vadd.f32 %v1596_v7, %v1268_v35  ;;  %v1602_v8 = vadd.f32 %v1601_v33, %v1272_v55  ;;  %v3385_v7 = vld [vmem:[#allocation2 + $0x870] sm:$0xff]  ;;  %v3388_v45 = vld [vmem:[#allocation2 + $0x880] sm:$0xff] }
 0x1ac   :  { %6906 = vst [vmem:[#allocation253_spill] sm:$0xff] %v4964_v29  ;;  %6907 = vst [vmem:[#allocation254_spill] sm:$0xff] %v4971_v57  ;;  %v1276_v44 = vmul.f32 %v4959_v42, %v4959_v42  ;;  %v1277_v18 = vmul.f32 %v4964_v29, %v4964_v29  ;;  %v1275_v61 = vmul.f32 %v4954_v53, %v4954_v53  ;;  %v3386_v29 = vld [vmem:[#allocation2 + $0x868] sm:$0xff] }
 0x1ad   :  { %6908 = vst [vmem:[#allocation255_spill] sm:$0xff] %v4974_v11  ;;  %v4985_v13 = vsub.f32 %v3384_v0, %v4724_v59  ;;  %v1278_v62 = vmul.f32 %v4971_v57, %v4971_v57  ;;  %v1279_v35 = vmul.f32 %v4974_v11, %v4974_v11  ;;  %v1598_v33 = vadd.f32 %v1597_v17, %v1269_v54  ;;  %v3389_v11 = vld [vmem:[#allocation2 + $0x888] sm:$0xff]  ;;  %v5006_v54 = vpop.xlane.xlu1 %1354 }
 0x1ae   :  { %v1603_v55 = vadd.f32 %v1602_v8, %v1273_v1  ;;  %v1608_v25 = vadd.f32 %v1277_v18, %v1276_v44  ;;  %v4992_v42 = vsub.f32 %v3385_v7, %v4688_v58  ;;  %v4995_v53 = vsub.f32 %v3386_v29, %v4724_v59  ;;  %v3390_v44 = vld [vmem:[#allocation2 + $0x890] sm:$0xff]  ;;  %v3392_v7 = vld [vmem:[#allocation2 + $0x8a0] sm:$0xff] }
 0x1af   :  { %6909 = vst [vmem:[#allocation256_spill] sm:$0xff] %v4985_v13  ;;  %v4998_v0 = vsub.f32 %v3387_v60, %v4688_v58  ;;  %v5001_v57 = vsub.f32 %v3388_v45, %v4688_v58  ;;  %v5004_v1 = vsub.f32 %v3389_v11, %v4688_v58  ;;  %1599 = vadd.xlane.f32.xlu0 %v1598_v33  ;;  %v3391_v60 = vld [vmem:[#allocation2 + $0x898] sm:$0xff] }
 0x1b0   :  { %6910 = vst [vmem:[#allocation257_spill] sm:$0xff] %v4992_v42  ;;  %6911 = vst [vmem:[#allocation258_spill] sm:$0xff] %v4995_v53  ;;  %v1604_v17 = vadd.f32 %v1603_v55, %v1274_v6  ;;  %v1609_v8 = vadd.f32 %v1608_v25, %v1278_v62  ;;  %v5009_v59 = vsub.f32 %v3390_v44, %v4688_v58  ;;  %v5022_v62 = vpop.xlane.xlu0 %1361 }
 0x1b1   :  { %6912 = vst [vmem:[#allocation259_spill] sm:$0xff] %v4998_v0  ;;  %6913 = vst [vmem:[#allocation260_spill] sm:$0xff] %v5001_v57  ;;  %v1282_v29 = vmul.f32 %v4992_v42, %v4992_v42  ;;  %v1280_v45 = vmul.f32 %v4985_v13, %v4985_v13  ;;  %v5016_v18 = vsub.f32 %v3391_v60, %v4688_v58  ;;  %v3393_v58 = vld [vmem:[#allocation2 + $0x8a8] sm:$0xff] }
 0x1b2   :  { %6914 = vst [vmem:[#allocation261_spill] sm:$0xff] %v5004_v1  ;;  %6915 = vst [vmem:[#allocation262_spill] sm:$0xff] %v5009_v59  ;;  %v1283_v11 = vmul.f32 %v4998_v0, %v4998_v0  ;;  %v1284_v6 = vmul.f32 %v5001_v57, %v5001_v57  ;;  %v1605_v33 = vadd.f32 %v1604_v17, %v1275_v61  ;;  %v3394_v0 = vld [vmem:[#allocation2 + $0x8b0] sm:$0xff]  ;;  %v3395_v57 = vld [vmem:[#allocation2 + $0x8b8] sm:$0xff] }
 0x1b3   :  { %6916 = vst [vmem:[#allocation263_spill] sm:$0xff] %v5016_v18  ;;  %v1610_v55 = vadd.f32 %v1609_v8, %v1279_v35  ;;  %v1285_v25 = vmul.f32 %v5004_v1, %v5004_v1  ;;  %v5027_v44 = vsub.f32 %v3392_v7, %v4780_v46  ;;  %v5030_v60 = vsub.f32 %v3393_v58, %v4780_v46 }
 0x1b4   :  { %v1615_v42 = vadd.f32 %v1283_v11, %v1282_v29  ;;  %v5033_v13 = vsub.f32 %v3394_v0, %v4780_v46  ;;  %v5036_v61 = vsub.f32 %v3395_v57, %v4780_v46  ;;  %1606 = vadd.xlane.f32.xlu1 %v1605_v33  ;;  %v1281_v35 = vmul.f32 %v4995_v53, %v4995_v53  ;;  %v5050_v33 = vpop.xlane.xlu1 %1368  ;;  %v3401_v53 = vld [vmem:[#allocation2 + $0x8e8] sm:$0xff] }
 0x1b5   :  { %6917 = vst [vmem:[#allocation264_spill] sm:$0xff] %v5027_v44  ;;  %6918 = vst [vmem:[#allocation265_spill] sm:$0xff] %v5030_v60  ;;  %v1611_v17 = vadd.f32 %v1610_v55, %v1280_v45  ;;  %v1286_v8 = vmul.f32 %v5009_v59, %v5009_v59  ;;  %v1288_v29 = vmul.f32 %v5027_v44, %v5027_v44  ;;  %v3396_v45 = vld [vmem:[#allocation2 + $0x8c0] sm:$0xff]  ;;  %v3397_v59 = vld [vmem:[#allocation2 + $0x8d0] sm:$0xff] }
 0x1b6   :  { %6919 = vst [vmem:[#allocation266_spill] sm:$0xff] %v5033_v13  ;;  %6920 = vst [vmem:[#allocation267_spill] sm:$0xff] %v5036_v61  ;;  %v1287_v11 = vmul.f32 %v5016_v18, %v5016_v18  ;;  %v1616_v0 = vadd.f32 %v1615_v42, %v1284_v6  ;;  %v1289_v7 = vmul.f32 %v5030_v60, %v5030_v60  ;;  %v3398_v60 = vld [vmem:[#allocation2 + $0x8d8] sm:$0xff] }
 0x1b7   :  { %v1290_v57 = vmul.f32 %v5033_v13, %v5033_v13  ;;  %v1612_v58 = vadd.f32 %v1611_v17, %v1281_v35  ;;  %v5053_v55 = vsub.f32 %v3396_v45, %v4780_v46  ;;  %v1291_v44 = vmul.f32 %v5036_v61, %v5036_v61  ;;  %v3399_v13 = vld [vmem:[#allocation2 + $0x8e0] sm:$0xff]  ;;  %v5066_v17 = vpop.xlane.xlu0 %1375  ;;  %v3400_v45 = vld [vmem:[#allocation2 + $0x8c8] sm:$0xff] }
 0x1b8   :  { %v5058_v18 = vsub.f32 %v3397_v59, %v4757_v38  ;;  %v1617_v42 = vadd.f32 %v1616_v0, %v1285_v25  ;;  %v1622_v6 = vadd.f32 %v1289_v7, %v1288_v29  ;;  %v5061_v1 = vsub.f32 %v3398_v60, %v4757_v38  ;;  %v3402_v25 = vld [vmem:[#allocation2 + $0x8f0] sm:$0xff] }
 0x1b9   :  { %6921 = vst [vmem:[#allocation268_spill] sm:$0xff] %v5053_v55  ;;  %v5064_v35 = vsub.f32 %v3399_v13, %v4757_v38  ;;  %1613 = vadd.xlane.f32.xlu0 %v1612_v58  ;;  %v5069_v61 = vsub.f32 %v3400_v45, %v4780_v46  ;;  %v5072_v59 = vsub.f32 %v3401_v53, %v4757_v38  ;;  %v2071_v45 = vlaneseq }
 0x1ba   :  { %6922 = vst [vmem:[#allocation269_spill] sm:$0xff] %v5058_v18  ;;  %6923 = vst [vmem:[#allocation270_spill] sm:$0xff] %v5061_v1  ;;  %v5075_v29 = vsub.f32 %v3402_v25, %v4757_v38  ;;  %v1294_v60 = vmul.f32 %v5058_v18, %v5058_v18  ;;  %v1618_v13 = vadd.f32 %v1617_v42, %v1286_v8  ;;  %v1636_v18 = vmul.f32 0.0013020834, %v4834_v4  ;;  %v1383_v8 = vpop.xlane.xlu1 %1382  ;;  %v3403_v42 = vld [vmem:[#allocation2 + $0x8f8] sm:$0xff] }
 0x1bb   :  { %6924 = vst [vmem:[#allocation271_spill] sm:$0xff] %v5064_v35  ;;  %6925 = vst [vmem:[#allocation272_spill] sm:$0xff] %v5069_v61  ;;  %v1623_v0 = vadd.f32 %v1622_v6, %v1290_v57  ;;  %v1295_v7 = vmul.f32 %v5061_v1, %v5061_v1  ;;  %v1296_v46 = vmul.f32 %v5064_v35, %v5064_v35  ;;  %v5095_v1 = vshrl.u32 %v2071_v45, 7  ;;  %v1390_v4 = vpop.xlane.xlu0 %1389  ;;  %v1781_v45 = vld [vmem:[#allocation7] sm:$0x3f] }
 0x1bc   :  { %6926 = vst [vmem:[#allocation273_spill] sm:$0xff] %v5072_v59  ;;  %6927 = vst [vmem:[#allocation274_spill] sm:$0xff] %v5075_v29  ;;  %v1292_v58 = vmul.f32 %v5053_v55, %v5053_v55  ;;  %v1297_v53 = vmul.f32 %v5072_v59, %v5072_v59  ;;  %v1619_v25 = vadd.f32 %v1618_v13, %v1287_v11  ;;  %v1780_v13 = vld [vmem:[#allocation5] sm:$0x3f]  ;;  %v1646_v12 = vmul.f32 0.0013020834, %v5066_v17 }
 0x1bd   :  { %v1624_v31 = vadd.f32 %v1623_v0, %v1291_v44  ;;  %v1629_v27 = vadd.f32 %v1295_v7, %v1294_v60  ;;  %v1293_v57 = vmul.f32 %v5069_v61, %v5069_v61  ;;  %v5091_v6 = vsub.f32 %v3403_v42, %v4757_v38 }
 0x1be   :  { %v1298_v35 = vmul.f32 %v5075_v29, %v5075_v29  ;;  %1620 = vadd.xlane.f32.xlu1 %v1619_v25  ;;  %v1684_v44 = vadd.f32 1e-12, %v1636_v18  ;;  %v1637_v60 = vmul.f32 0.0013020834, %v4862_v49  ;;  %v2073_v0 = vsub.s32 0, %v5095_v1 }
 0x1bf   :  { %6928 = vst [vmem:[#allocation275_spill] sm:$0xff] %v5091_v6  ;;  %v1625_v59 = vadd.f32 %v1624_v31, %v1292_v58  ;;  %v1630_v11 = vadd.f32 %v1629_v27, %v1296_v46  ;;  %v2077_v7 = vsub.s32 1, %v5095_v1  ;;  %v2081_v38 = vsub.s32 2, %v5095_v1 }
 0x1c0   :  { %v2085_v42 = vsub.s32 3, %v5095_v1  ;;  %v2089_v25 = vsub.s32 4, %v5095_v1  ;;  %v2093_v27 = vsub.s32 5, %v5095_v1  ;;  %v1299_v31 = vmul.f32 %v5091_v6, %v5091_v6 }
 0x1c1   :  { %v1626_v61 = vadd.f32 %v1625_v59, %v1293_v57  ;;  %v1631_v29 = vadd.f32 %v1630_v11, %v1297_v53  ;;  %v1638_v49 = vmul.f32 0.0013020834, %v4881_v20  ;;  %v1639_v18 = vmul.f32 0.0013020834, %v4912_v15  ;;  %v1397_v53 = vpop.xlane.xlu1 %1396 }
 0x1c2   :  { %v5108_v58 = vrot.slane %v1780_v13, %v2073_v0  ;;  %v5110_v55 = vrot.slane %v1780_v13, %v2077_v7  ;;  %v5112_v59 = vrot.slane %v1780_v13, %v2081_v38  ;;  %v5114_v57 = vrot.slane %v1780_v13, %v2085_v42 }
 0x1c3   :  { %1627 = vadd.xlane.f32.xlu0 %v1626_v61  ;;  %v1632_v46 = vadd.f32 %v1631_v29, %v1298_v35  ;;  %v5116_v11 = vrot.slane %v1780_v13, %v2089_v25  ;;  %v5118_v1 = vrot.slane %v1780_v13, %v2093_v27  ;;  %v5120_v6 = vrot.slane %v1781_v45, %v2073_v0  ;;  %v1404_v61 = vpop.xlane.xlu0 %1403 }
 0x1c4   :  { %v5122_v48 = vrot.slane %v1781_v45, %v2077_v7  ;;  %3020 = vrsqrt.f32 %v1684_v44  ;;  %v1685_v15 = vadd.f32 1e-12, %v1637_v60  ;;  %v5124_v35 = vrot.slane %v1781_v45, %v2081_v38 }
 0x1c5   :  { %v1633_v20 = vadd.f32 %v1632_v46, %v1299_v31  ;;  %v1686_v29 = vadd.f32 1e-12, %v1638_v49  ;;  %v1687_v19 = vadd.f32 1e-12, %v1639_v18  ;;  %v1642_v13 = vmul.f32 0.0013020834, %v4976_v50  ;;  %v1411_v18 = vpop.xlane.xlu1 %1410 }
 0x1c6   :  { %3022 = vrsqrt.f32 %v1685_v15  ;;  %v1643_v0 = vmul.f32 0.0013020834, %v5006_v54  ;;  %v1688_v7 = vadd.f32 1e-12, %v1640_v16  ;;  %v1644_v44 = vmul.f32 0.0013020834, %v5022_v62 }
 0x1c7   :  { %1634 = vadd.xlane.f32.xlu1 %v1633_v20  ;;  %3024 = vrsqrt.f32 %v1686_v29  ;;  %v1645_v60 = vmul.f32 0.0013020834, %v5050_v33  ;;  %v1689_v38 = vadd.f32 1e-12, %v1641_v9  ;;  %v1690_v31 = vadd.f32 1e-12, %v1642_v13  ;;  %v1418_v15 = vpop.xlane.xlu0 %1417 }
 0x1c8   :  { %3026 = vrsqrt.f32 %v1687_v19  ;;  %v1691_v49 = vadd.f32 1e-12, %v1643_v0  ;;  %v1692_v23 = vadd.f32 1e-12, %v1644_v44  ;;  %v1647_v50 = vmul.f32 0.0013020834, %v1383_v8 }
 0x1c9   :  { %3028 = vrsqrt.f32 %v1688_v7  ;;  %v1693_v46 = vadd.f32 1e-12, %v1645_v60  ;;  %v1648_v20 = vmul.f32 0.0013020834, %v1390_v4  ;;  %v1649_v54 = vmul.f32 0.0013020834, %v1397_v53 }
 0x1ca   :  { %3030 = vrsqrt.f32 %v1689_v38  ;;  %v5133_v16 = vrot.slane %v1781_v45, %v2085_v42  ;;  %v1650_v62 = vmul.f32 0.0013020834, %v1404_v61  ;;  %v1651_v33 = vmul.f32 0.0013020834, %v1411_v18 }
 0x1cb   :  { %3032 = vrsqrt.f32 %v1690_v31  ;;  %v5135_v19 = vrot.slane %v1781_v45, %v2089_v25  ;;  %v5137_v9 = vrot.slane %v1781_v45, %v2093_v27  ;;  %v1694_v29 = vadd.f32 1e-12, %v1646_v12 }
 0x1cc   :  { %3034 = vrsqrt.f32 %v1691_v49  ;;  %v5139_v13 = vadd.f32 1e-12, %v1647_v50  ;;  %v5141_v17 = vadd.f32 1e-12, %v1648_v20  ;;  %v1652_v8 = vmul.f32 0.0013020834, %v1418_v15 }
 0x1cd   :  { %3036 = vrsqrt.f32 %v1692_v23  ;;  %v5143_v53 = vadd.f32 1e-12, %v1649_v54  ;;  %v5145_v42 = vadd.f32 1e-12, %v1650_v62  ;;  %v5147_v61 = vadd.f32 1e-12, %v1651_v33 }
 0x1ce   :  { %v3021_v4 = vpop.eup %3020  ;;  %3038 = vrsqrt.f32 %v1693_v46  ;;  %v5155_v38 = vadd.f32 1e-12, %v1652_v8 }
 0x1cf   :  { %v1782_v25 = vmul.f32 %v3021_v4, %v3576_v28  ;;  %v1783_v45 = vmul.f32 %v3021_v4, %v3578_v30  ;;  %v1784_v27 = vmul.f32 %v3021_v4, %v3580_v32  ;;  %v1785_v0 = vmul.f32 %v3021_v4, %v3584_v37 }
 0x1d0   :  { %v3023_v7 = vpop.eup %3022  ;;  %v1786_v44 = vmul.f32 %v3021_v4, %v3586_v39  ;;  %v1787_v60 = vmul.f32 %v3021_v4, %v3588_v41  ;;  %3040 = vrsqrt.f32 %v1694_v29 }
 0x1d1   :  { %v3025_v31 = vpop.eup %3024  ;;  %v2101_v49 = vmul.f32 %v5108_v58, %v1782_v25  ;;  %v2102_v18 = vmul.f32 %v5110_v55, %v1783_v45  ;;  %v2103_v28 = vmul.f32 %v5112_v59, %v1784_v27  ;;  %v2104_v30 = vmul.f32 %v5114_v57, %v1785_v0 }
 0x1d2   :  { %v5161_v32 = vpop.eup %3026  ;;  %v2105_v37 = vmul.f32 %v5116_v11, %v1786_v44  ;;  %v2106_v39 = vmul.f32 %v5118_v1, %v1787_v60  ;;  %v1788_v41 = vmul.f32 %v3023_v7, %v3616_v63  ;;  %v1789_v23 = vmul.f32 %v3023_v7, %v3620_v3 }
 0x1d3   :  { %v5167_v46 = vpop.eup %3028  ;;  %v2420_v12 = vadd.f32 %v5120_v6, %v2101_v49  ;;  %v2421_v50 = vadd.f32 %v5122_v48, %v2102_v18  ;;  %v2422_v20 = vadd.f32 %v5124_v35, %v2103_v28  ;;  %v2423_v54 = vadd.f32 %v5133_v16, %v2104_v30 }
 0x1d4   :  { %v5173_v15 = vpop.eup %3030  ;;  %v2424_v62 = vadd.f32 %v5135_v19, %v2105_v37  ;;  %v2425_v33 = vadd.f32 %v5137_v9, %v2106_v39  ;;  %v1790_v63 = vmul.f32 %v3023_v7, %v3622_v5  ;;  %v1791_v3 = vmul.f32 %v3023_v7, %v3628_v10 }
 0x1d5   :  { %v5179_v29 = vpop.eup %3032  ;;  %2708 = vst [vmem:[#allocation8] sm:$0xff] %v2420_v12  ;;  %2709 = vst [vmem:[#allocation8 + $0x8] sm:$0xff] %v2421_v50  ;;  %v1792_v8 = vmul.f32 %v3023_v7, %v3630_v14  ;;  %v1793_v4 = vmul.f32 %v3023_v7, %v3636_v22  ;;  %v2107_v25 = vmul.f32 %v5108_v58, %v1788_v41  ;;  %3042 = vrsqrt.f32 %v5139_v13 }
 0x1d6   :  { %2710 = vst [vmem:[#allocation8 + $0x10] sm:$0xff] %v2422_v20  ;;  %2711 = vst [vmem:[#allocation8 + $0x18] sm:$0xff] %v2423_v54  ;;  %v2108_v45 = vmul.f32 %v5110_v55, %v1789_v23  ;;  %v5185_v27 = vpop.eup %3034  ;;  %v2109_v5 = vmul.f32 %v5112_v59, %v1790_v63  ;;  %v2110_v10 = vmul.f32 %v5114_v57, %v1791_v3  ;;  %3044 = vrsqrt.f32 %v5141_v17 }
 0x1d7   :  { %2712 = vst [vmem:[#allocation8 + $0x20] sm:$0xff] %v2424_v62  ;;  %2713 = vst [vmem:[#allocation8 + $0x28] sm:$0xff] %v2425_v33  ;;  %v1794_v0 = vmul.f32 %v3025_v31, %v3570_v21  ;;  %v1795_v44 = vmul.f32 %v3025_v31, %v3572_v24  ;;  %v5191_v60 = vpop.eup %3036  ;;  %v2111_v14 = vmul.f32 %v5116_v11, %v1792_v8  ;;  %3046 = vrsqrt.f32 %v5143_v53 }
 0x1d8   :  { %v2112_v22 = vmul.f32 %v5118_v1, %v1793_v4  ;;  %v2426_v7 = vadd.f32 %v5120_v6, %v2107_v25  ;;  %v2427_v49 = vadd.f32 %v5122_v48, %v2108_v45  ;;  %v5197_v18 = vpop.eup %3038  ;;  %v2428_v28 = vadd.f32 %v5124_v35, %v2109_v5 }
 0x1d9   :  { %v2429_v30 = vadd.f32 %v5133_v16, %v2110_v10  ;;  %v1796_v21 = vmul.f32 %v3025_v31, %v3574_v26  ;;  %v1797_v24 = vmul.f32 %v3025_v31, %v3582_v34  ;;  %v2430_v37 = vadd.f32 %v5135_v19, %v2111_v14  ;;  %v6930_v14 = vld [vmem:[#allocation13_spill] sm:$0xff] }
 0x1da   :  { %v2431_v39 = vadd.f32 %v5137_v9, %v2112_v22  ;;  %2714 = vst [vmem:[#allocation8 + $0x30] sm:$0xff] %v2426_v7  ;;  %2715 = vst [vmem:[#allocation8 + $0x38] sm:$0xff] %v2427_v49  ;;  %v1798_v41 = vmul.f32 %v3025_v31, %v3596_v47  ;;  %v1799_v23 = vmul.f32 %v3025_v31, %v3602_v51  ;;  %v5207_v12 = vpop.eup %3040  ;;  %3048 = vrsqrt.f32 %v5145_v42 }
 0x1db   :  { %2716 = vst [vmem:[#allocation8 + $0x40] sm:$0xff] %v2428_v28  ;;  %2717 = vst [vmem:[#allocation8 + $0x48] sm:$0xff] %v2429_v30  ;;  %v2113_v50 = vmul.f32 %v5108_v58, %v1794_v0  ;;  %v2114_v26 = vmul.f32 %v5110_v55, %v1795_v44  ;;  %v2115_v34 = vmul.f32 %v5112_v59, %v1796_v21  ;;  %v6929_v0 = vld [vmem:[#allocation12_spill] sm:$0xff]  ;;  %v6931_v30 = vld [vmem:[#allocation14_spill] sm:$0xff]  ;;  %3050 = vrsqrt.f32 %v5147_v61 }
 0x1dc   :  { %v2116_v20 = vmul.f32 %v5114_v57, %v1797_v24  ;;  %2718 = vst [vmem:[#allocation8 + $0x50] sm:$0xff] %v2430_v37  ;;  %2719 = vst [vmem:[#allocation8 + $0x58] sm:$0xff] %v2431_v39  ;;  %v2117_v54 = vmul.f32 %v5116_v11, %v1798_v41  ;;  %v2118_v47 = vmul.f32 %v5118_v1, %v1799_v23  ;;  %v6932_v24 = vld [vmem:[#allocation15_spill] sm:$0xff]  ;;  %v5251_v39 = vpop.xlane.xlu1 %1424  ;;  %3052 = vrsqrt.f32 %v5155_v38 }
 0x1dd   :  { %v1800_v51 = vmul.f32 %v5161_v32, %v3645_v36  ;;  %v1801_v31 = vmul.f32 %v5161_v32, %v3648_v40  ;;  %v2432_v62 = vadd.f32 %v5120_v6, %v2113_v50  ;;  %v2433_v33 = vadd.f32 %v5122_v48, %v2114_v26  ;;  %v6933_v50 = vld [vmem:[#allocation16_spill] sm:$0xff] }
 0x1de   :  { %v2434_v63 = vadd.f32 %v5124_v35, %v2115_v34  ;;  %v2435_v3 = vadd.f32 %v5133_v16, %v2116_v20  ;;  %v2436_v8 = vadd.f32 %v5135_v19, %v2117_v54  ;;  %v2437_v4 = vadd.f32 %v5137_v9, %v2118_v47  ;;  %v6934_v34 = vld [vmem:[#allocation17_spill] sm:$0xff] }
 0x1df   :  { %v1802_v25 = vmul.f32 %v5161_v32, %v3651_v43  ;;  %v1803_v36 = vmul.f32 %v5161_v32, %v3656_v52  ;;  %2720 = vst [vmem:[#allocation8 + $0x60] sm:$0xff] %v2432_v62  ;;  %2721 = vst [vmem:[#allocation8 + $0x68] sm:$0xff] %v2433_v33  ;;  %v1804_v40 = vmul.f32 %v5161_v32, %v3663_v56 }
 0x1e0   :  { %2722 = vst [vmem:[#allocation8 + $0x70] sm:$0xff] %v2434_v63  ;;  %2723 = vst [vmem:[#allocation8 + $0x78] sm:$0xff] %v2435_v3  ;;  %v1805_v45 = vmul.f32 %v5161_v32, %v3674_v2  ;;  %v2119_v5 = vmul.f32 %v5108_v58, %v1800_v51  ;;  %v2120_v10 = vmul.f32 %v5110_v55, %v1801_v31  ;;  %v6935_v63 = vld [vmem:[#allocation18_spill] sm:$0xff] }
 0x1e1   :  { %2724 = vst [vmem:[#allocation8 + $0x80] sm:$0xff] %v2436_v8  ;;  %2725 = vst [vmem:[#allocation8 + $0x88] sm:$0xff] %v2437_v4  ;;  %v2121_v43 = vmul.f32 %v5112_v59, %v1802_v25  ;;  %v2122_v52 = vmul.f32 %v5114_v57, %v1803_v36  ;;  %v1806_v44 = vmul.f32 %v5167_v46, %v6929_v0 }
 0x1e2   :  { %v1807_v22 = vmul.f32 %v5167_v46, %v6930_v14  ;;  %v2123_v56 = vmul.f32 %v5116_v11, %v1804_v40  ;;  %v2124_v2 = vmul.f32 %v5118_v1, %v1805_v45  ;;  %v2438_v32 = vadd.f32 %v5120_v6, %v2119_v5 }
 0x1e3   :  { %v2439_v7 = vadd.f32 %v5122_v48, %v2120_v10  ;;  %v2440_v49 = vadd.f32 %v5124_v35, %v2121_v43  ;;  %v2441_v28 = vadd.f32 %v5133_v16, %v2122_v52  ;;  %v1808_v21 = vmul.f32 %v5167_v46, %v6931_v30  ;;  %v6937_v10 = vld [vmem:[#allocation20_spill] sm:$0xff]  ;;  %v6938_v52 = vld [vmem:[#allocation21_spill] sm:$0xff] }
 0x1e4   :  { %v1809_v37 = vmul.f32 %v5167_v46, %v6932_v24  ;;  %v2442_v41 = vadd.f32 %v5135_v19, %v2123_v56  ;;  %v2443_v23 = vadd.f32 %v5137_v9, %v2124_v2  ;;  %2726 = vst [vmem:[#allocation8 + $0x90] sm:$0xff] %v2438_v32  ;;  %v1810_v26 = vmul.f32 %v5167_v46, %v6933_v50 }
 0x1e5   :  { %2727 = vst [vmem:[#allocation8 + $0x98] sm:$0xff] %v2439_v7  ;;  %v1811_v20 = vmul.f32 %v5167_v46, %v6934_v34  ;;  %2728 = vst [vmem:[#allocation8 + $0xa0] sm:$0xff] %v2440_v49  ;;  %v2125_v54 = vmul.f32 %v5108_v58, %v1806_v44  ;;  %v2126_v47 = vmul.f32 %v5110_v55, %v1807_v22  ;;  %v6936_v46 = vld [vmem:[#allocation19_spill] sm:$0xff]  ;;  %v6939_v44 = vld [vmem:[#allocation22_spill] sm:$0xff]  ;;  %v5285_v7 = vpop.xlane.xlu0 %1431  ;;  %v5287_v49 = vpop.xlane.xlu1 %1438 }
 0x1e6   :  { %2729 = vst [vmem:[#allocation8 + $0xa8] sm:$0xff] %v2441_v28  ;;  %v2127_v51 = vmul.f32 %v5112_v59, %v1808_v21  ;;  %v2128_v31 = vmul.f32 %v5114_v57, %v1809_v37  ;;  %2730 = vst [vmem:[#allocation8 + $0xb0] sm:$0xff] %v2442_v41  ;;  %v2129_v62 = vmul.f32 %v5116_v11, %v1810_v26  ;;  %v6940_v22 = vld [vmem:[#allocation23_spill] sm:$0xff]  ;;  %v6941_v21 = vld [vmem:[#allocation24_spill] sm:$0xff]  ;;  %v1654_v13 = vmul.f32 0.0013020834, %v5285_v7 }
 0x1e7   :  { %2731 = vst [vmem:[#allocation8 + $0xb8] sm:$0xff] %v2443_v23  ;;  %v2130_v33 = vmul.f32 %v5118_v1, %v1811_v20  ;;  %v1812_v3 = vmul.f32 %v5173_v15, %v6935_v63  ;;  %v1813_v8 = vmul.f32 %v5173_v15, %v6936_v46  ;;  %v2444_v4 = vadd.f32 %v5120_v6, %v2125_v54  ;;  %v6942_v37 = vld [vmem:[#allocation25_spill] sm:$0xff]  ;;  %v6943_v54 = vld [vmem:[#allocation26_spill] sm:$0xff]  ;;  %v6945_v63 = vld [vmem:[#allocation28_spill] sm:$0xff] }
 0x1e8   :  { %v2445_v25 = vadd.f32 %v5122_v48, %v2126_v47  ;;  %v2446_v36 = vadd.f32 %v5124_v35, %v2127_v51  ;;  %v2447_v40 = vadd.f32 %v5133_v16, %v2128_v31  ;;  %v2448_v45 = vadd.f32 %v5135_v19, %v2129_v62  ;;  %v6944_v51 = vld [vmem:[#allocation27_spill] sm:$0xff]  ;;  %v6946_v46 = vld [vmem:[#allocation29_spill] sm:$0xff] }
 0x1e9   :  { %v2449_v5 = vadd.f32 %v5137_v9, %v2130_v33  ;;  %v1814_v43 = vmul.f32 %v5173_v15, %v6937_v10  ;;  %v1815_v0 = vmul.f32 %v5173_v15, %v6938_v52  ;;  %2732 = vst [vmem:[#allocation8 + $0xc0] sm:$0xff] %v2444_v4  ;;  %v1816_v14 = vmul.f32 %v5173_v15, %v6939_v44  ;;  %v6947_v10 = vld [vmem:[#allocation30_spill] sm:$0xff]  ;;  %v5323_v44 = vpop.xlane.xlu1 %1452 }
 0x1ea   :  { %2733 = vst [vmem:[#allocation8 + $0xc8] sm:$0xff] %v2445_v25  ;;  %2734 = vst [vmem:[#allocation8 + $0xd0] sm:$0xff] %v2446_v36  ;;  %v1817_v56 = vmul.f32 %v5173_v15, %v6940_v22  ;;  %v2131_v2 = vmul.f32 %v5108_v58, %v1812_v3  ;;  %v2132_v32 = vmul.f32 %v5110_v55, %v1813_v8 }
 0x1eb   :  { %2735 = vst [vmem:[#allocation8 + $0xd8] sm:$0xff] %v2447_v40  ;;  %2736 = vst [vmem:[#allocation8 + $0xe0] sm:$0xff] %v2448_v45  ;;  %v2133_v28 = vmul.f32 %v5112_v59, %v1814_v43  ;;  %v2134_v30 = vmul.f32 %v5114_v57, %v1815_v0  ;;  %v1818_v24 = vmul.f32 %v5179_v29, %v6941_v21  ;;  %v5321_v0 = vpop.xlane.xlu0 %1445 }
 0x1ec   :  { %2737 = vst [vmem:[#allocation8 + $0xe8] sm:$0xff] %v2449_v5  ;;  %v1819_v15 = vmul.f32 %v5179_v29, %v6942_v37  ;;  %v2135_v41 = vmul.f32 %v5116_v11, %v1816_v14  ;;  %v2136_v23 = vmul.f32 %v5118_v1, %v1817_v56  ;;  %v2450_v50 = vadd.f32 %v5120_v6, %v2131_v2 }
 0x1ed   :  { %v2451_v26 = vadd.f32 %v5122_v48, %v2132_v32  ;;  %v2452_v34 = vadd.f32 %v5124_v35, %v2133_v28  ;;  %v2453_v20 = vadd.f32 %v5133_v16, %v2134_v30  ;;  %v1820_v47 = vmul.f32 %v5179_v29, %v6943_v54  ;;  %v6949_v30 = vld [vmem:[#allocation32_spill] sm:$0xff] }
 0x1ee   :  { %v1821_v31 = vmul.f32 %v5179_v29, %v6944_v51  ;;  %v2454_v62 = vadd.f32 %v5135_v19, %v2135_v41  ;;  %v2455_v33 = vadd.f32 %v5137_v9, %v2136_v23  ;;  %2738 = vst [vmem:[#allocation8 + $0xf0] sm:$0xff] %v2450_v50  ;;  %v1822_v3 = vmul.f32 %v5179_v29, %v6945_v63  ;;  %v6952_v23 = vld [vmem:[#allocation35_spill] sm:$0xff] }
 0x1ef   :  { %2739 = vst [vmem:[#allocation8 + $0xf8] sm:$0xff] %v2451_v26  ;;  %v1823_v8 = vmul.f32 %v5179_v29, %v6946_v46  ;;  %2740 = vst [vmem:[#allocation8 + $0x100] sm:$0xff] %v2452_v34  ;;  %v2137_v4 = vmul.f32 %v5108_v58, %v1818_v24  ;;  %v2138_v25 = vmul.f32 %v5110_v55, %v1819_v15  ;;  %v6948_v29 = vld [vmem:[#allocation31_spill] sm:$0xff]  ;;  %v6950_v24 = vld [vmem:[#allocation33_spill] sm:$0xff] }
 0x1f0   :  { %2741 = vst [vmem:[#allocation8 + $0x108] sm:$0xff] %v2453_v20  ;;  %v2139_v36 = vmul.f32 %v5112_v59, %v1820_v47  ;;  %v2140_v40 = vmul.f32 %v5114_v57, %v1821_v31  ;;  %2742 = vst [vmem:[#allocation8 + $0x110] sm:$0xff] %v2454_v62  ;;  %v2141_v45 = vmul.f32 %v5116_v11, %v1822_v3  ;;  %v6951_v15 = vld [vmem:[#allocation34_spill] sm:$0xff]  ;;  %v6953_v47 = vld [vmem:[#allocation36_spill] sm:$0xff] }
 0x1f1   :  { %2743 = vst [vmem:[#allocation8 + $0x118] sm:$0xff] %v2455_v33  ;;  %v2142_v5 = vmul.f32 %v5118_v1, %v1823_v8  ;;  %v1824_v43 = vmul.f32 %v5185_v27, %v6947_v10  ;;  %v1825_v52 = vmul.f32 %v5185_v27, %v6948_v29  ;;  %v2456_v14 = vadd.f32 %v5120_v6, %v2137_v4  ;;  %v6954_v31 = vld [vmem:[#allocation37_spill] sm:$0xff]  ;;  %v6955_v4 = vld [vmem:[#allocation38_spill] sm:$0xff]  ;;  %v6957_v29 = vld [vmem:[#allocation40_spill] sm:$0xff] }
 0x1f2   :  { %v2457_v22 = vadd.f32 %v5122_v48, %v2138_v25  ;;  %v2458_v56 = vadd.f32 %v5124_v35, %v2139_v36  ;;  %v2459_v2 = vadd.f32 %v5133_v16, %v2140_v40  ;;  %v2460_v32 = vadd.f32 %v5135_v19, %v2141_v45  ;;  %v6956_v36 = vld [vmem:[#allocation39_spill] sm:$0xff]  ;;  %v5357_v45 = vpop.xlane.xlu0 %1459 }
 0x1f3   :  { %v2461_v28 = vadd.f32 %v5137_v9, %v2142_v5  ;;  %v1826_v21 = vmul.f32 %v5185_v27, %v6949_v30  ;;  %v1827_v37 = vmul.f32 %v5185_v27, %v6950_v24  ;;  %2744 = vst [vmem:[#allocation8 + $0x120] sm:$0xff] %v2456_v14  ;;  %v1828_v41 = vmul.f32 %v5185_v27, %v6951_v15  ;;  %v5359_v5 = vpop.xlane.xlu1 %1466  ;;  %v6958_v14 = vld [vmem:[#allocation41_spill] sm:$0xff]  ;;  %v6959_v24 = vld [vmem:[#allocation42_spill] sm:$0xff] }
 0x1f4   :  { %2745 = vst [vmem:[#allocation8 + $0x128] sm:$0xff] %v2457_v22  ;;  %2746 = vst [vmem:[#allocation8 + $0x130] sm:$0xff] %v2458_v56  ;;  %v1829_v50 = vmul.f32 %v5185_v27, %v6952_v23  ;;  %v2143_v26 = vmul.f32 %v5108_v58, %v1824_v43  ;;  %v2144_v34 = vmul.f32 %v5110_v55, %v1825_v52  ;;  %v1658_v17 = vmul.f32 0.0013020834, %v5357_v45 }
 0x1f5   :  { %2747 = vst [vmem:[#allocation8 + $0x138] sm:$0xff] %v2459_v2  ;;  %2748 = vst [vmem:[#allocation8 + $0x140] sm:$0xff] %v2460_v32  ;;  %v2145_v20 = vmul.f32 %v5112_v59, %v1826_v21  ;;  %v2146_v54 = vmul.f32 %v5114_v57, %v1827_v37  ;;  %v1830_v51 = vmul.f32 %v5191_v60, %v6953_v47  ;;  %v1659_v53 = vmul.f32 0.0013020834, %v5359_v5 }
 0x1f6   :  { %2749 = vst [vmem:[#allocation8 + $0x148] sm:$0xff] %v2461_v28  ;;  %v1831_v62 = vmul.f32 %v5191_v60, %v6954_v31  ;;  %v2147_v33 = vmul.f32 %v5116_v11, %v1828_v41  ;;  %v2148_v27 = vmul.f32 %v5118_v1, %v1829_v50  ;;  %v2462_v63 = vadd.f32 %v5120_v6, %v2143_v26 }
 0x1f7   :  { %v2463_v3 = vadd.f32 %v5122_v48, %v2144_v34  ;;  %v2464_v46 = vadd.f32 %v5124_v35, %v2145_v20  ;;  %v2465_v8 = vadd.f32 %v5133_v16, %v2146_v54  ;;  %v1832_v25 = vmul.f32 %v5191_v60, %v6955_v4  ;;  %v6961_v54 = vld [vmem:[#allocation44_spill] sm:$0xff]  ;;  %v5395_v4 = vpop.xlane.xlu1 %1480 }
 0x1f8   :  { %v1833_v40 = vmul.f32 %v5191_v60, %v6956_v36  ;;  %v2466_v10 = vadd.f32 %v5135_v19, %v2147_v33  ;;  %v2467_v43 = vadd.f32 %v5137_v9, %v2148_v27  ;;  %2750 = vst [vmem:[#allocation8 + $0x150] sm:$0xff] %v2462_v63  ;;  %v1834_v52 = vmul.f32 %v5191_v60, %v6957_v29  ;;  %v6964_v27 = vld [vmem:[#allocation47_spill] sm:$0xff] }
 0x1f9   :  { %2751 = vst [vmem:[#allocation8 + $0x158] sm:$0xff] %v2463_v3  ;;  %v1835_v22 = vmul.f32 %v5191_v60, %v6958_v14  ;;  %2752 = vst [vmem:[#allocation8 + $0x160] sm:$0xff] %v2464_v46  ;;  %v2149_v56 = vmul.f32 %v5108_v58, %v1830_v51  ;;  %v2150_v2 = vmul.f32 %v5110_v55, %v1831_v62  ;;  %v6960_v60 = vld [vmem:[#allocation43_spill] sm:$0xff]  ;;  %v6962_v51 = vld [vmem:[#allocation45_spill] sm:$0xff]  ;;  %v1661_v42 = vmul.f32 0.0013020834, %v5395_v4 }
 0x1fa   :  { %2753 = vst [vmem:[#allocation8 + $0x168] sm:$0xff] %v2465_v8  ;;  %v2151_v32 = vmul.f32 %v5112_v59, %v1832_v25  ;;  %v2152_v28 = vmul.f32 %v5114_v57, %v1833_v40  ;;  %2754 = vst [vmem:[#allocation8 + $0x170] sm:$0xff] %v2466_v10  ;;  %v2153_v30 = vmul.f32 %v5116_v11, %v1834_v52  ;;  %v6963_v62 = vld [vmem:[#allocation46_spill] sm:$0xff]  ;;  %v5393_v8 = vpop.xlane.xlu0 %1473  ;;  %v6965_v40 = vld [vmem:[#allocation48_spill] sm:$0xff]  ;;  %v5446_v45 = vadd.f32 1e-12, %v1658_v17 }
 0x1fb   :  { %2755 = vst [vmem:[#allocation8 + $0x178] sm:$0xff] %v2467_v43  ;;  %v2154_v21 = vmul.f32 %v5118_v1, %v1835_v22  ;;  %v1836_v37 = vmul.f32 %v5197_v18, %v6959_v24  ;;  %v1837_v15 = vmul.f32 %v5197_v18, %v6960_v60  ;;  %v2468_v41 = vadd.f32 %v5120_v6, %v2149_v56  ;;  %v6966_v43 = vld [vmem:[#allocation49_spill] sm:$0xff]  ;;  %v6969_v60 = vld [vmem:[#allocation52_spill] sm:$0xff] }
 0x1fc   :  { %v2469_v23 = vadd.f32 %v5122_v48, %v2150_v2  ;;  %v2470_v50 = vadd.f32 %v5124_v35, %v2151_v32  ;;  %v2471_v26 = vadd.f32 %v5133_v16, %v2152_v28  ;;  %v2472_v34 = vadd.f32 %v5135_v19, %v2153_v30  ;;  %v6967_v32 = vld [vmem:[#allocation50_spill] sm:$0xff]  ;;  %v6968_v30 = vld [vmem:[#allocation51_spill] sm:$0xff] }
 0x1fd   :  { %v2473_v20 = vadd.f32 %v5137_v9, %v2154_v21  ;;  %v1838_v47 = vmul.f32 %v5197_v18, %v6961_v54  ;;  %v1839_v31 = vmul.f32 %v5197_v18, %v6962_v51  ;;  %2756 = vst [vmem:[#allocation8 + $0x180] sm:$0xff] %v2468_v41  ;;  %v1840_v33 = vmul.f32 %v5197_v18, %v6963_v62  ;;  %v6970_v41 = vld [vmem:[#allocation53_spill] sm:$0xff] }
 0x1fe   :  { %2757 = vst [vmem:[#allocation8 + $0x188] sm:$0xff] %v2469_v23  ;;  %2758 = vst [vmem:[#allocation8 + $0x190] sm:$0xff] %v2470_v50  ;;  %v1841_v63 = vmul.f32 %v5197_v18, %v6964_v27  ;;  %v2155_v3 = vmul.f32 %v5108_v58, %v1836_v37  ;;  %v2156_v46 = vmul.f32 %v5110_v55, %v1837_v15  ;;  %v1488_v51 = vpop.xlane.xlu0 %1487 }
 0x1ff   :  { %2759 = vst [vmem:[#allocation8 + $0x198] sm:$0xff] %v2471_v26  ;;  %2760 = vst [vmem:[#allocation8 + $0x1a0] sm:$0xff] %v2472_v34  ;;  %v2157_v25 = vmul.f32 %v5112_v59, %v1838_v47  ;;  %v2158_v36 = vmul.f32 %v5114_v57, %v1839_v31  ;;  %v1842_v10 = vmul.f32 %v5207_v12, %v6965_v40  ;;  %v1495_v31 = vpop.xlane.xlu1 %1494  ;;  %v1657_v40 = vmul.f32 0.0013020834, %v5323_v44 }
 0x200   :  { %2761 = vst [vmem:[#allocation8 + $0x1a8] sm:$0xff] %v2473_v20  ;;  %v1843_v18 = vmul.f32 %v5207_v12, %v6966_v43  ;;  %v2159_v29 = vmul.f32 %v5116_v11, %v1840_v33  ;;  %v2160_v52 = vmul.f32 %v5118_v1, %v1841_v63  ;;  %v2474_v14 = vadd.f32 %v5120_v6, %v2155_v3 }
 0x201   :  { %v2475_v22 = vadd.f32 %v5122_v48, %v2156_v46  ;;  %v2476_v56 = vadd.f32 %v5124_v35, %v2157_v25  ;;  %v2477_v2 = vadd.f32 %v5133_v16, %v2158_v36  ;;  %v1844_v28 = vmul.f32 %v5207_v12, %v6967_v32  ;;  %v6972_v32 = vld [vmem:[#allocation55_spill] sm:$0xff] }
 0x202   :  { %v1845_v21 = vmul.f32 %v5207_v12, %v6968_v30  ;;  %v2478_v24 = vadd.f32 %v5135_v19, %v2159_v29  ;;  %v2479_v37 = vadd.f32 %v5137_v9, %v2160_v52  ;;  %2762 = vst [vmem:[#allocation8 + $0x1b0] sm:$0xff] %v2474_v14  ;;  %v1846_v15 = vmul.f32 %v5207_v12, %v6969_v60  ;;  %v3043_v14 = vpop.eup %3042  ;;  %v6973_v30 = vld [vmem:[#allocation56_spill] sm:$0xff] }
 0x203   :  { %2763 = vst [vmem:[#allocation8 + $0x1b8] sm:$0xff] %v2475_v22  ;;  %v1847_v23 = vmul.f32 %v5207_v12, %v6970_v41  ;;  %2764 = vst [vmem:[#allocation8 + $0x1c0] sm:$0xff] %v2476_v56  ;;  %v2161_v50 = vmul.f32 %v5108_v58, %v1842_v10  ;;  %v2162_v26 = vmul.f32 %v5110_v55, %v1843_v18  ;;  %v1653_v12 = vmul.f32 0.0013020834, %v5251_v39  ;;  %v1509_v18 = vpop.xlane.xlu1 %1508  ;;  %v6971_v56 = vld [vmem:[#allocation54_spill] sm:$0xff]  ;;  %v3045_v60 = vpop.eup %3044 }
 0x204   :  { %2765 = vst [vmem:[#allocation8 + $0x1c8] sm:$0xff] %v2477_v2  ;;  %v2163_v34 = vmul.f32 %v5112_v59, %v1844_v28  ;;  %v2164_v20 = vmul.f32 %v5114_v57, %v1845_v21  ;;  %2766 = vst [vmem:[#allocation8 + $0x1d0] sm:$0xff] %v2478_v24  ;;  %v2165_v54 = vmul.f32 %v5116_v11, %v1846_v15  ;;  %v1655_v39 = vmul.f32 0.0013020834, %v5287_v49  ;;  %v1502_v49 = vpop.xlane.xlu0 %1501  ;;  %v6974_v24 = vld [vmem:[#allocation57_spill] sm:$0xff]  ;;  %v6975_v15 = vld [vmem:[#allocation58_spill] sm:$0xff] }
 0x205   :  { %2767 = vst [vmem:[#allocation8 + $0x1d8] sm:$0xff] %v2479_v37  ;;  %v2166_v47 = vmul.f32 %v5118_v1, %v1847_v23  ;;  %v2480_v62 = vadd.f32 %v5120_v6, %v2161_v50  ;;  %v2481_v33 = vadd.f32 %v5122_v48, %v2162_v26  ;;  %v1701_v25 = vadd.f32 1e-12, %v1653_v12  ;;  %v6976_v23 = vld [vmem:[#allocation59_spill] sm:$0xff] }
 0x206   :  { %v2482_v27 = vadd.f32 %v5124_v35, %v2163_v34  ;;  %v2483_v63 = vadd.f32 %v5133_v16, %v2164_v20  ;;  %v2484_v3 = vadd.f32 %v5135_v19, %v2165_v54  ;;  %v1656_v36 = vmul.f32 0.0013020834, %v5321_v0  ;;  %v3047_v34 = vpop.eup %3046 }
 0x207   :  { %v2485_v46 = vadd.f32 %v5137_v9, %v2166_v47  ;;  %2768 = vst [vmem:[#allocation8 + $0x1e0] sm:$0xff] %v2480_v62  ;;  %2769 = vst [vmem:[#allocation8 + $0x1e8] sm:$0xff] %v2481_v33  ;;  %v1702_v10 = vadd.f32 1e-12, %v1654_v13  ;;  %v1703_v43 = vadd.f32 1e-12, %v1655_v39  ;;  %3054 = vrsqrt.f32 %v1701_v25 }
 0x208   :  { %2770 = vst [vmem:[#allocation8 + $0x1f0] sm:$0xff] %v2482_v27  ;;  %2771 = vst [vmem:[#allocation8 + $0x1f8] sm:$0xff] %v2483_v63  ;;  %v1704_v7 = vadd.f32 1e-12, %v1656_v36  ;;  %v1660_v0 = vmul.f32 0.0013020834, %v5393_v8  ;;  %v1848_v2 = vmul.f32 %v3043_v14, %v6971_v56  ;;  %v1849_v28 = vmul.f32 %v3043_v14, %v6972_v32 }
 0x209   :  { %2772 = vst [vmem:[#allocation8 + $0x200] sm:$0xff] %v2484_v3  ;;  %2773 = vst [vmem:[#allocation8 + $0x208] sm:$0xff] %v2485_v46  ;;  %v1662_v29 = vmul.f32 0.0013020834, %v1488_v51  ;;  %3056 = vrsqrt.f32 %v1702_v10  ;;  %v1705_v44 = vadd.f32 1e-12, %v1657_v40  ;;  %v1850_v21 = vmul.f32 %v3043_v14, %v6973_v30  ;;  %v5472_v51 = vpop.eup %3048 }
 0x20a   :  { %v1663_v61 = vmul.f32 0.0013020834, %v1495_v31  ;;  %3058 = vrsqrt.f32 %v1703_v43  ;;  %v5448_v52 = vadd.f32 1e-12, %v1659_v53  ;;  %v5450_v5 = vmul.f32 0.0013020834, %v1502_v49  ;;  %v5478_v46 = vpop.eup %3050 }
 0x20b   :  { %v5452_v38 = vmul.f32 0.0013020834, %v1509_v18  ;;  %3060 = vrsqrt.f32 %v1704_v7  ;;  %v5454_v22 = vadd.f32 1e-12, %v1660_v0  ;;  %v5456_v8 = vadd.f32 1e-12, %v1661_v42  ;;  %v5484_v40 = vpop.eup %3052 }
 0x20c   :  { %v5458_v4 = vadd.f32 1e-12, %v1662_v29  ;;  %v1851_v37 = vmul.f32 %v3043_v14, %v6974_v24  ;;  %v1852_v41 = vmul.f32 %v3043_v14, %v6975_v15  ;;  %v1853_v50 = vmul.f32 %v3043_v14, %v6976_v23  ;;  %v6977_v33 = vld [vmem:[#allocation60_spill] sm:$0xff]  ;;  %v6978_v63 = vld [vmem:[#allocation61_spill] sm:$0xff]  ;;  %v6979_v43 = vld [vmem:[#allocation62_spill] sm:$0xff] }
 0x20d   :  { %3062 = vrsqrt.f32 %v1705_v44  ;;  %v5466_v26 = vadd.f32 1e-12, %v1663_v61  ;;  %v2167_v20 = vmul.f32 %v5108_v58, %v1848_v2  ;;  %v2168_v54 = vmul.f32 %v5110_v55, %v1849_v28  ;;  %v6980_v7 = vld [vmem:[#allocation63_spill] sm:$0xff]  ;;  %v6981_v0 = vld [vmem:[#allocation64_spill] sm:$0xff]  ;;  %v6982_v29 = vld [vmem:[#allocation65_spill] sm:$0xff] }
 0x20e   :  { %v2169_v47 = vmul.f32 %v5112_v59, %v1850_v21  ;;  %v2170_v12 = vmul.f32 %v5114_v57, %v1851_v37  ;;  %v2171_v31 = vmul.f32 %v5116_v11, %v1852_v41  ;;  %v2172_v62 = vmul.f32 %v5118_v1, %v1853_v50  ;;  %v6983_v28 = vld [vmem:[#allocation66_spill] sm:$0xff]  ;;  %v6984_v21 = vld [vmem:[#allocation67_spill] sm:$0xff] }
 0x20f   :  { %v1854_v27 = vmul.f32 %v3045_v60, %v6977_v33  ;;  %v1855_v3 = vmul.f32 %v3045_v60, %v6978_v63  ;;  %v2486_v25 = vadd.f32 %v5120_v6, %v2167_v20  ;;  %v2487_v13 = vadd.f32 %v5122_v48, %v2168_v54  ;;  %v6987_v63 = vld [vmem:[#allocation70_spill] sm:$0xff] }
 0x210   :  { %v2488_v39 = vadd.f32 %v5124_v35, %v2169_v47  ;;  %v2489_v36 = vadd.f32 %v5133_v16, %v2170_v12  ;;  %v2490_v17 = vadd.f32 %v5135_v19, %v2171_v31  ;;  %v2491_v10 = vadd.f32 %v5137_v9, %v2172_v62  ;;  %v6985_v47 = vld [vmem:[#allocation68_spill] sm:$0xff]  ;;  %v6986_v31 = vld [vmem:[#allocation69_spill] sm:$0xff] }
 0x211   :  { %v1856_v53 = vmul.f32 %v3045_v60, %v6979_v43  ;;  %v1857_v49 = vmul.f32 %v3045_v60, %v6980_v7  ;;  %v5490_v18 = vpop.eup %3054  ;;  %2774 = vst [vmem:[#allocation8 + $0x210] sm:$0xff] %v2486_v25  ;;  %2775 = vst [vmem:[#allocation8 + $0x218] sm:$0xff] %v2487_v13  ;;  %v1858_v42 = vmul.f32 %v3045_v60, %v6981_v0  ;;  %v6988_v25 = vld [vmem:[#allocation71_spill] sm:$0xff]  ;;  %v6990_v0 = vld [vmem:[#allocation73_spill] sm:$0xff]  ;;  %3064 = vrsqrt.f32 %v5446_v45 }
 0x212   :  { %2776 = vst [vmem:[#allocation8 + $0x220] sm:$0xff] %v2488_v39  ;;  %2777 = vst [vmem:[#allocation8 + $0x228] sm:$0xff] %v2489_v36  ;;  %v1859_v44 = vmul.f32 %v3045_v60, %v6982_v29  ;;  %v2173_v61 = vmul.f32 %v5108_v58, %v1854_v27  ;;  %v2174_v14 = vmul.f32 %v5110_v55, %v1855_v3  ;;  %3066 = vrsqrt.f32 %v5448_v52 }
 0x213   :  { %v5496_v56 = vpop.eup %3056  ;;  %2778 = vst [vmem:[#allocation8 + $0x230] sm:$0xff] %v2490_v17  ;;  %2779 = vst [vmem:[#allocation8 + $0x238] sm:$0xff] %v2491_v10  ;;  %v2175_v2 = vmul.f32 %v5112_v59, %v1856_v53  ;;  %v2176_v32 = vmul.f32 %v5114_v57, %v1857_v49  ;;  %v1860_v30 = vmul.f32 %v3047_v34, %v6983_v28  ;;  %v6989_v49 = vld [vmem:[#allocation72_spill] sm:$0xff]  ;;  %v6991_v28 = vld [vmem:[#allocation74_spill] sm:$0xff]  ;;  %3068 = vrsqrt.f32 %v5454_v22 }
 0x214   :  { %v1861_v24 = vmul.f32 %v3047_v34, %v6984_v21  ;;  %v5502_v37 = vpop.eup %3058  ;;  %v2177_v60 = vmul.f32 %v5116_v11, %v1858_v42  ;;  %v2178_v15 = vmul.f32 %v5118_v1, %v1859_v44  ;;  %v2492_v41 = vadd.f32 %v5120_v6, %v2173_v61  ;;  %v6992_v21 = vld [vmem:[#allocation75_spill] sm:$0xff] }
 0x215   :  { %v2493_v23 = vadd.f32 %v5122_v48, %v2174_v14  ;;  %v5508_v50 = vpop.eup %3060  ;;  %v2494_v20 = vadd.f32 %v5124_v35, %v2175_v2  ;;  %v2495_v54 = vadd.f32 %v5133_v16, %v2176_v32  ;;  %v1862_v12 = vmul.f32 %v3047_v34, %v6985_v47 }
 0x216   :  { %v1863_v62 = vmul.f32 %v3047_v34, %v6986_v31  ;;  %v2496_v33 = vadd.f32 %v5135_v19, %v2177_v60  ;;  %v2497_v27 = vadd.f32 %v5137_v9, %v2178_v15  ;;  %2780 = vst [vmem:[#allocation8 + $0x240] sm:$0xff] %v2492_v41  ;;  %v1864_v3 = vmul.f32 %v3047_v34, %v6987_v63  ;;  %v6993_v60 = vld [vmem:[#allocation76_spill] sm:$0xff]  ;;  %v6994_v41 = vld [vmem:[#allocation77_spill] sm:$0xff]  ;;  %v6995_v31 = vld [vmem:[#allocation78_spill] sm:$0xff] }
 0x217   :  { %2781 = vst [vmem:[#allocation8 + $0x248] sm:$0xff] %v2493_v23  ;;  %v1865_v13 = vmul.f32 %v3047_v34, %v6988_v25  ;;  %v5518_v39 = vpop.eup %3062  ;;  %2782 = vst [vmem:[#allocation8 + $0x250] sm:$0xff] %v2494_v20  ;;  %v2179_v36 = vmul.f32 %v5108_v58, %v1860_v30  ;;  %v2180_v17 = vmul.f32 %v5110_v55, %v1861_v24  ;;  %v1712_v45 = vadd.f32 1e-12, %v5450_v5 }
 0x218   :  { %2783 = vst [vmem:[#allocation8 + $0x258] sm:$0xff] %v2495_v54  ;;  %v2181_v10 = vmul.f32 %v5112_v59, %v1862_v12  ;;  %v2182_v43 = vmul.f32 %v5114_v57, %v1863_v62  ;;  %2784 = vst [vmem:[#allocation8 + $0x260] sm:$0xff] %v2496_v33  ;;  %v2183_v53 = vmul.f32 %v5116_v11, %v1864_v3  ;;  %v6996_v33 = vld [vmem:[#allocation79_spill] sm:$0xff]  ;;  %3070 = vrsqrt.f32 %v5456_v8 }
 0x219   :  { %2785 = vst [vmem:[#allocation8 + $0x268] sm:$0xff] %v2497_v27  ;;  %v2184_v7 = vmul.f32 %v5118_v1, %v1865_v13  ;;  %v1866_v34 = vmul.f32 %v5472_v51, %v6989_v49  ;;  %v1867_v42 = vmul.f32 %v5472_v51, %v6990_v0  ;;  %v2498_v29 = vadd.f32 %v5120_v6, %v2179_v36 }
 0x21a   :  { %v2499_v44 = vadd.f32 %v5122_v48, %v2180_v17  ;;  %v2500_v61 = vadd.f32 %v5124_v35, %v2181_v10  ;;  %v2501_v14 = vadd.f32 %v5133_v16, %v2182_v43  ;;  %v2502_v2 = vadd.f32 %v5135_v19, %v2183_v53  ;;  %v6997_v17 = vld [vmem:[#allocation80_spill] sm:$0xff]  ;;  %v6998_v43 = vld [vmem:[#allocation81_spill] sm:$0xff] }
 0x21b   :  { %v2503_v32 = vadd.f32 %v5137_v9, %v2184_v7  ;;  %v1868_v30 = vmul.f32 %v5472_v51, %v6991_v28  ;;  %v1869_v24 = vmul.f32 %v5472_v51, %v6992_v21  ;;  %2786 = vst [vmem:[#allocation8 + $0x270] sm:$0xff] %v2498_v29  ;;  %v1870_v15 = vmul.f32 %v5472_v51, %v6993_v60 }
 0x21c   :  { %2787 = vst [vmem:[#allocation8 + $0x278] sm:$0xff] %v2499_v44  ;;  %2788 = vst [vmem:[#allocation8 + $0x280] sm:$0xff] %v2500_v61  ;;  %v1871_v23 = vmul.f32 %v5472_v51, %v6994_v41  ;;  %v2185_v20 = vmul.f32 %v5108_v58, %v1866_v34  ;;  %v2186_v54 = vmul.f32 %v5110_v55, %v1867_v42  ;;  %v6999_v34 = vld [vmem:[#allocation82_spill] sm:$0xff]  ;;  %v7000_v42 = vld [vmem:[#allocation83_spill] sm:$0xff]  ;;  %3072 = vrsqrt.f32 %v5458_v4 }
 0x21d   :  { %2789 = vst [vmem:[#allocation8 + $0x288] sm:$0xff] %v2501_v14  ;;  %2790 = vst [vmem:[#allocation8 + $0x290] sm:$0xff] %v2502_v2  ;;  %v2187_v47 = vmul.f32 %v5112_v59, %v1868_v30  ;;  %v2188_v12 = vmul.f32 %v5114_v57, %v1869_v24  ;;  %v1872_v62 = vmul.f32 %v5478_v46, %v6995_v31  ;;  %v7001_v30 = vld [vmem:[#allocation84_spill] sm:$0xff]  ;;  %v7004_v31 = vld [vmem:[#allocation87_spill] sm:$0xff]  ;;  %3074 = vrsqrt.f32 %v5466_v26 }
 0x21e   :  { %2791 = vst [vmem:[#allocation8 + $0x298] sm:$0xff] %v2503_v32  ;;  %v1873_v27 = vmul.f32 %v5478_v46, %v6996_v33  ;;  %v2189_v63 = vmul.f32 %v5116_v11, %v1870_v15  ;;  %v2190_v51 = vmul.f32 %v5118_v1, %v1871_v23  ;;  %v2504_v3 = vadd.f32 %v5120_v6, %v2185_v20  ;;  %v7005_v33 = vld [vmem:[#allocation88_spill] sm:$0xff] }
 0x21f   :  { %v2505_v25 = vadd.f32 %v5122_v48, %v2186_v54  ;;  %v2506_v13 = vadd.f32 %v5124_v35, %v2187_v47  ;;  %v2507_v36 = vadd.f32 %v5133_v16, %v2188_v12  ;;  %v1874_v10 = vmul.f32 %v5478_v46, %v6997_v17  ;;  %v7003_v47 = vld [vmem:[#allocation86_spill] sm:$0xff] }
 0x220   :  { %v1875_v53 = vmul.f32 %v5478_v46, %v6998_v43  ;;  %v2508_v7 = vadd.f32 %v5135_v19, %v2189_v63  ;;  %v2509_v49 = vadd.f32 %v5137_v9, %v2190_v51  ;;  %2792 = vst [vmem:[#allocation8 + $0x2a0] sm:$0xff] %v2504_v3  ;;  %v1876_v0 = vmul.f32 %v5478_v46, %v6999_v34  ;;  %v7006_v63 = vld [vmem:[#allocation89_spill] sm:$0xff]  ;;  %v7007_v17 = vld [vmem:[#allocation90_spill] sm:$0xff]  ;;  %v7008_v43 = vld [vmem:[#allocation91_spill] sm:$0xff] }
 0x221   :  { %2793 = vst [vmem:[#allocation8 + $0x2a8] sm:$0xff] %v2505_v25  ;;  %v1877_v29 = vmul.f32 %v5478_v46, %v7000_v42  ;;  %2794 = vst [vmem:[#allocation8 + $0x2b0] sm:$0xff] %v2506_v13  ;;  %v2191_v44 = vmul.f32 %v5108_v58, %v1872_v62  ;;  %v2192_v61 = vmul.f32 %v5110_v55, %v1873_v27  ;;  %v7002_v46 = vld [vmem:[#allocation85_spill] sm:$0xff]  ;;  %3076 = vrsqrt.f32 %v1712_v45 }
 0x222   :  { %2795 = vst [vmem:[#allocation8 + $0x2b8] sm:$0xff] %v2507_v36  ;;  %v2193_v14 = vmul.f32 %v5112_v59, %v1874_v10  ;;  %v2194_v2 = vmul.f32 %v5114_v57, %v1875_v53  ;;  %2796 = vst [vmem:[#allocation8 + $0x2c0] sm:$0xff] %v2508_v7  ;;  %v2195_v32 = vmul.f32 %v5116_v11, %v1876_v0  ;;  %v5600_v7 = vpop.xlane.xlu0 %1515 }
 0x223   :  { %2797 = vst [vmem:[#allocation8 + $0x2c8] sm:$0xff] %v2509_v49  ;;  %v2196_v28 = vmul.f32 %v5118_v1, %v1877_v29  ;;  %v1878_v21 = vmul.f32 %v5484_v40, %v7001_v30  ;;  %v1879_v24 = vmul.f32 %v5484_v40, %v7002_v46  ;;  %v2510_v60 = vadd.f32 %v5120_v6, %v2191_v44  ;;  %v7009_v44 = vld [vmem:[#allocation92_spill] sm:$0xff] }
 0x224   :  { %v2511_v15 = vadd.f32 %v5122_v48, %v2192_v61  ;;  %v2512_v41 = vadd.f32 %v5124_v35, %v2193_v14  ;;  %v2513_v23 = vadd.f32 %v5133_v16, %v2194_v2  ;;  %v2514_v20 = vadd.f32 %v5135_v19, %v2195_v32  ;;  %v7010_v14 = vld [vmem:[#allocation93_spill] sm:$0xff]  ;;  %v5612_v32 = vpop.xlane.xlu1 %1522 }
 0x225   :  { %v2515_v54 = vadd.f32 %v5137_v9, %v2196_v28  ;;  %v1880_v12 = vmul.f32 %v5484_v40, %v7003_v47  ;;  %v1881_v62 = vmul.f32 %v5484_v40, %v7004_v31  ;;  %2798 = vst [vmem:[#allocation8 + $0x2d0] sm:$0xff] %v2510_v60  ;;  %v1882_v27 = vmul.f32 %v5484_v40, %v7005_v33 }
 0x226   :  { %2799 = vst [vmem:[#allocation8 + $0x2d8] sm:$0xff] %v2511_v15  ;;  %2800 = vst [vmem:[#allocation8 + $0x2e0] sm:$0xff] %v2512_v41  ;;  %v1883_v51 = vmul.f32 %v5484_v40, %v7006_v63  ;;  %v2197_v3 = vmul.f32 %v5108_v58, %v1878_v21  ;;  %v2198_v25 = vmul.f32 %v5110_v55, %v1879_v24  ;;  %v7011_v21 = vld [vmem:[#allocation94_spill] sm:$0xff]  ;;  %v7012_v24 = vld [vmem:[#allocation95_spill] sm:$0xff] }
 0x227   :  { %2801 = vst [vmem:[#allocation8 + $0x2e8] sm:$0xff] %v2513_v23  ;;  %2802 = vst [vmem:[#allocation8 + $0x2f0] sm:$0xff] %v2514_v20  ;;  %v2199_v13 = vmul.f32 %v5112_v59, %v1880_v12  ;;  %v2200_v36 = vmul.f32 %v5114_v57, %v1881_v62  ;;  %v1884_v10 = vmul.f32 %v5490_v18, %v7007_v17  ;;  %v7013_v12 = vld [vmem:[#allocation96_spill] sm:$0xff] }
 0x228   :  { %2803 = vst [vmem:[#allocation8 + $0x2f8] sm:$0xff] %v2515_v54  ;;  %v1885_v53 = vmul.f32 %v5490_v18, %v7008_v43  ;;  %v2201_v40 = vmul.f32 %v5116_v11, %v1882_v27  ;;  %v2202_v49 = vmul.f32 %v5118_v1, %v1883_v51  ;;  %v2516_v34 = vadd.f32 %v5120_v6, %v2197_v3  ;;  %v5634_v3 = vpop.xlane.xlu0 %1529 }
 0x229   :  { %v2517_v0 = vadd.f32 %v5122_v48, %v2198_v25  ;;  %v2518_v42 = vadd.f32 %v5124_v35, %v2199_v13  ;;  %v2519_v29 = vadd.f32 %v5133_v16, %v2200_v36  ;;  %v1886_v61 = vmul.f32 %v5490_v18, %v7009_v44  ;;  %v7015_v36 = vld [vmem:[#allocation98_spill] sm:$0xff] }
 0x22a   :  { %v1887_v2 = vmul.f32 %v5490_v18, %v7010_v14  ;;  %v2520_v28 = vadd.f32 %v5135_v19, %v2201_v40  ;;  %v2521_v30 = vadd.f32 %v5137_v9, %v2202_v49  ;;  %2804 = vst [vmem:[#allocation8 + $0x300] sm:$0xff] %v2516_v34  ;;  %v1888_v46 = vmul.f32 %v5490_v18, %v7011_v21  ;;  %v7018_v49 = vld [vmem:[#allocation101_spill] sm:$0xff]  ;;  %v7019_v14 = vld [vmem:[#allocation102_spill] sm:$0xff] }
 0x22b   :  { %2805 = vst [vmem:[#allocation8 + $0x308] sm:$0xff] %v2517_v0  ;;  %v1889_v60 = vmul.f32 %v5490_v18, %v7012_v24  ;;  %2806 = vst [vmem:[#allocation8 + $0x310] sm:$0xff] %v2518_v42  ;;  %v2203_v15 = vmul.f32 %v5108_v58, %v1884_v10  ;;  %v2204_v41 = vmul.f32 %v5110_v55, %v1885_v53  ;;  %v7014_v18 = vld [vmem:[#allocation97_spill] sm:$0xff]  ;;  %v7016_v10 = vld [vmem:[#allocation99_spill] sm:$0xff] }
 0x22c   :  { %2807 = vst [vmem:[#allocation8 + $0x318] sm:$0xff] %v2519_v29  ;;  %v2205_v23 = vmul.f32 %v5112_v59, %v1886_v61  ;;  %v2206_v20 = vmul.f32 %v5114_v57, %v1887_v2  ;;  %2808 = vst [vmem:[#allocation8 + $0x320] sm:$0xff] %v2520_v28  ;;  %v2207_v54 = vmul.f32 %v5116_v11, %v1888_v46  ;;  %v7017_v53 = vld [vmem:[#allocation100_spill] sm:$0xff]  ;;  %v5648_v29 = vpop.xlane.xlu1 %1536  ;;  %v7020_v28 = vld [vmem:[#allocation103_spill] sm:$0xff] }
 0x22d   :  { %2809 = vst [vmem:[#allocation8 + $0x328] sm:$0xff] %v2521_v30  ;;  %v2208_v47 = vmul.f32 %v5118_v1, %v1889_v60  ;;  %v1890_v31 = vmul.f32 %v5496_v56, %v7013_v12  ;;  %v1891_v62 = vmul.f32 %v5496_v56, %v7014_v18  ;;  %v2522_v33 = vadd.f32 %v5120_v6, %v2203_v15 }
 0x22e   :  { %v2523_v27 = vadd.f32 %v5122_v48, %v2204_v41  ;;  %v2524_v63 = vadd.f32 %v5124_v35, %v2205_v23  ;;  %v2525_v51 = vadd.f32 %v5133_v16, %v2206_v20  ;;  %v2526_v25 = vadd.f32 %v5135_v19, %v2207_v54  ;;  %v7021_v41 = vld [vmem:[#allocation104_spill] sm:$0xff]  ;;  %v7022_v20 = vld [vmem:[#allocation105_spill] sm:$0xff] }
 0x22f   :  { %v2527_v13 = vadd.f32 %v5137_v9, %v2208_v47  ;;  %v1892_v17 = vmul.f32 %v5496_v56, %v7015_v36  ;;  %v1893_v43 = vmul.f32 %v5496_v56, %v7016_v10  ;;  %2810 = vst [vmem:[#allocation8 + $0x330] sm:$0xff] %v2522_v33  ;;  %v1894_v40 = vmul.f32 %v5496_v56, %v7017_v53  ;;  %v7025_v10 = vld [vmem:[#allocation108_spill] sm:$0xff] }
 0x230   :  { %2811 = vst [vmem:[#allocation8 + $0x338] sm:$0xff] %v2523_v27  ;;  %2812 = vst [vmem:[#allocation8 + $0x340] sm:$0xff] %v2524_v63  ;;  %v1895_v34 = vmul.f32 %v5496_v56, %v7018_v49  ;;  %v2209_v0 = vmul.f32 %v5108_v58, %v1890_v31  ;;  %v2210_v42 = vmul.f32 %v5110_v55, %v1891_v62  ;;  %v7023_v31 = vld [vmem:[#allocation106_spill] sm:$0xff]  ;;  %v7024_v62 = vld [vmem:[#allocation107_spill] sm:$0xff]  ;;  %v5672_v27 = vpop.xlane.xlu0 %1543  ;;  %v1669_v52 = vmul.f32 0.0013020834, %v5648_v29 }
 0x231   :  { %2813 = vst [vmem:[#allocation8 + $0x348] sm:$0xff] %v2525_v51  ;;  %2814 = vst [vmem:[#allocation8 + $0x350] sm:$0xff] %v2526_v25  ;;  %v2211_v44 = vmul.f32 %v5112_v59, %v1892_v17  ;;  %v2212_v61 = vmul.f32 %v5114_v57, %v1893_v43  ;;  %v1896_v2 = vmul.f32 %v5502_v37, %v7019_v14  ;;  %v7026_v43 = vld [vmem:[#allocation109_spill] sm:$0xff]  ;;  %v7027_v14 = vld [vmem:[#allocation110_spill] sm:$0xff] }
 0x232   :  { %2815 = vst [vmem:[#allocation8 + $0x358] sm:$0xff] %v2527_v13  ;;  %v1897_v30 = vmul.f32 %v5502_v37, %v7020_v28  ;;  %v2213_v56 = vmul.f32 %v5116_v11, %v1894_v40  ;;  %v2214_v21 = vmul.f32 %v5118_v1, %v1895_v34  ;;  %v2528_v46 = vadd.f32 %v5120_v6, %v2209_v0  ;;  %v5684_v40 = vpop.xlane.xlu1 %1550  ;;  %v7028_v28 = vld [vmem:[#allocation111_spill] sm:$0xff] }
 0x233   :  { %v2529_v24 = vadd.f32 %v5122_v48, %v2210_v42  ;;  %v2530_v60 = vadd.f32 %v5124_v35, %v2211_v44  ;;  %v2531_v15 = vadd.f32 %v5133_v16, %v2212_v61  ;;  %v1898_v23 = vmul.f32 %v5502_v37, %v7021_v41 }
 0x234   :  { %v1899_v54 = vmul.f32 %v5502_v37, %v7022_v20  ;;  %v2532_v47 = vadd.f32 %v5135_v19, %v2213_v56  ;;  %v2533_v12 = vadd.f32 %v5137_v9, %v2214_v21  ;;  %2816 = vst [vmem:[#allocation8 + $0x360] sm:$0xff] %v2528_v46  ;;  %v1900_v18 = vmul.f32 %v5502_v37, %v7023_v31  ;;  %v7029_v56 = vld [vmem:[#allocation112_spill] sm:$0xff]  ;;  %v7030_v46 = vld [vmem:[#allocation113_spill] sm:$0xff]  ;;  %v7031_v20 = vld [vmem:[#allocation114_spill] sm:$0xff]  ;;  %v1558_v31 = vpop.xlane.xlu0 %1557 }
 0x235   :  { %2817 = vst [vmem:[#allocation8 + $0x368] sm:$0xff] %v2529_v24  ;;  %v1901_v33 = vmul.f32 %v5502_v37, %v7024_v62  ;;  %2818 = vst [vmem:[#allocation8 + $0x370] sm:$0xff] %v2530_v60  ;;  %v2215_v63 = vmul.f32 %v5108_v58, %v1896_v2  ;;  %v2216_v51 = vmul.f32 %v5110_v55, %v1897_v30  ;;  %v1671_v22 = vmul.f32 0.0013020834, %v5684_v40 }
 0x236   :  { %2819 = vst [vmem:[#allocation8 + $0x378] sm:$0xff] %v2531_v15  ;;  %v2217_v25 = vmul.f32 %v5112_v59, %v1898_v23  ;;  %v2218_v13 = vmul.f32 %v5114_v57, %v1899_v54  ;;  %2820 = vst [vmem:[#allocation8 + $0x380] sm:$0xff] %v2532_v47  ;;  %v2219_v36 = vmul.f32 %v5116_v11, %v1900_v18  ;;  %v7032_v47 = vld [vmem:[#allocation115_spill] sm:$0xff] }
 0x237   :  { %2821 = vst [vmem:[#allocation8 + $0x388] sm:$0xff] %v2533_v12  ;;  %v2220_v17 = vmul.f32 %v5118_v1, %v1901_v33  ;;  %v1902_v37 = vmul.f32 %v5508_v50, %v7025_v10  ;;  %v1903_v53 = vmul.f32 %v5508_v50, %v7026_v43  ;;  %v2534_v49 = vadd.f32 %v5120_v6, %v2215_v63  ;;  %v1565_v10 = vpop.xlane.xlu1 %1564 }
 0x238   :  { %v2535_v34 = vadd.f32 %v5122_v48, %v2216_v51  ;;  %v2536_v0 = vadd.f32 %v5124_v35, %v2217_v25  ;;  %v2537_v42 = vadd.f32 %v5133_v16, %v2218_v13  ;;  %v2538_v44 = vadd.f32 %v5135_v19, %v2219_v36  ;;  %v7033_v25 = vld [vmem:[#allocation116_spill] sm:$0xff]  ;;  %v7034_v36 = vld [vmem:[#allocation117_spill] sm:$0xff] }
 0x239   :  { %v2539_v61 = vadd.f32 %v5137_v9, %v2220_v17  ;;  %v1904_v2 = vmul.f32 %v5508_v50, %v7027_v14  ;;  %v1905_v30 = vmul.f32 %v5508_v50, %v7028_v28  ;;  %2822 = vst [vmem:[#allocation8 + $0x390] sm:$0xff] %v2534_v49  ;;  %v1906_v21 = vmul.f32 %v5508_v50, %v7029_v56 }
 0x23a   :  { %2823 = vst [vmem:[#allocation8 + $0x398] sm:$0xff] %v2535_v34  ;;  %2824 = vst [vmem:[#allocation8 + $0x3a0] sm:$0xff] %v2536_v0  ;;  %v1907_v24 = vmul.f32 %v5508_v50, %v7030_v46  ;;  %v2221_v60 = vmul.f32 %v5108_v58, %v1902_v37  ;;  %v2222_v15 = vmul.f32 %v5110_v55, %v1903_v53  ;;  %v7035_v53 = vld [vmem:[#allocation118_spill] sm:$0xff]  ;;  %v7036_v34 = vld [vmem:[#allocation119_spill] sm:$0xff]  ;;  %v5754_v29 = vadd.f32 1e-12, %v1671_v22 }
 0x23b   :  { %2825 = vst [vmem:[#allocation8 + $0x3a8] sm:$0xff] %v2537_v42  ;;  %2826 = vst [vmem:[#allocation8 + $0x3b0] sm:$0xff] %v2538_v44  ;;  %v2223_v41 = vmul.f32 %v5112_v59, %v1904_v2  ;;  %v2224_v23 = vmul.f32 %v5114_v57, %v1905_v30  ;;  %v1908_v54 = vmul.f32 %v5518_v39, %v7031_v20  ;;  %v1668_v20 = vmul.f32 0.0013020834, %v5634_v3  ;;  %v7046_v22 = vld [vmem:[#allocation129_spill] sm:$0xff] }
 0x23c   :  { %2827 = vst [vmem:[#allocation8 + $0x3b8] sm:$0xff] %v2539_v61  ;;  %v1909_v12 = vmul.f32 %v5518_v39, %v7032_v47  ;;  %v2225_v18 = vmul.f32 %v5116_v11, %v1906_v21  ;;  %v2226_v50 = vmul.f32 %v5118_v1, %v1907_v24  ;;  %v2540_v62 = vadd.f32 %v5120_v6, %v2221_v60  ;;  %v1572_v24 = vpop.xlane.xlu0 %1571 }
 0x23d   :  { %v2541_v33 = vadd.f32 %v5122_v48, %v2222_v15  ;;  %v2542_v63 = vadd.f32 %v5124_v35, %v2223_v41  ;;  %v2543_v51 = vadd.f32 %v5133_v16, %v2224_v23  ;;  %v1910_v13 = vmul.f32 %v5518_v39, %v7033_v25  ;;  %v1579_v23 = vpop.xlane.xlu1 %1578 }
 0x23e   :  { %v1911_v17 = vmul.f32 %v5518_v39, %v7034_v36  ;;  %v2544_v37 = vadd.f32 %v5135_v19, %v2225_v18  ;;  %v2545_v43 = vadd.f32 %v5137_v9, %v2226_v50  ;;  %2828 = vst [vmem:[#allocation8 + $0x3c0] sm:$0xff] %v2540_v62  ;;  %v1912_v49 = vmul.f32 %v5518_v39, %v7035_v53 }
 0x23f   :  { %2829 = vst [vmem:[#allocation8 + $0x3c8] sm:$0xff] %v2541_v33  ;;  %v1913_v0 = vmul.f32 %v5518_v39, %v7036_v34  ;;  %2830 = vst [vmem:[#allocation8 + $0x3d0] sm:$0xff] %v2542_v63  ;;  %v2227_v42 = vmul.f32 %v5108_v58, %v1908_v54  ;;  %v2228_v44 = vmul.f32 %v5110_v55, %v1909_v12  ;;  %v1666_v39 = vmul.f32 0.0013020834, %v5600_v7  ;;  %v7037_v33 = vld [vmem:[#allocation120_spill] sm:$0xff] }
 0x240   :  { %2831 = vst [vmem:[#allocation8 + $0x3d8] sm:$0xff] %v2543_v51  ;;  %v2229_v61 = vmul.f32 %v5112_v59, %v1910_v13  ;;  %v2230_v14 = vmul.f32 %v5114_v57, %v1911_v17  ;;  %2832 = vst [vmem:[#allocation8 + $0x3e0] sm:$0xff] %v2544_v37  ;;  %v2231_v2 = vmul.f32 %v5116_v11, %v1912_v49  ;;  %v1667_v41 = vmul.f32 0.0013020834, %v5612_v32  ;;  %v1586_v12 = vpop.xlane.xlu0 %1585  ;;  %v7038_v51 = vld [vmem:[#allocation121_spill] sm:$0xff]  ;;  %v7039_v13 = vld [vmem:[#allocation122_spill] sm:$0xff] }
 0x241   :  { %2833 = vst [vmem:[#allocation8 + $0x3e8] sm:$0xff] %v2545_v43  ;;  %v2232_v28 = vmul.f32 %v5118_v1, %v1913_v0  ;;  %v2546_v30 = vadd.f32 %v5120_v6, %v2227_v42  ;;  %v2547_v56 = vadd.f32 %v5122_v48, %v2228_v44  ;;  %v1713_v7 = vadd.f32 1e-12, %v5452_v38  ;;  %v1593_v40 = vpop.xlane.xlu1 %1592  ;;  %v7040_v17 = vld [vmem:[#allocation123_spill] sm:$0xff]  ;;  %v7041_v43 = vld [vmem:[#allocation124_spill] sm:$0xff]  ;;  %v7042_v49 = vld [vmem:[#allocation125_spill] sm:$0xff] }
 0x242   :  { %v2548_v21 = vadd.f32 %v5124_v35, %v2229_v61  ;;  %v2549_v46 = vadd.f32 %v5133_v16, %v2230_v14  ;;  %v2550_v60 = vadd.f32 %v5135_v19, %v2231_v2  ;;  %v1670_v32 = vmul.f32 0.0013020834, %v5672_v27 }
 0x243   :  { %v2551_v15 = vadd.f32 %v5137_v9, %v2232_v28  ;;  %2834 = vst [vmem:[#allocation8 + $0x3f0] sm:$0xff] %v2546_v30  ;;  %2835 = vst [vmem:[#allocation8 + $0x3f8] sm:$0xff] %v2547_v56  ;;  %v1714_v54 = vadd.f32 1e-12, %v1666_v39  ;;  %v1672_v47 = vmul.f32 0.0013020834, %v1558_v31  ;;  %3078 = vrsqrt.f32 %v1713_v7  ;;  %v3065_v31 = vpop.eup %3064 }
 0x244   :  { %2836 = vst [vmem:[#allocation8 + $0x400] sm:$0xff] %v2548_v21  ;;  %2837 = vst [vmem:[#allocation8 + $0x408] sm:$0xff] %v2549_v46  ;;  %v1715_v5 = vadd.f32 1e-12, %v1667_v41  ;;  %v1673_v38 = vmul.f32 0.0013020834, %v1565_v10  ;;  %v1914_v63 = vmul.f32 %v3065_v31, %v7037_v33  ;;  %v1915_v25 = vmul.f32 %v3065_v31, %v7038_v51  ;;  %v3067_v37 = vpop.eup %3066 }
 0x245   :  { %2838 = vst [vmem:[#allocation8 + $0x410] sm:$0xff] %v2550_v60  ;;  %2839 = vst [vmem:[#allocation8 + $0x418] sm:$0xff] %v2551_v15  ;;  %v1716_v8 = vadd.f32 1e-12, %v1668_v20  ;;  %v5750_v18 = vadd.f32 1e-12, %v1669_v52  ;;  %3080 = vrsqrt.f32 %v1714_v54  ;;  %v1916_v36 = vmul.f32 %v3065_v31, %v7039_v13  ;;  %v3069_v42 = vpop.eup %3068 }
 0x246   :  { %v5752_v3 = vadd.f32 1e-12, %v1670_v32  ;;  %v5756_v4 = vadd.f32 1e-12, %v1672_v47  ;;  %v5758_v27 = vmul.f32 0.0013020834, %v1572_v24  ;;  %3082 = vrsqrt.f32 %v1715_v5  ;;  %v5778_v28 = vpop.eup %3070 }
 0x247   :  { %v5760_v26 = vadd.f32 1e-12, %v1673_v38  ;;  %v5762_v50 = vmul.f32 0.0013020834, %v1579_v23  ;;  %v5764_v62 = vmul.f32 0.0013020834, %v1586_v12  ;;  %v1917_v10 = vmul.f32 %v3065_v31, %v7040_v17  ;;  %v5784_v60 = vpop.eup %3072 }
 0x248   :  { %v1918_v53 = vmul.f32 %v3065_v31, %v7041_v43  ;;  %v1919_v34 = vmul.f32 %v3065_v31, %v7042_v49  ;;  %3084 = vrsqrt.f32 %v1716_v8  ;;  %v5772_v0 = vmul.f32 0.0013020834, %v1593_v40  ;;  %v7043_v56 = vld [vmem:[#allocation126_spill] sm:$0xff]  ;;  %v7044_v46 = vld [vmem:[#allocation127_spill] sm:$0xff]  ;;  %v5790_v23 = vpop.eup %3074  ;;  %v7045_v32 = vld [vmem:[#allocation128_spill] sm:$0xff] }
 0x249   :  { %v2233_v44 = vmul.f32 %v5108_v58, %v1914_v63  ;;  %v2234_v61 = vmul.f32 %v5110_v55, %v1915_v25  ;;  %v2235_v14 = vmul.f32 %v5112_v59, %v1916_v36  ;;  %v2236_v2 = vmul.f32 %v5114_v57, %v1917_v10  ;;  %v5796_v5 = vpop.eup %3076  ;;  %v7047_v38 = vld [vmem:[#allocation130_spill] sm:$0xff]  ;;  %v7048_v8 = vld [vmem:[#allocation131_spill] sm:$0xff]  ;;  %v7049_v13 = vld [vmem:[#allocation132_spill] sm:$0xff] }
 0x24a   :  { %v2237_v39 = vmul.f32 %v5116_v11, %v1918_v53  ;;  %v2238_v30 = vmul.f32 %v5118_v1, %v1919_v34  ;;  %v1920_v21 = vmul.f32 %v3067_v37, %v7043_v56  ;;  %v1921_v24 = vmul.f32 %v3067_v37, %v7044_v46  ;;  %v7050_v17 = vld [vmem:[#allocation133_spill] sm:$0xff] }
 0x24b   :  { %v2552_v15 = vadd.f32 %v5120_v6, %v2233_v44  ;;  %v2553_v41 = vadd.f32 %v5122_v48, %v2234_v61  ;;  %v2554_v45 = vadd.f32 %v5124_v35, %v2235_v14  ;;  %v2555_v7 = vadd.f32 %v5133_v16, %v2236_v2  ;;  %v7051_v2 = vld [vmem:[#allocation134_spill] sm:$0xff] }
 0x24c   :  { %v2556_v20 = vadd.f32 %v5135_v19, %v2237_v39  ;;  %v2557_v52 = vadd.f32 %v5137_v9, %v2238_v30  ;;  %v1922_v54 = vmul.f32 %v3067_v37, %v7045_v32  ;;  %v1923_v47 = vmul.f32 %v3067_v37, %v7046_v22  ;;  %v7052_v30 = vld [vmem:[#allocation135_spill] sm:$0xff] }
 0x24d   :  { %2840 = vst [vmem:[#allocation8 + $0x420] sm:$0xff] %v2552_v15  ;;  %2841 = vst [vmem:[#allocation8 + $0x428] sm:$0xff] %v2553_v41  ;;  %v1924_v12 = vmul.f32 %v3067_v37, %v7047_v38  ;;  %v1925_v40 = vmul.f32 %v3067_v37, %v7048_v8  ;;  %v2239_v31 = vmul.f32 %v5108_v58, %v1920_v21  ;;  %v5802_v63 = vpop.eup %3078  ;;  %v7054_v41 = vld [vmem:[#allocation137_spill] sm:$0xff]  ;;  %v7055_v38 = vld [vmem:[#allocation138_spill] sm:$0xff]  ;;  %3086 = vrsqrt.f32 %v5750_v18 }
 0x24e   :  { %2842 = vst [vmem:[#allocation8 + $0x430] sm:$0xff] %v2554_v45  ;;  %2843 = vst [vmem:[#allocation8 + $0x438] sm:$0xff] %v2555_v7  ;;  %v2240_v33 = vmul.f32 %v5110_v55, %v1921_v24  ;;  %v2241_v51 = vmul.f32 %v5112_v59, %v1922_v54  ;;  %v2242_v25 = vmul.f32 %v5114_v57, %v1923_v47  ;;  %v7053_v24 = vld [vmem:[#allocation136_spill] sm:$0xff]  ;;  %3088 = vrsqrt.f32 %v5752_v3 }
 0x24f   :  { %2844 = vst [vmem:[#allocation8 + $0x440] sm:$0xff] %v2556_v20  ;;  %2845 = vst [vmem:[#allocation8 + $0x448] sm:$0xff] %v2557_v52  ;;  %v1926_v36 = vmul.f32 %v3069_v42, %v7049_v13  ;;  %v1927_v10 = vmul.f32 %v3069_v42, %v7050_v17  ;;  %v5808_v43 = vpop.eup %3080  ;;  %v2243_v37 = vmul.f32 %v5116_v11, %v1924_v12  ;;  %v7056_v12 = vld [vmem:[#allocation139_spill] sm:$0xff]  ;;  %3090 = vrsqrt.f32 %v5754_v29 }
 0x250   :  { %v2244_v53 = vmul.f32 %v5118_v1, %v1925_v40  ;;  %v2558_v49 = vadd.f32 %v5120_v6, %v2239_v31  ;;  %v2559_v34 = vadd.f32 %v5122_v48, %v2240_v33  ;;  %v5814_v44 = vpop.eup %3082  ;;  %v2560_v61 = vadd.f32 %v5124_v35, %v2241_v51 }
 0x251   :  { %v2561_v14 = vadd.f32 %v5133_v16, %v2242_v25  ;;  %v1928_v39 = vmul.f32 %v3069_v42, %v7051_v2  ;;  %v1929_v56 = vmul.f32 %v3069_v42, %v7052_v30  ;;  %v2562_v21 = vadd.f32 %v5135_v19, %v2243_v37 }
 0x252   :  { %v2563_v46 = vadd.f32 %v5137_v9, %v2244_v53  ;;  %2846 = vst [vmem:[#allocation8 + $0x450] sm:$0xff] %v2558_v49  ;;  %2847 = vst [vmem:[#allocation8 + $0x458] sm:$0xff] %v2559_v34  ;;  %v1930_v15 = vmul.f32 %v3069_v42, %v7053_v24  ;;  %v1931_v45 = vmul.f32 %v3069_v42, %v7054_v41  ;;  %v5824_v7 = vpop.eup %3084  ;;  %v7059_v53 = vld [vmem:[#allocation142_spill] sm:$0xff]  ;;  %v7060_v34 = vld [vmem:[#allocation143_spill] sm:$0xff]  ;;  %v1723_v18 = vadd.f32 1e-12, %v5762_v50 }
 0x253   :  { %2848 = vst [vmem:[#allocation8 + $0x460] sm:$0xff] %v2560_v61  ;;  %2849 = vst [vmem:[#allocation8 + $0x468] sm:$0xff] %v2561_v14  ;;  %v2245_v20 = vmul.f32 %v5108_v58, %v1926_v36  ;;  %v2246_v52 = vmul.f32 %v5110_v55, %v1927_v10  ;;  %v2247_v32 = vmul.f32 %v5112_v59, %v1928_v39  ;;  %v7057_v36 = vld [vmem:[#allocation140_spill] sm:$0xff]  ;;  %v7058_v10 = vld [vmem:[#allocation141_spill] sm:$0xff]  ;;  %3092 = vrsqrt.f32 %v5756_v4 }
 0x254   :  { %v2248_v54 = vmul.f32 %v5114_v57, %v1929_v56  ;;  %2850 = vst [vmem:[#allocation8 + $0x470] sm:$0xff] %v2562_v21  ;;  %2851 = vst [vmem:[#allocation8 + $0x478] sm:$0xff] %v2563_v46  ;;  %v2249_v22 = vmul.f32 %v5116_v11, %v1930_v15  ;;  %v2250_v47 = vmul.f32 %v5118_v1, %v1931_v45  ;;  %v7061_v56 = vld [vmem:[#allocation144_spill] sm:$0xff]  ;;  %v7062_v46 = vld [vmem:[#allocation145_spill] sm:$0xff]  ;;  %3094 = vrsqrt.f32 %v5760_v26 }
 0x255   :  { %v1932_v42 = vmul.f32 %v5778_v28, %v7055_v38  ;;  %v1933_v8 = vmul.f32 %v5778_v28, %v7056_v12  ;;  %v2564_v40 = vadd.f32 %v5120_v6, %v2245_v20  ;;  %v2565_v31 = vadd.f32 %v5122_v48, %v2246_v52  ;;  %v7065_v12 = vld [vmem:[#allocation148_spill] sm:$0xff] }
 0x256   :  { %v2566_v33 = vadd.f32 %v5124_v35, %v2247_v32  ;;  %v2567_v51 = vadd.f32 %v5133_v16, %v2248_v54  ;;  %v2568_v25 = vadd.f32 %v5135_v19, %v2249_v22  ;;  %v2569_v13 = vadd.f32 %v5137_v9, %v2250_v47  ;;  %v7063_v32 = vld [vmem:[#allocation146_spill] sm:$0xff]  ;;  %v7064_v22 = vld [vmem:[#allocation147_spill] sm:$0xff] }
 0x257   :  { %v1934_v17 = vmul.f32 %v5778_v28, %v7057_v36  ;;  %v1935_v37 = vmul.f32 %v5778_v28, %v7058_v10  ;;  %2852 = vst [vmem:[#allocation8 + $0x480] sm:$0xff] %v2564_v40  ;;  %2853 = vst [vmem:[#allocation8 + $0x488] sm:$0xff] %v2565_v31  ;;  %v1936_v49 = vmul.f32 %v5778_v28, %v7059_v53  ;;  %v7066_v40 = vld [vmem:[#allocation149_spill] sm:$0xff]  ;;  %v7067_v10 = vld [vmem:[#allocation150_spill] sm:$0xff]  ;;  %v1725_v3 = vadd.f32 1e-12, %v5772_v0 }
 0x258   :  { %2854 = vst [vmem:[#allocation8 + $0x490] sm:$0xff] %v2566_v33  ;;  %2855 = vst [vmem:[#allocation8 + $0x498] sm:$0xff] %v2567_v51  ;;  %v1937_v61 = vmul.f32 %v5778_v28, %v7060_v34  ;;  %v2251_v14 = vmul.f32 %v5108_v58, %v1932_v42  ;;  %v2252_v2 = vmul.f32 %v5110_v55, %v1933_v8 }
 0x259   :  { %2856 = vst [vmem:[#allocation8 + $0x4a0] sm:$0xff] %v2568_v25  ;;  %2857 = vst [vmem:[#allocation8 + $0x4a8] sm:$0xff] %v2569_v13  ;;  %v2253_v39 = vmul.f32 %v5112_v59, %v1934_v17  ;;  %v2254_v30 = vmul.f32 %v5114_v57, %v1935_v37  ;;  %v1938_v21 = vmul.f32 %v5784_v60, %v7061_v56 }
 0x25a   :  { %v1939_v24 = vmul.f32 %v5784_v60, %v7062_v46  ;;  %v2255_v15 = vmul.f32 %v5116_v11, %v1936_v49  ;;  %v2256_v28 = vmul.f32 %v5118_v1, %v1937_v61  ;;  %v2570_v41 = vadd.f32 %v5120_v6, %v2251_v14 }
 0x25b   :  { %v2571_v45 = vadd.f32 %v5122_v48, %v2252_v2  ;;  %v2572_v20 = vadd.f32 %v5124_v35, %v2253_v39  ;;  %v2573_v52 = vadd.f32 %v5133_v16, %v2254_v30  ;;  %v1940_v54 = vmul.f32 %v5784_v60, %v7063_v32  ;;  %v7069_v30 = vld [vmem:[#allocation152_spill] sm:$0xff] }
 0x25c   :  { %v1941_v47 = vmul.f32 %v5784_v60, %v7064_v22  ;;  %v2574_v38 = vadd.f32 %v5135_v19, %v2255_v15  ;;  %v2575_v42 = vadd.f32 %v5137_v9, %v2256_v28  ;;  %2858 = vst [vmem:[#allocation8 + $0x4b0] sm:$0xff] %v2570_v41  ;;  %v1942_v8 = vmul.f32 %v5784_v60, %v7065_v12  ;;  %v7072_v28 = vld [vmem:[#allocation155_spill] sm:$0xff] }
 0x25d   :  { %2859 = vst [vmem:[#allocation8 + $0x4b8] sm:$0xff] %v2571_v45  ;;  %v1943_v31 = vmul.f32 %v5784_v60, %v7066_v40  ;;  %2860 = vst [vmem:[#allocation8 + $0x4c0] sm:$0xff] %v2572_v20  ;;  %v2257_v33 = vmul.f32 %v5108_v58, %v1938_v21  ;;  %v2258_v51 = vmul.f32 %v5110_v55, %v1939_v24  ;;  %v7068_v60 = vld [vmem:[#allocation151_spill] sm:$0xff]  ;;  %v7070_v21 = vld [vmem:[#allocation153_spill] sm:$0xff] }
 0x25e   :  { %2861 = vst [vmem:[#allocation8 + $0x4c8] sm:$0xff] %v2573_v52  ;;  %v2259_v25 = vmul.f32 %v5112_v59, %v1940_v54  ;;  %v2260_v13 = vmul.f32 %v5114_v57, %v1941_v47  ;;  %2862 = vst [vmem:[#allocation8 + $0x4d0] sm:$0xff] %v2574_v38  ;;  %v2261_v36 = vmul.f32 %v5116_v11, %v1942_v8  ;;  %v7071_v24 = vld [vmem:[#allocation154_spill] sm:$0xff]  ;;  %v7073_v54 = vld [vmem:[#allocation156_spill] sm:$0xff] }
 0x25f   :  { %2863 = vst [vmem:[#allocation8 + $0x4d8] sm:$0xff] %v2575_v42  ;;  %v2262_v17 = vmul.f32 %v5118_v1, %v1943_v31  ;;  %v1944_v37 = vmul.f32 %v5790_v23, %v7067_v10  ;;  %v1945_v53 = vmul.f32 %v5790_v23, %v7068_v60  ;;  %v2576_v49 = vadd.f32 %v5120_v6, %v2257_v33  ;;  %v7074_v47 = vld [vmem:[#allocation157_spill] sm:$0xff]  ;;  %v7075_v33 = vld [vmem:[#allocation158_spill] sm:$0xff]  ;;  %v7077_v10 = vld [vmem:[#allocation160_spill] sm:$0xff] }
 0x260   :  { %v2577_v34 = vadd.f32 %v5122_v48, %v2258_v51  ;;  %v2578_v61 = vadd.f32 %v5124_v35, %v2259_v25  ;;  %v2579_v14 = vadd.f32 %v5133_v16, %v2260_v13  ;;  %v2580_v2 = vadd.f32 %v5135_v19, %v2261_v36  ;;  %v7076_v25 = vld [vmem:[#allocation159_spill] sm:$0xff]  ;;  %v7078_v60 = vld [vmem:[#allocation161_spill] sm:$0xff] }
 0x261   :  { %v2581_v39 = vadd.f32 %v5137_v9, %v2262_v17  ;;  %v1946_v56 = vmul.f32 %v5790_v23, %v7069_v30  ;;  %v1947_v46 = vmul.f32 %v5790_v23, %v7070_v21  ;;  %2864 = vst [vmem:[#allocation8 + $0x4e0] sm:$0xff] %v2576_v49  ;;  %v1948_v15 = vmul.f32 %v5790_v23, %v7071_v24  ;;  %v7079_v30 = vld [vmem:[#allocation162_spill] sm:$0xff] }
 0x262   :  { %2865 = vst [vmem:[#allocation8 + $0x4e8] sm:$0xff] %v2577_v34  ;;  %2866 = vst [vmem:[#allocation8 + $0x4f0] sm:$0xff] %v2578_v61  ;;  %v1949_v41 = vmul.f32 %v5790_v23, %v7072_v28  ;;  %v2263_v45 = vmul.f32 %v5108_v58, %v1944_v37  ;;  %v2264_v20 = vmul.f32 %v5110_v55, %v1945_v53 }
 0x263   :  { %2867 = vst [vmem:[#allocation8 + $0x4f8] sm:$0xff] %v2579_v14  ;;  %2868 = vst [vmem:[#allocation8 + $0x500] sm:$0xff] %v2580_v2  ;;  %v2265_v52 = vmul.f32 %v5112_v59, %v1946_v56  ;;  %v2266_v32 = vmul.f32 %v5114_v57, %v1947_v46  ;;  %v1950_v22 = vmul.f32 %v5796_v5, %v7073_v54 }
 0x264   :  { %2869 = vst [vmem:[#allocation8 + $0x508] sm:$0xff] %v2581_v39  ;;  %v1951_v38 = vmul.f32 %v5796_v5, %v7074_v47  ;;  %v2267_v42 = vmul.f32 %v5116_v11, %v1948_v15  ;;  %v2268_v23 = vmul.f32 %v5118_v1, %v1949_v41  ;;  %v2582_v12 = vadd.f32 %v5120_v6, %v2263_v45 }
 0x265   :  { %v2583_v8 = vadd.f32 %v5122_v48, %v2264_v20  ;;  %v2584_v40 = vadd.f32 %v5124_v35, %v2265_v52  ;;  %v2585_v31 = vadd.f32 %v5133_v16, %v2266_v32  ;;  %v1952_v51 = vmul.f32 %v5796_v5, %v7075_v33  ;;  %v7081_v20 = vld [vmem:[#allocation164_spill] sm:$0xff]  ;;  %v7082_v32 = vld [vmem:[#allocation165_spill] sm:$0xff] }
 0x266   :  { %v1953_v13 = vmul.f32 %v5796_v5, %v7076_v25  ;;  %v2586_v36 = vadd.f32 %v5135_v19, %v2267_v42  ;;  %v2587_v17 = vadd.f32 %v5137_v9, %v2268_v23  ;;  %2870 = vst [vmem:[#allocation8 + $0x510] sm:$0xff] %v2582_v12  ;;  %v1954_v37 = vmul.f32 %v5796_v5, %v7077_v10 }
 0x267   :  { %2871 = vst [vmem:[#allocation8 + $0x518] sm:$0xff] %v2583_v8  ;;  %v1955_v53 = vmul.f32 %v5796_v5, %v7078_v60  ;;  %2872 = vst [vmem:[#allocation8 + $0x520] sm:$0xff] %v2584_v40  ;;  %v2269_v49 = vmul.f32 %v5108_v58, %v1950_v22  ;;  %v2270_v34 = vmul.f32 %v5110_v55, %v1951_v38  ;;  %v7080_v5 = vld [vmem:[#allocation163_spill] sm:$0xff]  ;;  %v7083_v22 = vld [vmem:[#allocation166_spill] sm:$0xff] }
 0x268   :  { %2873 = vst [vmem:[#allocation8 + $0x528] sm:$0xff] %v2585_v31  ;;  %v2271_v61 = vmul.f32 %v5112_v59, %v1952_v51  ;;  %v2272_v14 = vmul.f32 %v5114_v57, %v1953_v13  ;;  %2874 = vst [vmem:[#allocation8 + $0x530] sm:$0xff] %v2586_v36  ;;  %v2273_v2 = vmul.f32 %v5116_v11, %v1954_v37  ;;  %v7084_v38 = vld [vmem:[#allocation167_spill] sm:$0xff]  ;;  %v7085_v31 = vld [vmem:[#allocation168_spill] sm:$0xff] }
 0x269   :  { %2875 = vst [vmem:[#allocation8 + $0x538] sm:$0xff] %v2587_v17  ;;  %v2274_v39 = vmul.f32 %v5118_v1, %v1955_v53  ;;  %v1956_v56 = vmul.f32 %v5802_v63, %v7079_v30  ;;  %v1957_v21 = vmul.f32 %v5802_v63, %v7080_v5  ;;  %v2588_v46 = vadd.f32 %v5120_v6, %v2269_v49  ;;  %v7086_v51 = vld [vmem:[#allocation169_spill] sm:$0xff]  ;;  %v7087_v60 = vld [vmem:[#allocation170_spill] sm:$0xff]  ;;  %v7088_v49 = vld [vmem:[#allocation171_spill] sm:$0xff] }
 0x26a   :  { %v2589_v24 = vadd.f32 %v5122_v48, %v2270_v34  ;;  %v2590_v15 = vadd.f32 %v5124_v35, %v2271_v61  ;;  %v2591_v28 = vadd.f32 %v5133_v16, %v2272_v14  ;;  %v2592_v41 = vadd.f32 %v5135_v19, %v2273_v2  ;;  %v7089_v2 = vld [vmem:[#allocation172_spill] sm:$0xff]  ;;  %v7090_v30 = vld [vmem:[#allocation173_spill] sm:$0xff] }
 0x26b   :  { %v2593_v45 = vadd.f32 %v5137_v9, %v2274_v39  ;;  %v1958_v52 = vmul.f32 %v5802_v63, %v7081_v20  ;;  %v1959_v54 = vmul.f32 %v5802_v63, %v7082_v32  ;;  %2876 = vst [vmem:[#allocation8 + $0x540] sm:$0xff] %v2588_v46  ;;  %v1960_v47 = vmul.f32 %v5802_v63, %v7083_v22 }
 0x26c   :  { %2877 = vst [vmem:[#allocation8 + $0x548] sm:$0xff] %v2589_v24  ;;  %2878 = vst [vmem:[#allocation8 + $0x550] sm:$0xff] %v2590_v15  ;;  %v1961_v42 = vmul.f32 %v5802_v63, %v7084_v38  ;;  %v2275_v23 = vmul.f32 %v5108_v58, %v1956_v56  ;;  %v2276_v12 = vmul.f32 %v5110_v55, %v1957_v21 }
 0x26d   :  { %2879 = vst [vmem:[#allocation8 + $0x558] sm:$0xff] %v2591_v28  ;;  %2880 = vst [vmem:[#allocation8 + $0x560] sm:$0xff] %v2592_v41  ;;  %v2277_v8 = vmul.f32 %v5112_v59, %v1958_v52  ;;  %v2278_v40 = vmul.f32 %v5114_v57, %v1959_v54  ;;  %v1962_v33 = vmul.f32 %v5808_v43, %v7085_v31  ;;  %v7091_v41 = vld [vmem:[#allocation174_spill] sm:$0xff] }
 0x26e   :  { %2881 = vst [vmem:[#allocation8 + $0x568] sm:$0xff] %v2593_v45  ;;  %v1963_v25 = vmul.f32 %v5808_v43, %v7086_v51  ;;  %v2279_v13 = vmul.f32 %v5116_v11, %v1960_v47  ;;  %v2280_v63 = vmul.f32 %v5118_v1, %v1961_v42  ;;  %v2594_v36 = vadd.f32 %v5120_v6, %v2275_v23  ;;  %v7093_v42 = vld [vmem:[#allocation176_spill] sm:$0xff] }
 0x26f   :  { %v2595_v17 = vadd.f32 %v5122_v48, %v2276_v12  ;;  %v2596_v10 = vadd.f32 %v5124_v35, %v2277_v8  ;;  %v2597_v37 = vadd.f32 %v5133_v16, %v2278_v40  ;;  %v1964_v53 = vmul.f32 %v5808_v43, %v7087_v60  ;;  %v7094_v12 = vld [vmem:[#allocation177_spill] sm:$0xff]  ;;  %v7095_v40 = vld [vmem:[#allocation178_spill] sm:$0xff] }
 0x270   :  { %v1965_v34 = vmul.f32 %v5808_v43, %v7088_v49  ;;  %v2598_v61 = vadd.f32 %v5135_v19, %v2279_v13  ;;  %v2599_v14 = vadd.f32 %v5137_v9, %v2280_v63  ;;  %2882 = vst [vmem:[#allocation8 + $0x570] sm:$0xff] %v2594_v36  ;;  %v1966_v39 = vmul.f32 %v5808_v43, %v7089_v2 }
 0x271   :  { %2883 = vst [vmem:[#allocation8 + $0x578] sm:$0xff] %v2595_v17  ;;  %v1967_v56 = vmul.f32 %v5808_v43, %v7090_v30  ;;  %2884 = vst [vmem:[#allocation8 + $0x580] sm:$0xff] %v2596_v10  ;;  %v2281_v5 = vmul.f32 %v5108_v58, %v1962_v33  ;;  %v2282_v21 = vmul.f32 %v5110_v55, %v1963_v25  ;;  %v7092_v43 = vld [vmem:[#allocation175_spill] sm:$0xff]  ;;  %v7097_v17 = vld [vmem:[#allocation180_spill] sm:$0xff] }
 0x272   :  { %2885 = vst [vmem:[#allocation8 + $0x588] sm:$0xff] %v2597_v37  ;;  %v2283_v46 = vmul.f32 %v5112_v59, %v1964_v53  ;;  %v2284_v24 = vmul.f32 %v5114_v57, %v1965_v34  ;;  %2886 = vst [vmem:[#allocation8 + $0x590] sm:$0xff] %v2598_v61  ;;  %v2285_v15 = vmul.f32 %v5116_v11, %v1966_v39  ;;  %v7096_v33 = vld [vmem:[#allocation179_spill] sm:$0xff]  ;;  %v7098_v37 = vld [vmem:[#allocation181_spill] sm:$0xff]  ;;  %v1600_v53 = vpop.xlane.xlu0 %1599 }
 0x273   :  { %2887 = vst [vmem:[#allocation8 + $0x598] sm:$0xff] %v2599_v14  ;;  %v2286_v28 = vmul.f32 %v5118_v1, %v1967_v56  ;;  %v1968_v45 = vmul.f32 %v5814_v44, %v7091_v41  ;;  %v1969_v20 = vmul.f32 %v5814_v44, %v7092_v43  ;;  %v2600_v52 = vadd.f32 %v5120_v6, %v2281_v5  ;;  %v7099_v39 = vld [vmem:[#allocation182_spill] sm:$0xff]  ;;  %v7100_v56 = vld [vmem:[#allocation183_spill] sm:$0xff] }
 0x274   :  { %v2601_v32 = vadd.f32 %v5122_v48, %v2282_v21  ;;  %v2602_v54 = vadd.f32 %v5124_v35, %v2283_v46  ;;  %v2603_v22 = vadd.f32 %v5133_v16, %v2284_v24  ;;  %v2604_v47 = vadd.f32 %v5135_v19, %v2285_v15  ;;  %v7101_v24 = vld [vmem:[#allocation184_spill] sm:$0xff] }
 0x275   :  { %v2605_v38 = vadd.f32 %v5137_v9, %v2286_v28  ;;  %v1970_v23 = vmul.f32 %v5814_v44, %v7093_v42  ;;  %v1971_v8 = vmul.f32 %v5814_v44, %v7094_v12  ;;  %2888 = vst [vmem:[#allocation8 + $0x5a0] sm:$0xff] %v2600_v52  ;;  %v1972_v31 = vmul.f32 %v5814_v44, %v7095_v40  ;;  %v7102_v28 = vld [vmem:[#allocation185_spill] sm:$0xff] }
 0x276   :  { %2889 = vst [vmem:[#allocation8 + $0x5a8] sm:$0xff] %v2601_v32  ;;  %2890 = vst [vmem:[#allocation8 + $0x5b0] sm:$0xff] %v2602_v54  ;;  %v1973_v51 = vmul.f32 %v5814_v44, %v7096_v33  ;;  %v2287_v25 = vmul.f32 %v5108_v58, %v1968_v45  ;;  %v2288_v13 = vmul.f32 %v5110_v55, %v1969_v20  ;;  %v1607_v32 = vpop.xlane.xlu1 %1606  ;;  %v1614_v12 = vpop.xlane.xlu0 %1613  ;;  %v1724_v33 = vadd.f32 1e-12, %v5764_v62 }
 0x277   :  { %2891 = vst [vmem:[#allocation8 + $0x5b8] sm:$0xff] %v2603_v22  ;;  %2892 = vst [vmem:[#allocation8 + $0x5c0] sm:$0xff] %v2604_v47  ;;  %v2289_v63 = vmul.f32 %v5112_v59, %v1970_v23  ;;  %v2290_v36 = vmul.f32 %v5114_v57, %v1971_v8  ;;  %v1974_v10 = vmul.f32 %v5824_v7, %v7097_v17  ;;  %v7103_v17 = vld [vmem:[#allocation186_spill] sm:$0xff] }
 0x278   :  { %2893 = vst [vmem:[#allocation8 + $0x5c8] sm:$0xff] %v2605_v38  ;;  %v1975_v60 = vmul.f32 %v5824_v7, %v7098_v37  ;;  %v2291_v49 = vmul.f32 %v5116_v11, %v1972_v31  ;;  %v2292_v44 = vmul.f32 %v5118_v1, %v1973_v51  ;;  %v2606_v34 = vadd.f32 %v5120_v6, %v2287_v25  ;;  %v7105_v37 = vld [vmem:[#allocation188_spill] sm:$0xff] }
 0x279   :  { %v2607_v61 = vadd.f32 %v5122_v48, %v2288_v13  ;;  %v2608_v14 = vadd.f32 %v5124_v35, %v2289_v63  ;;  %v2609_v2 = vadd.f32 %v5133_v16, %v2290_v36  ;;  %v1976_v30 = vmul.f32 %v5824_v7, %v7099_v39  ;;  %v3087_v36 = vpop.eup %3086 }
 0x27a   :  { %v1977_v5 = vmul.f32 %v5824_v7, %v7100_v56  ;;  %v2610_v21 = vadd.f32 %v5135_v19, %v2291_v49  ;;  %v2611_v46 = vadd.f32 %v5137_v9, %v2292_v44  ;;  %2894 = vst [vmem:[#allocation8 + $0x5d0] sm:$0xff] %v2606_v34  ;;  %v1978_v15 = vmul.f32 %v5824_v7, %v7101_v24  ;;  %v1628_v63 = vpop.xlane.xlu0 %1627  ;;  %v3089_v44 = vpop.eup %3088  ;;  %v7107_v34 = vld [vmem:[#allocation190_spill] sm:$0xff] }
 0x27b   :  { %2895 = vst [vmem:[#allocation8 + $0x5d8] sm:$0xff] %v2607_v61  ;;  %v1979_v41 = vmul.f32 %v5824_v7, %v7102_v28  ;;  %2896 = vst [vmem:[#allocation8 + $0x5e0] sm:$0xff] %v2608_v14  ;;  %v2293_v45 = vmul.f32 %v5108_v58, %v1974_v10  ;;  %v2294_v43 = vmul.f32 %v5110_v55, %v1975_v60  ;;  %v1678_v7 = vmul.f32 0.0013020834, %v1600_v53  ;;  %v7104_v10 = vld [vmem:[#allocation187_spill] sm:$0xff]  ;;  %v7106_v53 = vld [vmem:[#allocation189_spill] sm:$0xff] }
 0x27c   :  { %2897 = vst [vmem:[#allocation8 + $0x5e8] sm:$0xff] %v2609_v2  ;;  %v2295_v20 = vmul.f32 %v5112_v59, %v1976_v30  ;;  %v2296_v52 = vmul.f32 %v5114_v57, %v1977_v5  ;;  %2898 = vst [vmem:[#allocation8 + $0x5f0] sm:$0xff] %v2610_v21  ;;  %v2297_v54 = vmul.f32 %v5116_v11, %v1978_v15  ;;  %v1722_v31 = vadd.f32 1e-12, %v5758_v27  ;;  %v1621_v27 = vpop.xlane.xlu1 %1620  ;;  %v7108_v14 = vld [vmem:[#allocation191_spill] sm:$0xff]  ;;  %v3091_v30 = vpop.eup %3090 }
 0x27d   :  { %2899 = vst [vmem:[#allocation8 + $0x5f8] sm:$0xff] %v2611_v46  ;;  %v2298_v22 = vmul.f32 %v5118_v1, %v1979_v41  ;;  %v2612_v47 = vadd.f32 %v5120_v6, %v2293_v45  ;;  %v2613_v38 = vadd.f32 %v5122_v48, %v2294_v43  ;;  %v1679_v51 = vmul.f32 0.0013020834, %v1607_v32  ;;  %v6055_v24 = vpop.eup %3092  ;;  %v7109_v41 = vld [vmem:[#allocation192_spill] sm:$0xff]  ;;  %v7110_v43 = vld [vmem:[#allocation193_spill] sm:$0xff] }
 0x27e   :  { %v2614_v42 = vadd.f32 %v5124_v35, %v2295_v20  ;;  %v2615_v23 = vadd.f32 %v5133_v16, %v2296_v52  ;;  %v2616_v8 = vadd.f32 %v5135_v19, %v2297_v54  ;;  %3096 = vrsqrt.f32 %v1722_v31  ;;  %v6061_v52 = vpop.eup %3094 }
 0x27f   :  { %v2617_v40 = vadd.f32 %v5137_v9, %v2298_v22  ;;  %2900 = vst [vmem:[#allocation8 + $0x600] sm:$0xff] %v2612_v47  ;;  %2901 = vst [vmem:[#allocation8 + $0x608] sm:$0xff] %v2613_v38  ;;  %v1726_v25 = vadd.f32 1e-12, %v1678_v7  ;;  %v1680_v13 = vmul.f32 0.0013020834, %v1614_v12  ;;  %3098 = vrsqrt.f32 %v1723_v18 }
 0x280   :  { %2902 = vst [vmem:[#allocation8 + $0x610] sm:$0xff] %v2614_v42  ;;  %2903 = vst [vmem:[#allocation8 + $0x618] sm:$0xff] %v2615_v23  ;;  %3100 = vrsqrt.f32 %v1724_v33  ;;  %v1727_v29 = vadd.f32 1e-12, %v1679_v51  ;;  %v1681_v50 = vmul.f32 0.0013020834, %v1621_v27  ;;  %v1980_v26 = vmul.f32 %v3087_v36, %v7103_v17 }
 0x281   :  { %2904 = vst [vmem:[#allocation8 + $0x620] sm:$0xff] %v2616_v8  ;;  %2905 = vst [vmem:[#allocation8 + $0x628] sm:$0xff] %v2617_v40  ;;  %3102 = vrsqrt.f32 %v1725_v3  ;;  %v6039_v4 = vadd.f32 1e-12, %v1680_v13  ;;  %v6041_v62 = vmul.f32 0.0013020834, %v1628_v63  ;;  %v1981_v0 = vmul.f32 %v3087_v36, %v7104_v10 }
 0x282   :  { %3104 = vrsqrt.f32 %v1726_v25  ;;  %v1982_v60 = vmul.f32 %v3087_v36, %v7105_v37  ;;  %v1983_v49 = vmul.f32 %v3087_v36, %v7106_v53  ;;  %v1984_v61 = vmul.f32 %v3087_v36, %v7107_v34  ;;  %v7111_v23 = vld [vmem:[#allocation194_spill] sm:$0xff]  ;;  %v7112_v8 = vld [vmem:[#allocation195_spill] sm:$0xff]  ;;  %v7113_v18 = vld [vmem:[#allocation196_spill] sm:$0xff] }
 0x283   :  { %v1985_v2 = vmul.f32 %v3087_v36, %v7108_v14  ;;  %3106 = vrsqrt.f32 %v1727_v29  ;;  %v6049_v39 = vadd.f32 1e-12, %v1681_v50  ;;  %v2299_v56 = vmul.f32 %v5108_v58, %v1980_v26  ;;  %v7114_v51 = vld [vmem:[#allocation197_spill] sm:$0xff]  ;;  %v7115_v50 = vld [vmem:[#allocation198_spill] sm:$0xff]  ;;  %v7116_v17 = vld [vmem:[#allocation199_spill] sm:$0xff] }
 0x284   :  { %v2300_v5 = vmul.f32 %v5110_v55, %v1981_v0  ;;  %v2301_v21 = vmul.f32 %v5112_v59, %v1982_v60  ;;  %v2302_v46 = vmul.f32 %v5114_v57, %v1983_v49  ;;  %v2303_v15 = vmul.f32 %v5116_v11, %v1984_v61  ;;  %v7117_v61 = vld [vmem:[#allocation200_spill] sm:$0xff] }
 0x285   :  { %v2304_v28 = vmul.f32 %v5118_v1, %v1985_v2  ;;  %v1986_v45 = vmul.f32 %v3089_v44, %v7109_v41  ;;  %v1987_v20 = vmul.f32 %v3089_v44, %v7110_v43  ;;  %v2618_v32 = vadd.f32 %v5120_v6, %v2299_v56  ;;  %v7118_v2 = vld [vmem:[#allocation201_spill] sm:$0xff] }
 0x286   :  { %v2619_v54 = vadd.f32 %v5122_v48, %v2300_v5  ;;  %v2620_v22 = vadd.f32 %v5124_v35, %v2301_v21  ;;  %v2621_v7 = vadd.f32 %v5133_v16, %v2302_v46  ;;  %v2622_v38 = vadd.f32 %v5135_v19, %v2303_v15  ;;  %v7119_v46 = vld [vmem:[#allocation202_spill] sm:$0xff] }
 0x287   :  { %v2623_v42 = vadd.f32 %v5137_v9, %v2304_v28  ;;  %v1988_v12 = vmul.f32 %v3089_v44, %v7111_v23  ;;  %v1989_v40 = vmul.f32 %v3089_v44, %v7112_v8  ;;  %2906 = vst [vmem:[#allocation8 + $0x630] sm:$0xff] %v2618_v32  ;;  %v1990_v33 = vmul.f32 %v3089_v44, %v7113_v18  ;;  %v7120_v28 = vld [vmem:[#allocation203_spill] sm:$0xff] }
 0x288   :  { %v6067_v47 = vpop.eup %3096  ;;  %2907 = vst [vmem:[#allocation8 + $0x638] sm:$0xff] %v2619_v54  ;;  %2908 = vst [vmem:[#allocation8 + $0x640] sm:$0xff] %v2620_v22  ;;  %v1991_v3 = vmul.f32 %v3089_v44, %v7114_v51  ;;  %v2305_v27 = vmul.f32 %v5108_v58, %v1986_v45  ;;  %v2306_v25 = vmul.f32 %v5110_v55, %v1987_v20  ;;  %3108 = vrsqrt.f32 %v6039_v4 }
 0x289   :  { %v6073_v31 = vpop.eup %3098  ;;  %2909 = vst [vmem:[#allocation8 + $0x648] sm:$0xff] %v2621_v7  ;;  %2910 = vst [vmem:[#allocation8 + $0x650] sm:$0xff] %v2622_v38  ;;  %v2307_v63 = vmul.f32 %v5112_v59, %v1988_v12  ;;  %v2308_v29 = vmul.f32 %v5114_v57, %v1989_v40  ;;  %v1992_v36 = vmul.f32 %v3091_v30, %v7115_v50  ;;  %v7121_v38 = vld [vmem:[#allocation204_spill] sm:$0xff]  ;;  %3110 = vrsqrt.f32 %v6049_v39 }
 0x28a   :  { %v6079_v13 = vpop.eup %3100  ;;  %2911 = vst [vmem:[#allocation8 + $0x658] sm:$0xff] %v2623_v42  ;;  %v1993_v26 = vmul.f32 %v3091_v30, %v7116_v17  ;;  %v2309_v0 = vmul.f32 %v5116_v11, %v1990_v33  ;;  %v2310_v37 = vmul.f32 %v5118_v1, %v1991_v3  ;;  %v2624_v60 = vadd.f32 %v5120_v6, %v2305_v27  ;;  %v7122_v42 = vld [vmem:[#allocation205_spill] sm:$0xff]  ;;  %v7123_v3 = vld [vmem:[#allocation206_spill] sm:$0xff] }
 0x28b   :  { %v6085_v10 = vpop.eup %3102  ;;  %v2625_v53 = vadd.f32 %v5122_v48, %v2306_v25  ;;  %v2626_v44 = vadd.f32 %v5124_v35, %v2307_v63  ;;  %v2627_v34 = vadd.f32 %v5133_v16, %v2308_v29  ;;  %v1994_v14 = vmul.f32 %v3091_v30, %v7117_v61  ;;  %v7124_v25 = vld [vmem:[#allocation207_spill] sm:$0xff]  ;;  %v7125_v29 = vld [vmem:[#allocation208_spill] sm:$0xff] }
 0x28c   :  { %v6091_v49 = vpop.eup %3104  ;;  %v1995_v56 = vmul.f32 %v3091_v30, %v7118_v2  ;;  %v2628_v5 = vadd.f32 %v5135_v19, %v2309_v0  ;;  %v2629_v21 = vadd.f32 %v5137_v9, %v2310_v37  ;;  %2912 = vst [vmem:[#allocation8 + $0x660] sm:$0xff] %v2624_v60  ;;  %v1996_v15 = vmul.f32 %v3091_v30, %v7119_v46  ;;  %v7129_v46 = vld [vmem:[#allocation212_spill] sm:$0xff] }
 0x28d   :  { %2913 = vst [vmem:[#allocation8 + $0x668] sm:$0xff] %v2625_v53  ;;  %v1997_v41 = vmul.f32 %v3091_v30, %v7120_v28  ;;  %v6101_v45 = vpop.eup %3106  ;;  %2914 = vst [vmem:[#allocation8 + $0x670] sm:$0xff] %v2626_v44  ;;  %v2311_v43 = vmul.f32 %v5108_v58, %v1992_v36  ;;  %v2312_v20 = vmul.f32 %v5110_v55, %v1993_v26  ;;  %v7126_v36 = vld [vmem:[#allocation209_spill] sm:$0xff]  ;;  %v7127_v53 = vld [vmem:[#allocation210_spill] sm:$0xff] }
 0x28e   :  { %2915 = vst [vmem:[#allocation8 + $0x678] sm:$0xff] %v2627_v34  ;;  %v2313_v32 = vmul.f32 %v5112_v59, %v1994_v14  ;;  %v2314_v54 = vmul.f32 %v5114_v57, %v1995_v56  ;;  %2916 = vst [vmem:[#allocation8 + $0x680] sm:$0xff] %v2628_v5  ;;  %v2315_v22 = vmul.f32 %v5116_v11, %v1996_v15  ;;  %v7128_v34 = vld [vmem:[#allocation211_spill] sm:$0xff]  ;;  %v7130_v28 = vld [vmem:[#allocation213_spill] sm:$0xff] }
 0x28f   :  { %2917 = vst [vmem:[#allocation8 + $0x688] sm:$0xff] %v2629_v21  ;;  %v2316_v7 = vmul.f32 %v5118_v1, %v1997_v41  ;;  %v1998_v30 = vmul.f32 %v6055_v24, %v7121_v38  ;;  %v1999_v23 = vmul.f32 %v6055_v24, %v7122_v42  ;;  %v2630_v12 = vadd.f32 %v5120_v6, %v2311_v43 }
 0x290   :  { %v2631_v8 = vadd.f32 %v5122_v48, %v2312_v20  ;;  %v2632_v40 = vadd.f32 %v5124_v35, %v2313_v32  ;;  %v2633_v18 = vadd.f32 %v5133_v16, %v2314_v54  ;;  %v2634_v33 = vadd.f32 %v5135_v19, %v2315_v22  ;;  %v7131_v32 = vld [vmem:[#allocation214_spill] sm:$0xff]  ;;  %v7132_v22 = vld [vmem:[#allocation215_spill] sm:$0xff] }
 0x291   :  { %v2635_v51 = vadd.f32 %v5137_v9, %v2316_v7  ;;  %v2000_v27 = vmul.f32 %v6055_v24, %v7123_v3  ;;  %v2001_v63 = vmul.f32 %v6055_v24, %v7124_v25  ;;  %2918 = vst [vmem:[#allocation8 + $0x690] sm:$0xff] %v2630_v12  ;;  %v2002_v50 = vmul.f32 %v6055_v24, %v7125_v29 }
 0x292   :  { %2919 = vst [vmem:[#allocation8 + $0x698] sm:$0xff] %v2631_v8  ;;  %2920 = vst [vmem:[#allocation8 + $0x6a0] sm:$0xff] %v2632_v40  ;;  %v2003_v17 = vmul.f32 %v6055_v24, %v7126_v36  ;;  %v2317_v26 = vmul.f32 %v5108_v58, %v1998_v30  ;;  %v2318_v0 = vmul.f32 %v5110_v55, %v1999_v23  ;;  %v7133_v40 = vld [vmem:[#allocation216_spill] sm:$0xff] }
 0x293   :  { %2921 = vst [vmem:[#allocation8 + $0x6a8] sm:$0xff] %v2633_v18  ;;  %2922 = vst [vmem:[#allocation8 + $0x6b0] sm:$0xff] %v2634_v33  ;;  %v2319_v37 = vmul.f32 %v5112_v59, %v2000_v27  ;;  %v2320_v60 = vmul.f32 %v5114_v57, %v2001_v63  ;;  %v2004_v44 = vmul.f32 %v6061_v52, %v7127_v53 }
 0x294   :  { %2923 = vst [vmem:[#allocation8 + $0x6b8] sm:$0xff] %v2635_v51  ;;  %v2005_v61 = vmul.f32 %v6061_v52, %v7128_v34  ;;  %v2321_v14 = vmul.f32 %v5116_v11, %v2002_v50  ;;  %v2322_v24 = vmul.f32 %v5118_v1, %v2003_v17  ;;  %v2636_v2 = vadd.f32 %v5120_v6, %v2317_v26  ;;  %v7135_v50 = vld [vmem:[#allocation218_spill] sm:$0xff]  ;;  %v7136_v17 = vld [vmem:[#allocation219_spill] sm:$0xff] }
 0x295   :  { %v2637_v56 = vadd.f32 %v5122_v48, %v2318_v0  ;;  %v2638_v5 = vadd.f32 %v5124_v35, %v2319_v37  ;;  %v2639_v21 = vadd.f32 %v5133_v16, %v2320_v60  ;;  %v2006_v15 = vmul.f32 %v6061_v52, %v7129_v46  ;;  %v7137_v0 = vld [vmem:[#allocation220_spill] sm:$0xff] }
 0x296   :  { %v2007_v41 = vmul.f32 %v6061_v52, %v7130_v28  ;;  %v2640_v43 = vadd.f32 %v5135_v19, %v2321_v14  ;;  %v2641_v20 = vadd.f32 %v5137_v9, %v2322_v24  ;;  %2924 = vst [vmem:[#allocation8 + $0x6c0] sm:$0xff] %v2636_v2  ;;  %v2008_v54 = vmul.f32 %v6061_v52, %v7131_v32  ;;  %v7138_v60 = vld [vmem:[#allocation224_spill] sm:$0xff]  ;;  %v7139_v24 = vld [vmem:[#allocation221_spill] sm:$0xff] }
 0x297   :  { %2925 = vst [vmem:[#allocation8 + $0x6c8] sm:$0xff] %v2637_v56  ;;  %v2009_v7 = vmul.f32 %v6061_v52, %v7132_v22  ;;  %2926 = vst [vmem:[#allocation8 + $0x6d0] sm:$0xff] %v2638_v5  ;;  %v2323_v38 = vmul.f32 %v5108_v58, %v2004_v44  ;;  %v2324_v30 = vmul.f32 %v5110_v55, %v2005_v61  ;;  %v7134_v52 = vld [vmem:[#allocation217_spill] sm:$0xff]  ;;  %v7140_v56 = vld [vmem:[#allocation222_spill] sm:$0xff] }
 0x298   :  { %2927 = vst [vmem:[#allocation8 + $0x6d8] sm:$0xff] %v2639_v21  ;;  %v2325_v42 = vmul.f32 %v5112_v59, %v2006_v15  ;;  %v2326_v23 = vmul.f32 %v5114_v57, %v2007_v41  ;;  %2928 = vst [vmem:[#allocation8 + $0x6e0] sm:$0xff] %v2640_v43  ;;  %v2327_v12 = vmul.f32 %v5116_v11, %v2008_v54  ;;  %v7141_v43 = vld [vmem:[#allocation223_spill] sm:$0xff]  ;;  %v7142_v32 = vld [vmem:[#allocation225_spill] sm:$0xff] }
 0x299   :  { %2929 = vst [vmem:[#allocation8 + $0x6e8] sm:$0xff] %v2641_v20  ;;  %v2328_v8 = vmul.f32 %v5118_v1, %v2009_v7  ;;  %v2010_v18 = vmul.f32 %v6067_v47, %v7133_v40  ;;  %v2011_v33 = vmul.f32 %v6067_v47, %v7134_v52  ;;  %v2642_v51 = vadd.f32 %v5120_v6, %v2323_v38  ;;  %v7143_v38 = vld [vmem:[#allocation226_spill] sm:$0xff] }
 0x29a   :  { %v2643_v3 = vadd.f32 %v5122_v48, %v2324_v30  ;;  %v2644_v27 = vadd.f32 %v5124_v35, %v2325_v42  ;;  %v2645_v25 = vadd.f32 %v5133_v16, %v2326_v23  ;;  %v2646_v63 = vadd.f32 %v5135_v19, %v2327_v12  ;;  %v7144_v42 = vld [vmem:[#allocation227_spill] sm:$0xff] }
 0x29b   :  { %v2647_v29 = vadd.f32 %v5137_v9, %v2328_v8  ;;  %v2012_v36 = vmul.f32 %v6067_v47, %v7135_v50  ;;  %v2013_v26 = vmul.f32 %v6067_v47, %v7136_v17  ;;  %2930 = vst [vmem:[#allocation8 + $0x6f0] sm:$0xff] %v2642_v51  ;;  %v2014_v37 = vmul.f32 %v6067_v47, %v7137_v0  ;;  %v7145_v51 = vld [vmem:[#allocation228_spill] sm:$0xff] }
 0x29c   :  { %2931 = vst [vmem:[#allocation8 + $0x6f8] sm:$0xff] %v2643_v3  ;;  %2932 = vst [vmem:[#allocation8 + $0x700] sm:$0xff] %v2644_v27  ;;  %v2015_v53 = vmul.f32 %v6067_v47, %v7138_v60  ;;  %v2329_v44 = vmul.f32 %v5108_v58, %v2010_v18  ;;  %v2330_v34 = vmul.f32 %v5110_v55, %v2011_v33 }
 0x29d   :  { %2933 = vst [vmem:[#allocation8 + $0x708] sm:$0xff] %v2645_v25  ;;  %2934 = vst [vmem:[#allocation8 + $0x710] sm:$0xff] %v2646_v63  ;;  %v2331_v61 = vmul.f32 %v5112_v59, %v2012_v36  ;;  %v2332_v14 = vmul.f32 %v5114_v57, %v2013_v26  ;;  %v2016_v2 = vmul.f32 %v6073_v31, %v7139_v24  ;;  %v7147_v26 = vld [vmem:[#allocation230_spill] sm:$0xff] }
 0x29e   :  { %2935 = vst [vmem:[#allocation8 + $0x718] sm:$0xff] %v2647_v29  ;;  %v2017_v5 = vmul.f32 %v6073_v31, %v7140_v56  ;;  %v2333_v21 = vmul.f32 %v5116_v11, %v2014_v37  ;;  %v2334_v47 = vmul.f32 %v5118_v1, %v2015_v53  ;;  %v2648_v46 = vadd.f32 %v5120_v6, %v2329_v44  ;;  %v7148_v37 = vld [vmem:[#allocation231_spill] sm:$0xff]  ;;  %v7149_v53 = vld [vmem:[#allocation232_spill] sm:$0xff] }
 0x29f   :  { %v2649_v15 = vadd.f32 %v5122_v48, %v2330_v34  ;;  %v2650_v28 = vadd.f32 %v5124_v35, %v2331_v61  ;;  %v2651_v41 = vadd.f32 %v5133_v16, %v2332_v14  ;;  %v2018_v20 = vmul.f32 %v6073_v31, %v7141_v43  ;;  %v7150_v34 = vld [vmem:[#allocation234_spill] sm:$0xff] }
 0x2a0   :  { %v2019_v54 = vmul.f32 %v6073_v31, %v7142_v32  ;;  %v2652_v22 = vadd.f32 %v5135_v19, %v2333_v21  ;;  %v2653_v7 = vadd.f32 %v5137_v9, %v2334_v47  ;;  %2936 = vst [vmem:[#allocation8 + $0x720] sm:$0xff] %v2648_v46  ;;  %v2020_v30 = vmul.f32 %v6073_v31, %v7143_v38  ;;  %v7152_v47 = vld [vmem:[#allocation235_spill] sm:$0xff]  ;;  %v7153_v32 = vld [vmem:[#allocation236_spill] sm:$0xff] }
 0x2a1   :  { %2937 = vst [vmem:[#allocation8 + $0x728] sm:$0xff] %v2649_v15  ;;  %v2021_v23 = vmul.f32 %v6073_v31, %v7144_v42  ;;  %2938 = vst [vmem:[#allocation8 + $0x730] sm:$0xff] %v2650_v28  ;;  %v2335_v12 = vmul.f32 %v5108_v58, %v2016_v2  ;;  %v2336_v8 = vmul.f32 %v5110_v55, %v2017_v5  ;;  %v7146_v31 = vld [vmem:[#allocation229_spill] sm:$0xff]  ;;  %v7155_v42 = vld [vmem:[#allocation238_spill] sm:$0xff] }
 0x2a2   :  { %2939 = vst [vmem:[#allocation8 + $0x738] sm:$0xff] %v2651_v41  ;;  %v2337_v40 = vmul.f32 %v5112_v59, %v2018_v20  ;;  %v2338_v18 = vmul.f32 %v5114_v57, %v2019_v54  ;;  %2940 = vst [vmem:[#allocation8 + $0x740] sm:$0xff] %v2652_v22  ;;  %v2339_v52 = vmul.f32 %v5116_v11, %v2020_v30  ;;  %v7151_v5 = vld [vmem:[#allocation233_spill] sm:$0xff] }
 0x2a3   :  { %2941 = vst [vmem:[#allocation8 + $0x748] sm:$0xff] %v2653_v7  ;;  %v2340_v33 = vmul.f32 %v5118_v1, %v2021_v23  ;;  %v2022_v3 = vmul.f32 %v6079_v13, %v7145_v51  ;;  %v2023_v27 = vmul.f32 %v6079_v13, %v7146_v31  ;;  %v2654_v25 = vadd.f32 %v5120_v6, %v2335_v12  ;;  %v7154_v22 = vld [vmem:[#allocation237_spill] sm:$0xff]  ;;  %v7156_v12 = vld [vmem:[#allocation239_spill] sm:$0xff]  ;;  %v7157_v31 = vld [vmem:[#allocation240_spill] sm:$0xff] }
 0x2a4   :  { %v2655_v63 = vadd.f32 %v5122_v48, %v2336_v8  ;;  %v2656_v29 = vadd.f32 %v5124_v35, %v2337_v40  ;;  %v2657_v50 = vadd.f32 %v5133_v16, %v2338_v18  ;;  %v2658_v36 = vadd.f32 %v5135_v19, %v2339_v52 }
 0x2a5   :  { %v2659_v17 = vadd.f32 %v5137_v9, %v2340_v33  ;;  %v2024_v0 = vmul.f32 %v6079_v13, %v7147_v26  ;;  %v2025_v60 = vmul.f32 %v6079_v13, %v7148_v37  ;;  %2942 = vst [vmem:[#allocation8 + $0x750] sm:$0xff] %v2654_v25  ;;  %v2026_v44 = vmul.f32 %v6079_v13, %v7149_v53 }
 0x2a6   :  { %2943 = vst [vmem:[#allocation8 + $0x758] sm:$0xff] %v2655_v63  ;;  %2944 = vst [vmem:[#allocation8 + $0x760] sm:$0xff] %v2656_v29  ;;  %v2027_v61 = vmul.f32 %v6079_v13, %v7150_v34  ;;  %v2341_v14 = vmul.f32 %v5108_v58, %v2022_v3  ;;  %v2342_v24 = vmul.f32 %v5110_v55, %v2023_v27 }
 0x2a7   :  { %2945 = vst [vmem:[#allocation8 + $0x768] sm:$0xff] %v2657_v50  ;;  %2946 = vst [vmem:[#allocation8 + $0x770] sm:$0xff] %v2658_v36  ;;  %v2343_v2 = vmul.f32 %v5112_v59, %v2024_v0  ;;  %v2344_v56 = vmul.f32 %v5114_v57, %v2025_v60  ;;  %v2028_v21 = vmul.f32 %v6085_v10, %v7151_v5  ;;  %v7159_v0 = vld [vmem:[#allocation242_spill] sm:$0xff]  ;;  %v7160_v60 = vld [vmem:[#allocation243_spill] sm:$0xff] }
 0x2a8   :  { %2947 = vst [vmem:[#allocation8 + $0x778] sm:$0xff] %v2659_v17  ;;  %v2029_v46 = vmul.f32 %v6085_v10, %v7152_v47  ;;  %v2345_v15 = vmul.f32 %v5116_v11, %v2026_v44  ;;  %v2346_v13 = vmul.f32 %v5118_v1, %v2027_v61  ;;  %v2660_v28 = vadd.f32 %v5120_v6, %v2341_v14  ;;  %v7161_v44 = vld [vmem:[#allocation244_spill] sm:$0xff] }
 0x2a9   :  { %v2661_v41 = vadd.f32 %v5122_v48, %v2342_v24  ;;  %v2662_v43 = vadd.f32 %v5124_v35, %v2343_v2  ;;  %v2663_v20 = vadd.f32 %v5133_v16, %v2344_v56  ;;  %v2030_v54 = vmul.f32 %v6085_v10, %v7153_v32  ;;  %v7162_v61 = vld [vmem:[#allocation248_spill] sm:$0xff]  ;;  %v7165_v32 = vld [vmem:[#allocation247_spill] sm:$0xff] }
 0x2aa   :  { %v2031_v7 = vmul.f32 %v6085_v10, %v7154_v22  ;;  %v2664_v38 = vadd.f32 %v5135_v19, %v2345_v15  ;;  %v2665_v30 = vadd.f32 %v5137_v9, %v2346_v13  ;;  %2948 = vst [vmem:[#allocation8 + $0x780] sm:$0xff] %v2660_v28  ;;  %v2032_v23 = vmul.f32 %v6085_v10, %v7155_v42  ;;  %v7166_v22 = vld [vmem:[#allocation249_spill] sm:$0xff]  ;;  %v7167_v42 = vld [vmem:[#allocation250_spill] sm:$0xff] }
 0x2ab   :  { %2949 = vst [vmem:[#allocation8 + $0x788] sm:$0xff] %v2661_v41  ;;  %v2033_v8 = vmul.f32 %v6085_v10, %v7156_v12  ;;  %2950 = vst [vmem:[#allocation8 + $0x790] sm:$0xff] %v2662_v43  ;;  %v2347_v40 = vmul.f32 %v5108_v58, %v2028_v21  ;;  %v2348_v18 = vmul.f32 %v5110_v55, %v2029_v46  ;;  %v7158_v10 = vld [vmem:[#allocation241_spill] sm:$0xff]  ;;  %v7164_v46 = vld [vmem:[#allocation246_spill] sm:$0xff] }
 0x2ac   :  { %2951 = vst [vmem:[#allocation8 + $0x798] sm:$0xff] %v2663_v20  ;;  %v2349_v52 = vmul.f32 %v5112_v59, %v2030_v54  ;;  %v2350_v33 = vmul.f32 %v5114_v57, %v2031_v7  ;;  %2952 = vst [vmem:[#allocation8 + $0x7a0] sm:$0xff] %v2664_v38  ;;  %v2351_v51 = vmul.f32 %v5116_v11, %v2032_v23  ;;  %v7163_v21 = vld [vmem:[#allocation245_spill] sm:$0xff]  ;;  %v7168_v12 = vld [vmem:[#allocation251_spill] sm:$0xff] }
 0x2ad   :  { %2953 = vst [vmem:[#allocation8 + $0x7a8] sm:$0xff] %v2665_v30  ;;  %v2352_v3 = vmul.f32 %v5118_v1, %v2033_v8  ;;  %v2034_v27 = vmul.f32 %v6091_v49, %v7157_v31  ;;  %v2035_v25 = vmul.f32 %v6091_v49, %v7158_v10  ;;  %v2666_v63 = vadd.f32 %v5120_v6, %v2347_v40 }
 0x2ae   :  { %v2667_v29 = vadd.f32 %v5122_v48, %v2348_v18  ;;  %v2668_v50 = vadd.f32 %v5124_v35, %v2349_v52  ;;  %v2669_v36 = vadd.f32 %v5133_v16, %v2350_v33  ;;  %v2670_v17 = vadd.f32 %v5135_v19, %v2351_v51  ;;  %v1635_v51 = vpop.xlane.xlu1 %1634 }
 0x2af   :  { %v2671_v26 = vadd.f32 %v5137_v9, %v2352_v3  ;;  %v2036_v37 = vmul.f32 %v6091_v49, %v7159_v0  ;;  %v2037_v53 = vmul.f32 %v6091_v49, %v7160_v60  ;;  %2954 = vst [vmem:[#allocation8 + $0x7b0] sm:$0xff] %v2666_v63  ;;  %v2038_v34 = vmul.f32 %v6091_v49, %v7161_v44  ;;  %v7170_v0 = vld [vmem:[#allocation253_spill] sm:$0xff]  ;;  %v7171_v60 = vld [vmem:[#allocation254_spill] sm:$0xff]  ;;  %v7172_v44 = vld [vmem:[#allocation255_spill] sm:$0xff] }
 0x2b0   :  { %2955 = vst [vmem:[#allocation8 + $0x7b8] sm:$0xff] %v2667_v29  ;;  %2956 = vst [vmem:[#allocation8 + $0x7c0] sm:$0xff] %v2668_v50  ;;  %v2039_v14 = vmul.f32 %v6091_v49, %v7162_v61  ;;  %v2353_v24 = vmul.f32 %v5108_v58, %v2034_v27  ;;  %v2354_v2 = vmul.f32 %v5110_v55, %v2035_v25  ;;  %v7173_v61 = vld [vmem:[#allocation256_spill] sm:$0xff] }
 0x2b1   :  { %2957 = vst [vmem:[#allocation8 + $0x7c8] sm:$0xff] %v2669_v36  ;;  %2958 = vst [vmem:[#allocation8 + $0x7d0] sm:$0xff] %v2670_v17  ;;  %v2355_v56 = vmul.f32 %v5112_v59, %v2036_v37  ;;  %v2356_v5 = vmul.f32 %v5114_v57, %v2037_v53  ;;  %v2040_v47 = vmul.f32 %v6101_v45, %v7163_v21  ;;  %v1683_v36 = vmul.f32 0.0013020834, %v1635_v51  ;;  %v7169_v17 = vld [vmem:[#allocation252_spill] sm:$0xff] }
 0x2b2   :  { %2959 = vst [vmem:[#allocation8 + $0x7d8] sm:$0xff] %v2671_v26  ;;  %v2041_v15 = vmul.f32 %v6101_v45, %v7164_v46  ;;  %v2357_v13 = vmul.f32 %v5116_v11, %v2038_v34  ;;  %v2358_v49 = vmul.f32 %v5118_v1, %v2039_v14  ;;  %v2672_v28 = vadd.f32 %v5120_v6, %v2353_v24  ;;  %v7174_v24 = vld [vmem:[#allocation258_spill] sm:$0xff] }
 0x2b3   :  { %v2673_v41 = vadd.f32 %v5122_v48, %v2354_v2  ;;  %v2674_v43 = vadd.f32 %v5124_v35, %v2355_v56  ;;  %v2675_v20 = vadd.f32 %v5133_v16, %v2356_v5  ;;  %v2042_v54 = vmul.f32 %v6101_v45, %v7165_v32 }
 0x2b4   :  { %v2043_v7 = vmul.f32 %v6101_v45, %v7166_v22  ;;  %v2676_v38 = vadd.f32 %v5135_v19, %v2357_v13  ;;  %v2677_v30 = vadd.f32 %v5137_v9, %v2358_v49  ;;  %2960 = vst [vmem:[#allocation8 + $0x7e0] sm:$0xff] %v2672_v28  ;;  %v2044_v23 = vmul.f32 %v6101_v45, %v7167_v42  ;;  %v7175_v13 = vld [vmem:[#allocation257_spill] sm:$0xff]  ;;  %v7176_v28 = vld [vmem:[#allocation259_spill] sm:$0xff] }
 0x2b5   :  { %2961 = vst [vmem:[#allocation8 + $0x7e8] sm:$0xff] %v2673_v41  ;;  %v2045_v8 = vmul.f32 %v6101_v45, %v7168_v12  ;;  %2962 = vst [vmem:[#allocation8 + $0x7f0] sm:$0xff] %v2674_v43  ;;  %v2359_v40 = vmul.f32 %v5108_v58, %v2040_v47  ;;  %v2360_v18 = vmul.f32 %v5110_v55, %v2041_v15  ;;  %v1730_v45 = vadd.f32 1e-12, %v6041_v62  ;;  %v3109_v62 = vpop.eup %3108 }
 0x2b6   :  { %2963 = vst [vmem:[#allocation8 + $0x7f8] sm:$0xff] %v2675_v20  ;;  %v2361_v52 = vmul.f32 %v5112_v59, %v2042_v54  ;;  %v2362_v33 = vmul.f32 %v5114_v57, %v2043_v7  ;;  %2964 = vst [vmem:[#allocation8 + $0x800] sm:$0xff] %v2676_v38  ;;  %v2363_v3 = vmul.f32 %v5116_v11, %v2044_v23  ;;  %v1731_v4 = vadd.f32 1e-12, %v1683_v36  ;;  %v3111_v39 = vpop.eup %3110  ;;  %v7178_v23 = vld [vmem:[#allocation261_spill] sm:$0xff] }
 0x2b7   :  { %2965 = vst [vmem:[#allocation8 + $0x808] sm:$0xff] %v2677_v30  ;;  %v2364_v31 = vmul.f32 %v5118_v1, %v2045_v8  ;;  %v2678_v27 = vadd.f32 %v5120_v6, %v2359_v40  ;;  %v2679_v10 = vadd.f32 %v5122_v48, %v2360_v18  ;;  %3112 = vrsqrt.f32 %v1730_v45  ;;  %v7177_v30 = vld [vmem:[#allocation260_spill] sm:$0xff]  ;;  %v7179_v8 = vld [vmem:[#allocation262_spill] sm:$0xff]  ;;  %v7180_v18 = vld [vmem:[#allocation263_spill] sm:$0xff] }
 0x2b8   :  { %v2680_v25 = vadd.f32 %v5124_v35, %v2361_v52  ;;  %v2681_v63 = vadd.f32 %v5133_v16, %v2362_v33  ;;  %v2682_v29 = vadd.f32 %v5135_v19, %v2363_v3  ;;  %3114 = vrsqrt.f32 %v1731_v4  ;;  %v7181_v45 = vld [vmem:[#allocation264_spill] sm:$0xff] }
 0x2b9   :  { %v2683_v50 = vadd.f32 %v5137_v9, %v2364_v31  ;;  %2966 = vst [vmem:[#allocation8 + $0x810] sm:$0xff] %v2678_v27  ;;  %2967 = vst [vmem:[#allocation8 + $0x818] sm:$0xff] %v2679_v10  ;;  %v2046_v26 = vmul.f32 %v3109_v62, %v7169_v17  ;;  %v2047_v37 = vmul.f32 %v3109_v62, %v7170_v0  ;;  %v7182_v10 = vld [vmem:[#allocation265_spill] sm:$0xff] }
 0x2ba   :  { %2968 = vst [vmem:[#allocation8 + $0x820] sm:$0xff] %v2680_v25  ;;  %2969 = vst [vmem:[#allocation8 + $0x828] sm:$0xff] %v2681_v63  ;;  %v2048_v53 = vmul.f32 %v3109_v62, %v7171_v60  ;;  %v2049_v34 = vmul.f32 %v3109_v62, %v7172_v44  ;;  %v2050_v14 = vmul.f32 %v3109_v62, %v7173_v61  ;;  %v7186_v61 = vld [vmem:[#allocation272_spill] sm:$0xff] }
 0x2bb   :  { %2970 = vst [vmem:[#allocation8 + $0x830] sm:$0xff] %v2682_v29  ;;  %2971 = vst [vmem:[#allocation8 + $0x838] sm:$0xff] %v2683_v50  ;;  %v2051_v2 = vmul.f32 %v3109_v62, %v7174_v24  ;;  %v2365_v56 = vmul.f32 %v5108_v58, %v2046_v26  ;;  %v2366_v5 = vmul.f32 %v5110_v55, %v2047_v37  ;;  %v7183_v26 = vld [vmem:[#allocation266_spill] sm:$0xff]  ;;  %v7184_v37 = vld [vmem:[#allocation267_spill] sm:$0xff] }
 0x2bc   :  { %v2367_v21 = vmul.f32 %v5112_v59, %v2048_v53  ;;  %v2368_v47 = vmul.f32 %v5114_v57, %v2049_v34  ;;  %v2369_v46 = vmul.f32 %v5116_v11, %v2050_v14  ;;  %v2052_v49 = vmul.f32 %v3111_v39, %v7175_v13  ;;  %v7185_v34 = vld [vmem:[#allocation268_spill] sm:$0xff]  ;;  %v7188_v13 = vld [vmem:[#allocation270_spill] sm:$0xff] }
 0x2bd   :  { %v2370_v15 = vmul.f32 %v5118_v1, %v2051_v2  ;;  %v2053_v41 = vmul.f32 %v3111_v39, %v7176_v28  ;;  %v2684_v20 = vadd.f32 %v5120_v6, %v2365_v56  ;;  %v2685_v32 = vadd.f32 %v5122_v48, %v2366_v5 }
 0x2be   :  { %v2686_v54 = vadd.f32 %v5124_v35, %v2367_v21  ;;  %v2687_v22 = vadd.f32 %v5133_v16, %v2368_v47  ;;  %v2688_v7 = vadd.f32 %v5135_v19, %v2369_v46  ;;  %v2054_v42 = vmul.f32 %v3111_v39, %v7177_v30  ;;  %v7187_v46 = vld [vmem:[#allocation269_spill] sm:$0xff] }
 0x2bf   :  { %v2689_v38 = vadd.f32 %v5137_v9, %v2370_v15  ;;  %v2055_v12 = vmul.f32 %v3111_v39, %v7178_v23  ;;  %2972 = vst [vmem:[#allocation8 + $0x840] sm:$0xff] %v2684_v20  ;;  %2973 = vst [vmem:[#allocation8 + $0x848] sm:$0xff] %v2685_v32  ;;  %v2056_v40 = vmul.f32 %v3111_v39, %v7179_v8 }
 0x2c0   :  { %2974 = vst [vmem:[#allocation8 + $0x850] sm:$0xff] %v2686_v54  ;;  %2975 = vst [vmem:[#allocation8 + $0x858] sm:$0xff] %v2687_v22  ;;  %v2057_v52 = vmul.f32 %v3111_v39, %v7180_v18  ;;  %v2371_v33 = vmul.f32 %v5108_v58, %v2052_v49  ;;  %v2372_v51 = vmul.f32 %v5110_v55, %v2053_v41  ;;  %v7189_v22 = vld [vmem:[#allocation271_spill] sm:$0xff] }
 0x2c1   :  { %v3113_v43 = vpop.eup %3112  ;;  %2976 = vst [vmem:[#allocation8 + $0x860] sm:$0xff] %v2688_v7  ;;  %2977 = vst [vmem:[#allocation8 + $0x868] sm:$0xff] %v2689_v38  ;;  %v2373_v3 = vmul.f32 %v5112_v59, %v2054_v42  ;;  %v2374_v31 = vmul.f32 %v5114_v57, %v2055_v12  ;;  %v2375_v63 = vmul.f32 %v5116_v11, %v2056_v40  ;;  %v7190_v38 = vld [vmem:[#allocation273_spill] sm:$0xff]  ;;  %v7191_v42 = vld [vmem:[#allocation274_spill] sm:$0xff] }
 0x2c2   :  { %v2058_v27 = vmul.f32 %v3113_v43, %v7181_v45  ;;  %v2059_v25 = vmul.f32 %v3113_v43, %v7182_v10  ;;  %v2376_v29 = vmul.f32 %v5118_v1, %v2057_v52  ;;  %v2690_v50 = vadd.f32 %v5120_v6, %v2371_v33  ;;  %v3115_v4 = vpop.eup %3114  ;;  %v7192_v12 = vld [vmem:[#allocation275_spill] sm:$0xff] }
 0x2c3   :  { %v2691_v36 = vadd.f32 %v5122_v48, %v2372_v51  ;;  %v2692_v62 = vadd.f32 %v5124_v35, %v2373_v3  ;;  %v2693_v17 = vadd.f32 %v5133_v16, %v2374_v31  ;;  %v2060_v0 = vmul.f32 %v3113_v43, %v7183_v26 }
 0x2c4   :  { %v2061_v60 = vmul.f32 %v3113_v43, %v7184_v37  ;;  %v2694_v53 = vadd.f32 %v5135_v19, %v2375_v63  ;;  %v2695_v44 = vadd.f32 %v5137_v9, %v2376_v29  ;;  %2978 = vst [vmem:[#allocation8 + $0x870] sm:$0xff] %v2690_v50  ;;  %v2062_v39 = vmul.f32 %v3113_v43, %v7185_v34 }
 0x2c5   :  { %2979 = vst [vmem:[#allocation8 + $0x878] sm:$0xff] %v2691_v36  ;;  %v2063_v14 = vmul.f32 %v3113_v43, %v7186_v61  ;;  %2980 = vst [vmem:[#allocation8 + $0x880] sm:$0xff] %v2692_v62  ;;  %v2377_v24 = vmul.f32 %v5108_v58, %v2058_v27  ;;  %v2378_v2 = vmul.f32 %v5110_v55, %v2059_v25 }
 0x2c6   :  { %2981 = vst [vmem:[#allocation8 + $0x888] sm:$0xff] %v2693_v17  ;;  %v2379_v56 = vmul.f32 %v5112_v59, %v2060_v0  ;;  %v2380_v5 = vmul.f32 %v5114_v57, %v2061_v60  ;;  %2982 = vst [vmem:[#allocation8 + $0x890] sm:$0xff] %v2694_v53  ;;  %v2381_v21 = vmul.f32 %v5116_v11, %v2062_v39 }
 0x2c7   :  { %2983 = vst [vmem:[#allocation8 + $0x898] sm:$0xff] %v2695_v44  ;;  %v2382_v47 = vmul.f32 %v5118_v1, %v2063_v14  ;;  %v2064_v15 = vmul.f32 %v3115_v4, %v7187_v46  ;;  %v2065_v49 = vmul.f32 %v3115_v4, %v7188_v13  ;;  %v2696_v28 = vadd.f32 %v5120_v6, %v2377_v24 }
 0x2c8   :  { %v2697_v41 = vadd.f32 %v5122_v48, %v2378_v2  ;;  %v2698_v43 = vadd.f32 %v5124_v35, %v2379_v56  ;;  %v2699_v20 = vadd.f32 %v5133_v16, %v2380_v5  ;;  %v2700_v32 = vadd.f32 %v5135_v19, %v2381_v21 }
 0x2c9   :  { %v2701_v54 = vadd.f32 %v5137_v9, %v2382_v47  ;;  %v2066_v7 = vmul.f32 %v3115_v4, %v7189_v22  ;;  %v2067_v30 = vmul.f32 %v3115_v4, %v7190_v38  ;;  %2984 = vst [vmem:[#allocation8 + $0x8a0] sm:$0xff] %v2696_v28  ;;  %v2068_v23 = vmul.f32 %v3115_v4, %v7191_v42 }
 0x2ca   :  { %2985 = vst [vmem:[#allocation8 + $0x8a8] sm:$0xff] %v2697_v41  ;;  %2986 = vst [vmem:[#allocation8 + $0x8b0] sm:$0xff] %v2698_v43  ;;  %v2069_v8 = vmul.f32 %v3115_v4, %v7192_v12  ;;  %v2383_v40 = vmul.f32 %v5108_v58, %v2064_v15  ;;  %v2384_v18 = vmul.f32 %v5110_v55, %v2065_v49 }
 0x2cb   :  { %2987 = vst [vmem:[#allocation8 + $0x8b8] sm:$0xff] %v2699_v20  ;;  %2988 = vst [vmem:[#allocation8 + $0x8c0] sm:$0xff] %v2700_v32  ;;  %v2385_v52 = vmul.f32 %v5112_v59, %v2066_v7  ;;  %v2386_v33 = vmul.f32 %v5114_v57, %v2067_v30  ;;  %v2387_v51 = vmul.f32 %v5116_v11, %v2068_v23 }
 0x2cc   :  { %2989 = vst [vmem:[#allocation8 + $0x8c8] sm:$0xff] %v2701_v54  ;;  %v2388_v3 = vmul.f32 %v5118_v1, %v2069_v8  ;;  %v2702_v31 = vadd.f32 %v5120_v6, %v2383_v40  ;;  %v2703_v45 = vadd.f32 %v5122_v48, %v2384_v18 }
 0x2cd   :  { %v2704_v58 = vadd.f32 %v5124_v35, %v2385_v52  ;;  %v2705_v55 = vadd.f32 %v5133_v16, %v2386_v33  ;;  %v2706_v27 = vadd.f32 %v5135_v19, %v2387_v51 }
 0x2ce   :  { %v2707_v59 = vadd.f32 %v5137_v9, %v2388_v3  ;;  %2990 = vst [vmem:[#allocation8 + $0x8d0] sm:$0xff] %v2702_v31  ;;  %2991 = vst [vmem:[#allocation8 + $0x8d8] sm:$0xff] %v2703_v45 }
 0x2cf   :  { %2992 = vst [vmem:[#allocation8 + $0x8e0] sm:$0xff] %v2704_v58  ;;  %2993 = vst [vmem:[#allocation8 + $0x8e8] sm:$0xff] %v2705_v55 }
 0x2d0   :  { %2994 = vst [vmem:[#allocation8 + $0x8f0] sm:$0xff] %v2706_v27  ;;  %2995 = vst [vmem:[#allocation8 + $0x8f8] sm:$0xff] %v2707_v59 }
 0x2d1   :  { %3481 = shalt.err (!%p3478_p0)
}
 0x2d2   :  { %s3482_s25 = scalar_lea.hbm %s6400_s3, 36864 }
 0x2d3   :  { %p3483_p1 = scmp.ne.s32.totalorder %s6400_s3, %s3482_s25  ;;  %p3486_p2 = scmp.lt.u32.totalorder %s3482_s25, %s6400_s3 }
 0x2d5   :  { %p3488_p3 = pnand %p3486_p2, %p3483_p1 }
 0x2d7   :  { %3491 = shalt.err (!%p3488_p3)
}
 0x2d8   :  { %3007 = dma.vmem_to_hbm [thread:$0]  %s3002_s21, 36864, %s6400_s3, [#allocation4], %s3500_s1, %s3500_s1, %s3501_s7  }
 0x2d9   :  { %3496 = dma.done.wait [#allocation4], 36864  }
 0x2da   :  { %3497 = vsyncadd [#allocation4], 4294930432 }
 0x2db   :  { %3011 = vsyncpa [#allocation3], 1 }
 0x2dc   :  { %3012 = vsyncpa [#allocation6], 1 }
 0x2dd   :  { %3013 = vsyncpa [#allocation4], 1 }

</bundles_post_ra>
